<compile_context>
chip_gen: v5e
topology: v5e:2x2
jax: 0.10.0
libtpu: 0.0.40
codegen_flags: <defaults>
</compile_context>

<pallas_src>
import functools

import jax
import jax.numpy as jnp
from jax.experimental import pallas as pl
from jax.experimental.pallas import tpu as pltpu


def upconv_kernel(x_ref, w_ref, b_ref, o_ref, pad_ref, *, scale, pad):
    """One batch image per grid step.

    x_ref   : (1, H, W, Cin)          bf16
    w_ref   : (K, K*Cin, Cout)        bf16   (HWIO with the (kw, Cin) axes merged)
    b_ref   : (1, Cout)               f32
    o_ref   : (1, Ho, Wo, Cout)       f32
    pad_ref : (H*s+2p, W*s+2p, Cin)   bf16 VMEM scratch (upsampled + reflected)
    """
    _, H, W, Cin = x_ref.shape
    K = w_ref.shape[0]
    Cout = w_ref.shape[2]
    Hu, Wu = H * scale, W * scale
    _, Ho, Wo, _ = o_ref.shape

    x = x_ref[0]  # (H, W, Cin)

    # ---- nearest-neighbour upsample (integer factor) ----
    # rows: broadcast + collapse of leading dims (layout-trivial, lane dim untouched)
    xu = jnp.broadcast_to(x[:, None], (H, scale, W, Cin)).reshape(Hu, W, Cin)
    # cols: replicate column slices and concat along the sublane axis (no reshape)
    cols_up = []
    for w in range(W):
        cols_up.extend([xu[:, w:w + 1, :]] * scale)
    xu = jnp.concatenate(cols_up, axis=1)                       # (Hu, Wu, Cin)

    # ---- reflection pad, built purely from vreg values (single store path) ----
    if pad > 0:
        rows = ([xu[pad - i:pad - i + 1] for i in range(pad)] + [xu] +
                [xu[Hu - 2 - i:Hu - 1 - i] for i in range(pad)])
        xp = jnp.concatenate(rows, axis=0)                      # (Hu+2p, Wu, Cin)
        cols = ([xp[:, pad - i:pad - i + 1] for i in range(pad)] + [xp] +
                [xp[:, Wu - 2 - i:Wu - 1 - i] for i in range(pad)])
        xp = jnp.concatenate(cols, axis=1)                      # (Hu+2p, Wu+2p, Cin)
    else:
        xp = xu
    pad_ref[...] = xp.astype(pad_ref.dtype)

    # ---- KxK conv as K merged matmuls (per-kh im2col over kw, contraction K*Cin) ----
    acc = None
    for kh in range(K):
        wins = [pad_ref[kh:kh + Ho, kw:kw + Wo, :] for kw in range(K)]
        blk = jnp.concatenate(wins, axis=-1).reshape(Ho * Wo, K * Cin)   # bf16
        part = jnp.dot(blk, w_ref[kh], preferred_element_type=jnp.float32)
        acc = part if acc is None else acc + part                        # f32, lane-dense
    out = acc + b_ref[...]
    o_ref[0] = out.reshape(Ho, Wo, Cout).astype(o_ref.dtype)


def upconv_pallas(x_nchw, weight_oihw, bias, *, scale, stride=1):
    assert stride == 1, "only stride=1 implemented"   # TODO(synk): stride > 1
    N, Cin, H, W = x_nchw.shape
    Cout, Cin_w, K, Kw = weight_oihw.shape
    assert Cin_w == Cin and K == Kw
    pad = K // 2
    Hu, Wu = H * scale, W * scale
    Ho = Hu + 2 * pad - K + 1
    Wo = Wu + 2 * pad - K + 1

    # NCHW -> NHWC (bf16 activations halve DMA + feed the MXU directly)
    x_nhwc = jnp.transpose(x_nchw, (0, 2, 3, 1)).astype(jnp.bfloat16)
    # OIHW -> HWIO, then merge (kw, Cin) per kernel row -> (K, K*Cin, Cout)
    w_hwio = jnp.transpose(weight_oihw, (2, 3, 1, 0))
    w_merged = w_hwio.reshape(K, K * Cin, Cout).astype(jnp.bfloat16)
    b_row = bias.reshape(1, Cout).astype(jnp.float32)

    kernel = functools.partial(upconv_kernel, scale=scale, pad=pad)

    out_nhwc = pl.pallas_call(
        kernel,
        out_shape=jax.ShapeDtypeStruct((N, Ho, Wo, Cout), jnp.float32),
        grid_spec=pltpu.PrefetchScalarGridSpec(
            num_scalar_prefetch=0,
            grid=(N,),
            in_specs=[
                pl.BlockSpec((1, H, W, Cin), lambda n: (n, 0, 0, 0)),
                pl.BlockSpec((K, K * Cin, Cout), lambda n: (0, 0, 0)),
                pl.BlockSpec((1, Cout), lambda n: (0, 0)),
            ],
            out_specs=pl.BlockSpec((1, Ho, Wo, Cout), lambda n: (n, 0, 0, 0)),
            scratch_shapes=[
                pltpu.VMEM((Hu + 2 * pad, Wu + 2 * pad, Cin), jnp.bfloat16)],
        ),
        compiler_params=pltpu.CompilerParams(
            dimension_semantics=("parallel",)),
    )(x_nhwc, w_merged, b_row)

    return jnp.transpose(out_nhwc, (0, 3, 1, 2))   # back to NCHW


def upconv_ref(x_nchw, weight_oihw, bias, *, scale, stride=1):
    """Pure-JAX f32 reference of UpConvLayer.forward (nearest upsample)."""
    x = jnp.transpose(x_nchw, (0, 2, 3, 1))
    xu = jnp.repeat(jnp.repeat(x, scale, axis=1), scale, axis=2)
    pad = weight_oihw.shape[2] // 2
    if pad:
        xu = jnp.pad(xu, ((0, 0), (pad, pad), (pad, pad), (0, 0)), mode="reflect")
    w_hwio = jnp.transpose(weight_oihw, (2, 3, 1, 0))
    out = jax.lax.conv_general_dilated(
        xu, w_hwio, window_strides=(stride, stride), padding="VALID",
        dimension_numbers=("NHWC", "HWIO", "NHWC")) + bias
    return jnp.transpose(out, (0, 3, 1, 2))


if __name__ == "__main__":
    # UpConvLayer(in_channels=32, out_channels=128, kernel_size=3, stride=1, upsample=2)
    N, Cin, H, W = 2, 32, 8, 8
    Cout, K, stride, scale = 128, 3, 1, 2

    key = jax.random.PRNGKey(0)
    kx, kw, kb = jax.random.split(key, 3)
    x = jax.random.normal(kx, (N, Cin, H, W), jnp.float32)
    weight = 0.1 * jax.random.normal(kw, (Cout, Cin, K, K), jnp.float32)
    bias = 0.05 * jax.random.normal(kb, (Cout,), jnp.float32)

    out = upconv_pallas(x, weight, bias, scale=scale, stride=stride)
    jax.block_until_ready(out)

    ref = upconv_ref(x, weight, bias, scale=scale, stride=stride)
    assert out.shape == (N, Cout, H * scale, W * scale)
    max_err = float(jnp.max(jnp.abs(out - ref)))
    # bf16 MXU inputs with f32 accumulation -> relaxed tolerance vs f32 reference
    assert jnp.allclose(out, ref, rtol=5e-2, atol=5e-2), max_err
    print("KERNEL_OK")
</pallas_src>

<mosaic_0001>
module attributes {stable_mosaic.version = 11 : i64} {
  func.func @upconv_kernel(%arg0: i32, %arg1: memref<1x8x8x32xbf16, #tpu.memory_space<vmem>>, %arg2: memref<3x96x128xbf16, #tpu.memory_space<vmem>>, %arg3: memref<1x128xf32, #tpu.memory_space<vmem>>, %arg4: memref<1x16x16x128xf32, #tpu.memory_space<vmem>>, %arg5: memref<18x18x32xbf16, #tpu.memory_space<vmem>>) attributes {dimension_semantics = [#tpu.dimension_semantics<parallel>], iteration_bounds = array<i64: 2>, scalar_prefetch = 0 : i64, scratch_operands = 1 : i64, tpu.core_type = #tpu.core_type<tc>, window_params = [{transform_indices = @transform_0, window_bounds = array<i64: 1, 8, 8, 32>}, {pipeline_mode = #tpu.pipeline_mode<synchronous>, transform_indices = @transform_1, window_bounds = array<i64: 3, 96, 128>}, {pipeline_mode = #tpu.pipeline_mode<synchronous>, transform_indices = @transform_2, window_bounds = array<i64: 1, 128>}, {transform_indices = @transform_3, window_bounds = array<i64: 1, 16, 16, 128>}]} {
    %c0 = arith.constant 0 : index
    %c0_0 = arith.constant 0 : index
    %c0_1 = arith.constant 0 : index
    %c0_2 = arith.constant 0 : index
    %0 = vector.load %arg1[%c0, %c0_0, %c0_1, %c0_2] : memref<1x8x8x32xbf16, #tpu.memory_space<vmem>>, vector<1x8x8x32xbf16>
    %1 = vector.shape_cast %0 : vector<1x8x8x32xbf16> to vector<8x8x32xbf16>
    %2 = vector.shape_cast %1 : vector<8x8x32xbf16> to vector<8x1x8x32xbf16>
    %3 = vector.shape_cast %2 : vector<8x1x8x32xbf16> to vector<8x1x8x32xbf16>
    %4 = vector.broadcast %3 : vector<8x1x8x32xbf16> to vector<8x2x8x32xbf16>
    %5 = vector.shape_cast %4 : vector<8x2x8x32xbf16> to vector<16x8x32xbf16>
    %6 = vector.extract_strided_slice %5 {offsets = [0, 0, 0], sizes = [16, 1, 32], strides = [1, 1, 1]} : vector<16x8x32xbf16> to vector<16x1x32xbf16>
    %7 = vector.extract_strided_slice %5 {offsets = [0, 1, 0], sizes = [16, 1, 32], strides = [1, 1, 1]} : vector<16x8x32xbf16> to vector<16x1x32xbf16>
    %8 = vector.extract_strided_slice %5 {offsets = [0, 2, 0], sizes = [16, 1, 32], strides = [1, 1, 1]} : vector<16x8x32xbf16> to vector<16x1x32xbf16>
    %9 = vector.extract_strided_slice %5 {offsets = [0, 3, 0], sizes = [16, 1, 32], strides = [1, 1, 1]} : vector<16x8x32xbf16> to vector<16x1x32xbf16>
    %10 = vector.extract_strided_slice %5 {offsets = [0, 4, 0], sizes = [16, 1, 32], strides = [1, 1, 1]} : vector<16x8x32xbf16> to vector<16x1x32xbf16>
    %11 = vector.extract_strided_slice %5 {offsets = [0, 5, 0], sizes = [16, 1, 32], strides = [1, 1, 1]} : vector<16x8x32xbf16> to vector<16x1x32xbf16>
    %12 = vector.extract_strided_slice %5 {offsets = [0, 6, 0], sizes = [16, 1, 32], strides = [1, 1, 1]} : vector<16x8x32xbf16> to vector<16x1x32xbf16>
    %13 = vector.extract_strided_slice %5 {offsets = [0, 7, 0], sizes = [16, 1, 32], strides = [1, 1, 1]} : vector<16x8x32xbf16> to vector<16x1x32xbf16>
    %14 = tpu.concatenate %6, %6, %7, %7, %8, %8, %9, %9, %10, %10, %11, %11, %12, %12, %13, %13 in 1 : vector<16x1x32xbf16>, vector<16x1x32xbf16>, vector<16x1x32xbf16>, vector<16x1x32xbf16>, vector<16x1x32xbf16>, vector<16x1x32xbf16>, vector<16x1x32xbf16>, vector<16x1x32xbf16>, vector<16x1x32xbf16>, vector<16x1x32xbf16>, vector<16x1x32xbf16>, vector<16x1x32xbf16>, vector<16x1x32xbf16>, vector<16x1x32xbf16>, vector<16x1x32xbf16>, vector<16x1x32xbf16> -> vector<16x16x32xbf16>
    %15 = vector.extract_strided_slice %14 {offsets = [1, 0, 0], sizes = [1, 16, 32], strides = [1, 1, 1]} : vector<16x16x32xbf16> to vector<1x16x32xbf16>
    %16 = vector.extract_strided_slice %14 {offsets = [14, 0, 0], sizes = [1, 16, 32], strides = [1, 1, 1]} : vector<16x16x32xbf16> to vector<1x16x32xbf16>
    %17 = tpu.concatenate %15, %14, %16 in 0 : vector<1x16x32xbf16>, vector<16x16x32xbf16>, vector<1x16x32xbf16> -> vector<18x16x32xbf16>
    %18 = vector.extract_strided_slice %17 {offsets = [0, 1, 0], sizes = [18, 1, 32], strides = [1, 1, 1]} : vector<18x16x32xbf16> to vector<18x1x32xbf16>
    %19 = vector.extract_strided_slice %17 {offsets = [0, 14, 0], sizes = [18, 1, 32], strides = [1, 1, 1]} : vector<18x16x32xbf16> to vector<18x1x32xbf16>
    %20 = tpu.concatenate %18, %17, %19 in 1 : vector<18x1x32xbf16>, vector<18x16x32xbf16>, vector<18x1x32xbf16> -> vector<18x18x32xbf16>
    %c0_3 = arith.constant 0 : index
    %c0_4 = arith.constant 0 : index
    %c0_5 = arith.constant 0 : index
    %21 = vector.load %arg5[%c0_3, %c0_4, %c0_5] : memref<18x18x32xbf16, #tpu.memory_space<vmem>>, vector<18x18x32xbf16>
    tpu.vector_store %arg5[%c0_3, %c0_4, %c0_5], %20 {strides = array<i32>} : memref<18x18x32xbf16, #tpu.memory_space<vmem>>, vector<18x18x32xbf16>,
    %c0_6 = arith.constant 0 : index
    %c0_7 = arith.constant 0 : index
    %c0_8 = arith.constant 0 : index
    %22 = vector.load %arg5[%c0_6, %c0_7, %c0_8] : memref<18x18x32xbf16, #tpu.memory_space<vmem>>, vector<16x16x32xbf16>
    %c0_9 = arith.constant 0 : index
    %c1 = arith.constant 1 : index
    %c0_10 = arith.constant 0 : index
    %23 = vector.load %arg5[%c0_9, %c1, %c0_10] : memref<18x18x32xbf16, #tpu.memory_space<vmem>>, vector<16x16x32xbf16>
    %c0_11 = arith.constant 0 : index
    %c2 = arith.constant 2 : index
    %c0_12 = arith.constant 0 : index
    %24 = vector.load %arg5[%c0_11, %c2, %c0_12] : memref<18x18x32xbf16, #tpu.memory_space<vmem>>, vector<16x16x32xbf16>
    %25 = tpu.concatenate %22, %23, %24 in 2 : vector<16x16x32xbf16>, vector<16x16x32xbf16>, vector<16x16x32xbf16> -> vector<16x16x96xbf16>
    %26 = vector.shape_cast %25 : vector<16x16x96xbf16> to vector<256x96xbf16>
    %c0_13 = arith.constant 0 : index
    %c0_14 = arith.constant 0 : index
    %c0_15 = arith.constant 0 : index
    %27 = vector.load %arg2[%c0_13, %c0_14, %c0_15] : memref<3x96x128xbf16, #tpu.memory_space<vmem>>, vector<1x96x128xbf16>
    %28 = vector.shape_cast %27 : vector<1x96x128xbf16> to vector<96x128xbf16>
    %cst = arith.constant dense<0.000000e+00> : vector<256x128xf32>
    %29 = tpu.matmul %26, %28, %cst {dimension_numbers = #tpu.dot_dimension_numbers<[1], [0], [0], [1], [0, 0, 1, 1], [], []>} : vector<256x96xbf16>, vector<96x128xbf16>, vector<256x128xf32> -> vector<256x128xf32>
    %c1_16 = arith.constant 1 : index
    %c0_17 = arith.constant 0 : index
    %c0_18 = arith.constant 0 : index
    %30 = vector.load %arg5[%c1_16, %c0_17, %c0_18] : memref<18x18x32xbf16, #tpu.memory_space<vmem>>, vector<16x16x32xbf16>
    %c1_19 = arith.constant 1 : index
    %c1_20 = arith.constant 1 : index
    %c0_21 = arith.constant 0 : index
    %31 = vector.load %arg5[%c1_19, %c1_20, %c0_21] : memref<18x18x32xbf16, #tpu.memory_space<vmem>>, vector<16x16x32xbf16>
    %c1_22 = arith.constant 1 : index
    %c2_23 = arith.constant 2 : index
    %c0_24 = arith.constant 0 : index
    %32 = vector.load %arg5[%c1_22, %c2_23, %c0_24] : memref<18x18x32xbf16, #tpu.memory_space<vmem>>, vector<16x16x32xbf16>
    %33 = tpu.concatenate %30, %31, %32 in 2 : vector<16x16x32xbf16>, vector<16x16x32xbf16>, vector<16x16x32xbf16> -> vector<16x16x96xbf16>
    %34 = vector.shape_cast %33 : vector<16x16x96xbf16> to vector<256x96xbf16>
    %c1_25 = arith.constant 1 : index
    %c0_26 = arith.constant 0 : index
    %c0_27 = arith.constant 0 : index
    %35 = vector.load %arg2[%c1_25, %c0_26, %c0_27] : memref<3x96x128xbf16, #tpu.memory_space<vmem>>, vector<1x96x128xbf16>
    %36 = vector.shape_cast %35 : vector<1x96x128xbf16> to vector<96x128xbf16>
    %cst_28 = arith.constant dense<0.000000e+00> : vector<256x128xf32>
    %37 = tpu.matmul %34, %36, %cst_28 {dimension_numbers = #tpu.dot_dimension_numbers<[1], [0], [0], [1], [0, 0, 1, 1], [], []>} : vector<256x96xbf16>, vector<96x128xbf16>, vector<256x128xf32> -> vector<256x128xf32>
    %38 = arith.addf %29, %37 : vector<256x128xf32>
    %c2_29 = arith.constant 2 : index
    %c0_30 = arith.constant 0 : index
    %c0_31 = arith.constant 0 : index
    %39 = vector.load %arg5[%c2_29, %c0_30, %c0_31] : memref<18x18x32xbf16, #tpu.memory_space<vmem>>, vector<16x16x32xbf16>
    %c2_32 = arith.constant 2 : index
    %c1_33 = arith.constant 1 : index
    %c0_34 = arith.constant 0 : index
    %40 = vector.load %arg5[%c2_32, %c1_33, %c0_34] : memref<18x18x32xbf16, #tpu.memory_space<vmem>>, vector<16x16x32xbf16>
    %c2_35 = arith.constant 2 : index
    %c2_36 = arith.constant 2 : index
    %c0_37 = arith.constant 0 : index
    %41 = vector.load %arg5[%c2_35, %c2_36, %c0_37] : memref<18x18x32xbf16, #tpu.memory_space<vmem>>, vector<16x16x32xbf16>
    %42 = tpu.concatenate %39, %40, %41 in 2 : vector<16x16x32xbf16>, vector<16x16x32xbf16>, vector<16x16x32xbf16> -> vector<16x16x96xbf16>
    %43 = vector.shape_cast %42 : vector<16x16x96xbf16> to vector<256x96xbf16>
    %c2_38 = arith.constant 2 : index
    %c0_39 = arith.constant 0 : index
    %c0_40 = arith.constant 0 : index
    %44 = vector.load %arg2[%c2_38, %c0_39, %c0_40] : memref<3x96x128xbf16, #tpu.memory_space<vmem>>, vector<1x96x128xbf16>
    %45 = vector.shape_cast %44 : vector<1x96x128xbf16> to vector<96x128xbf16>
    %cst_41 = arith.constant dense<0.000000e+00> : vector<256x128xf32>
    %46 = tpu.matmul %43, %45, %cst_41 {dimension_numbers = #tpu.dot_dimension_numbers<[1], [0], [0], [1], [0, 0, 1, 1], [], []>} : vector<256x96xbf16>, vector<96x128xbf16>, vector<256x128xf32> -> vector<256x128xf32>
    %47 = arith.addf %38, %46 : vector<256x128xf32>
    %c0_42 = arith.constant 0 : index
    %c0_43 = arith.constant 0 : index
    %48 = vector.load %arg3[%c0_42, %c0_43] : memref<1x128xf32, #tpu.memory_space<vmem>>, vector<1x128xf32>
    %49 = vector.broadcast %48 : vector<1x128xf32> to vector<256x128xf32>
    %50 = arith.addf %47, %49 : vector<256x128xf32>
    %51 = vector.shape_cast %50 : vector<256x128xf32> to vector<16x16x128xf32>
    %c0_44 = arith.constant 0 : index
    %c0_45 = arith.constant 0 : index
    %c0_46 = arith.constant 0 : index
    %c0_47 = arith.constant 0 : index
    %52 = vector.load %arg4[%c0_44, %c0_45, %c0_46, %c0_47] : memref<1x16x16x128xf32, #tpu.memory_space<vmem>>, vector<1x16x16x128xf32>
    %53 = vector.shape_cast %52 : vector<1x16x16x128xf32> to vector<16x16x128xf32>
    %54 = vector.shape_cast %51 : vector<16x16x128xf32> to vector<1x16x16x128xf32>
    tpu.vector_store %arg4[%c0_44, %c0_45, %c0_46, %c0_47], %54 {strides = array<i32>} : memref<1x16x16x128xf32, #tpu.memory_space<vmem>>, vector<1x16x16x128xf32>,
    return
  }
  func.func @transform_0(%arg0: i32) -> (i32, i32, i32, i32) {
    %c0_i32 = arith.constant 0 : i32
    %c0_i32_0 = arith.constant 0 : i32
    %c0_i32_1 = arith.constant 0 : i32
    %c0_i32_2 = arith.constant 0 : i32
    return %arg0, %c0_i32, %c0_i32_0, %c0_i32_1 : i32, i32, i32, i32
  }
  func.func @transform_1(%arg0: i32) -> (i32, i32, i32) {
    %c0_i32 = arith.constant 0 : i32
    %c0_i32_0 = arith.constant 0 : i32
    %c0_i32_1 = arith.constant 0 : i32
    %c0_i32_2 = arith.constant 0 : i32
    return %c0_i32, %c0_i32_0, %c0_i32_1 : i32, i32, i32
  }
  func.func @transform_2(%arg0: i32) -> (i32, i32) {
    %c0_i32 = arith.constant 0 : i32
    %c0_i32_0 = arith.constant 0 : i32
    %c0_i32_1 = arith.constant 0 : i32
    return %c0_i32, %c0_i32_0 : i32, i32
  }
  func.func @transform_3(%arg0: i32) -> (i32, i32, i32, i32) {
    %c0_i32 = arith.constant 0 : i32
    %c0_i32_0 = arith.constant 0 : i32
    %c0_i32_1 = arith.constant 0 : i32
    %c0_i32_2 = arith.constant 0 : i32
    return %arg0, %c0_i32, %c0_i32_0, %c0_i32_1 : i32, i32, i32, i32
  }
}

</mosaic_0001>

<bundles_post_ra>
// kernel: tpu_custom_call.1
= control target key start
LH: loop header
LB: loop body
LE: loop exit
PB: predicated region body
PF: predicated region fallthrough
CT: control target
= control target key end

     0   :  { %8 = vsyncpa [#allocation4], 0  ;;  %s5803_s0 = inlined_call_operand.hbm [shape: bf16[2,8,8,32], index: 0, kind: input, shape index: {}]   ;;  %s5804_s1 = inlined_call_operand.hbm [shape: bf16[3,96,128], index: 1, kind: input, shape index: {}]   ;;  %s5805_s2 = inlined_call_operand.vmem [shape: f32[1,128], index: 2, kind: input, shape index: {}]   ;;  %s5806_s3 = inlined_call_operand.hbm [shape: f32[2,16,16,128], index: 3, kind: output, shape index: {}]  }
   0x1   :  { %10 = vsyncpa [#allocation4 + $0x1], 0 }
   0x2   :  { %11 = vsyncpa [#allocation7], 0 }
   0x3   :  { %12 = vsyncpa [#allocation5], 0 }
   0x4   :  { %14 = vsyncpa [#allocation5 + $0x1], 0  ;;  %s4206_s12 = smov 0   ;;  %s4208_s13 = smov 0  }
   0x5   :  { %s4210_s14 = smov 0   ;;  %s4212_s15 = smov 0  }
   0x6 LB: > { %s4227_s16 = sadd.s32 4294967295, %s4177_s15   ;;  %s3537_s17 = sadd.s32 4294967294, %s4177_s15   ;;  %s4177_s15 = sphi %s4212_s15, %s5997_s15   ;;  %s4173_s14 = sphi %s4210_s14, %s5996_s14   ;;  %s4169_s13 = sphi %s4208_s13, %s5995_s13   ;;  %s4165_s12 = sphi %s4206_s12, %s5994_s12  }
   0x7   : > { %p40_p0 = scmp.ne.s32.totalorder %s4169_s13, %s4165_s12  ;;  %p41_p1 = scmp.eq.s32.totalorder %s4227_s16, 0 }
   0x8   : > { %p106_p2 = scmp.eq.s32.totalorder %s4227_s16, 1  ;;  %p112_p3 = scmp.eq.s32.totalorder %s3537_s17, 1 }
   0x9   : > { %p4236_p4 = por %p41_p1, %p40_p0  ;;  %p3538_p5 = scmp.ge.s32.totalorder %s4177_s15, 1 }
   0xa   : > { %p4241_p6 = por %p112_p3, %p40_p0  ;;  %p119_p7 = scmp.lt.s32.totalorder %s4177_s15, 3 }
   0xb   : > { %s130_s22 = sshll.u32 %s5804_s1, 4  ;;  %s4179_s24 = smov [#allocation6]   ;;  %s131_s22 = int_to_ptr.hbm [resolvable:$true] %s130_s22 }
   0xc   : > { %p4249_p8 = pnand %p3538_p5, %p119_p7  ;;  %s132_s25 = sshll.u32 %s4179_s24, 4  ;;  %s133_s25 = int_to_ptr.vmem [resolvable:$true] %s132_s25 }
   0xd   : > { %s4259_s26 = sadd.s32 1, %s4177_s15   ;;  %s4180_s27 = smov 64  }
   0xe   : > { %p3909_p9 = pneg %p4249_p8  ;;  %s4181_s28 = smov 4  }
   0xf   : > { %s24_s29 = ssub.s32 %s4177_s15, %s4259_s26  ;;  %s27_s30 = sadd.s32 1, %s4173_s14 }
  0x10   : > { %p3910_p10 = pnand %p3909_p9, %p41_p1  ;;  %p25_p12 = scmp.eq.s32.totalorder %s24_s29, 0 }
  0x11   : > { %p34_p13 = scmp.ne.s32.totalorder %s4173_s14, %s4169_s13  ;;  %p35_p0 = scmp.eq.s32.totalorder %s4177_s15, 0 }
  0x12   : > { %3912 = dma.hbm_to_vmem [thread:$0]  (!%p3910_p10), %s131_s22, 2304, %s133_s25, [#allocation7], %s4180_s27, %s4180_s27, %s4181_s28  }
  0x13   : > { %s4271_s4 = scalar_select %p25_p12, %s4173_s14, %s27_s30  }
  0x14   : > { %p4275_p3 = por %p106_p2, %p34_p13  ;;  %p3922_p5 = scmp.lt.s32.totalorder %s4177_s15, 2 }
  0x15   : > { %s149_s6 = sand.u32 1, %s4173_s14   ;;  %s3673_s7 = sshll.u32 %s4177_s15, 5 }
  0x16   : > { %p36_p7 = por %p35_p0, %p34_p13  ;;  %s3541_s8 = sshll.u32 %s149_s6, 5 }
  0x17   : > { %s158_s11 = scalar_lea.hbm %s5803_s0, %s3673_s7  ;;  %s153_s20 = scalar_lea.vmem [#allocation3], %s3541_s8 }
  0x18   : > { %s159_s17 = sshll.u32 %s158_s11, 4  ;;  %s161_s21 = sshll.u32 %s153_s20, 4  ;;  %s160_s17 = int_to_ptr.hbm [resolvable:$true] %s159_s17  ;;  %s162_s21 = int_to_ptr.vmem [resolvable:$true] %s161_s21 }
  0x19   : > { %p4285_p9 = pnand %p3922_p5, %p36_p7  ;;  %s150_s24 = scalar_lea.sflag [#allocation4], %s149_s6 }
  0x1a   : > { %s4062_s25 = sshra.s32 %s160_s17, 4  ;;  %s4069_s8 = scalar_lea.hbm %s5803_s0, 64  ;;  %s4063_s25 = int_to_ptr.hbm [resolvable:$true] %s4062_s25 }
  0x1b   : > { %s4064_s29 = scalar_lea.hbm %s4063_s25, 32  ;;  %p4066_p10 = pneg %p4285_p9 }
  0x1c   : > { %p4065_p2 = scmp.ne.s32.totalorder %s4063_s25, %s4064_s29  ;;  %p4070_p0 = scmp.lt.s32.totalorder %s4063_s25, %s5803_s0 }
  0x1d   : > { %p4071_p5 = scmp.lt.s32.totalorder %s4069_s8, %s4064_s29 }
  0x1e   : > { %p4067_p12 = pnand %p4066_p10, %p4065_p2 }
  0x1f   : > { %p4072_p7 = por %p4071_p5, %p4070_p0 }
  0x20   : > { %p4068_p13 = pneg %p4067_p12 }
  0x22   : > { %p4073_p11 = pnand %p4072_p7, %p4068_p13 }
  0x24   : > { %4076 = shalt.err (!%p4073_p11)
}
  0x25   : > { %3916 = dma.hbm_to_vmem [thread:$0]  (!%p4285_p9), %s160_s17, 512, %s162_s21, %s150_s24, %s4180_s27, %s4180_s27, %s4181_s28  }
  0x26   : > { %173 = sbr.rel (%p4249_p8) target bundleno = 624 (0x270), region = 32 }
  0x2b   : > { %s4305_s6 = sand.u32 1, %s4169_s13  }
  0x2c   : > { %s3545_s11 = sshll.u32 %s4305_s6, 5  ;;  %s176_s20 = scalar_lea.sflag [#allocation4], %s4305_s6 }
  0x2d   : > { %s4309_s25 = scalar_lea.vmem [#allocation3], %s3545_s11 }
  0x2e   : > { %4137 = dma.done.wait (%p4236_p4), %s176_s20, 512  }
  0x2f   : > { %4139 = vsyncadd (%p4236_p4), %s176_s20, 4294966784 }
  0x30   : > { %4141 = dma.done.wait (%p41_p1), [#allocation7], 2304  }
  0x31   : > { %4143 = vsyncadd (%p41_p1), [#allocation7], 4294964992  ;;  %v209_v0 = vld [vmem:[%s4309_s25] sm:$0xf]  ;;  %v215_v1 = vld [vmem:[%s4309_s25 + $0x18] sm:$0xf] }
  0x32   : > { %v225_v2 = vunpack.c.l.b16 %v209_v0  ;;  %vm426_vm0 = vsmask.f32 256  ;;  %v231_v3 = vunpack.c.l.b16 %v215_v1  ;;  %v4322_v4 = vld [vmem:[%s4309_s25 + $0x4] sm:$0xf]  ;;  %vm5809_vm1 = vcmask 1040384   ;;  %s4182_s18 = smov 64  }
  0x33   : > { %vm5807_vm2 = vcmask 1041408   ;;  %v4325_v5 = vld [vmem:[%s4309_s25 + $0x1c] sm:$0xf]  ;;  %vm470_vm3 = vsmask.f32 1280  ;;  %vm513_vm4 = vcmask 1042432   ;;  %v226_v8 = vunpack.c.l.b16 %v4322_v4  ;;  %vm4340_vm8 = vmand %vm5809_vm1, %vm426_vm0 }
  0x34   : > { %v4327_v6 = vpack.c.b16 %v225_v2, %v225_v2  ;;  %v4329_v7 = vpack.c.b16 %v231_v3, %v231_v3  ;;  %vm514_vm5 = vsmask.f32 2304  ;;  %vm557_vm6 = vcmask 1043456   ;;  %vm4352_vm12 = vmand %vm5807_vm2, %vm470_vm3  ;;  %s4183_s23 = smov 32   ;;  %s3547_s27 = sshll.u32 %s4305_s6, 8 }
  0x35   : > { %vm558_vm7 = vsmask.f32 3328  ;;  %vm5812_vm9 = vcmask 1044480   ;;  %v232_v12 = vunpack.c.l.b16 %v4325_v5  ;;  %vm602_vm10 = vsmask.f32 4352  ;;  %vm4369_vm3 = vmand %vm513_vm4, %vm514_vm5  ;;  %s5578_s21 = scalar_lea.vmem [#allocation8], %s3547_s27 }
  0x36   : > { %v4333_v9 = vshll.u32 %v4327_v6, 16  ;;  %v4336_v10 = vshrl.u32 %v4327_v6, 16  ;;  %v297_v13 = vrot.slane %v4327_v6, 7  ;;  %v4347_v14 = vshrl.u32 %v4329_v7, 16  ;;  %vm4387_vm5 = vmand %vm557_vm6, %vm558_vm7  ;;  %s3692_s22 = sshll.u32 %s4227_s16, 8  ;;  %s3451_s16 = sshll.u32 %s5578_s21, 4  ;;  %s3452_s16 = int_to_ptr.vmem [resolvable:$true] %s3451_s16 }
  0x37   : > { %vm646_vm13 = vsmask.f32 5376  ;;  %vm689_vm14 = vcmask 1046528   ;;  %vm690_vm15 = vsmask.f32 6400  ;;  %v4361_v19 = vshll.u32 %v4329_v7, 16  ;;  %vm4404_vm7 = vmand %vm5812_vm9, %vm602_vm10  ;;  %s3450_s30 = scalar_lea.hbm %s5806_s3, %s3692_s22 }
  0x38   : > { %v275_v15 = vrot.slane %v4336_v10, 7  ;;  %v313_v17 = vrot.slane %v4333_v9, 7  ;;  %v428_v18 = vsel %vm4340_vm8, %v209_v0, %v4333_v9  ;;  %vm5808_vm11 = vsmask.f32 7424  ;;  %s3453_s7 = sshll.u32 %s3450_s30, 4  ;;  %s3439_s8 = scalar_lea.sflag [#allocation5], %s4305_s6  ;;  %s3454_s7 = int_to_ptr.hbm [resolvable:$true] %s3453_s7 }
  0x39   : > { %v4363_v20 = vpack.c.b16 %v226_v8, %v226_v8  ;;  %v329_v21 = vrot.slane %v4336_v10, 6  ;;  %v293_v24 = vrot.slane %v4347_v14, 7  ;;  %v4374_v25 = vpack.c.b16 %v232_v12, %v232_v12  ;;  %s4106_s9 = sshra.s32 %s3454_s7, 4  ;;  %s4107_s9 = int_to_ptr.hbm [resolvable:$true] %s4106_s9 }
  0x3a   : > { %v439_v22 = vsel %vm5809_vm1, %v428_v18, %v275_v15  ;;  %v337_v26 = vrot.slane %v4327_v6, 6  ;;  %v377_v27 = vrot.slane %v4327_v6, 5  ;;  %v303_v29 = vrot.slane %v4329_v7, 7  ;;  %s4108_s10 = scalar_lea.hbm %s4107_s9, 256  ;;  %p4113_p11 = scmp.lt.s32.totalorder %s4107_s9, %s5806_s3 }
  0x3b   : > { %v472_v28 = vsel %vm4352_vm12, %v439_v22, %v297_v13  ;;  %v353_v30 = vrot.slane %v4333_v9, 6  ;;  %v369_v31 = vrot.slane %v4336_v10, 5  ;;  %v393_v32 = vrot.slane %v4333_v9, 5  ;;  %p4109_p1 = scmp.ne.s32.totalorder %s4107_s9, %s4108_s10 }
  0x3c   : > { %v483_v33 = vsel %vm5807_vm2, %v472_v28, %v297_v13  ;;  %v319_v36 = vrot.slane %v4361_v19, 7  ;;  %v434_v37 = vsel %vm4340_vm8, %v215_v1, %v4361_v19  ;;  %v4398_v38 = vshrl.u32 %v4363_v20, 16 }
  0x3d   : > { %v516_v35 = vsel %vm4369_vm3, %v483_v33, %v313_v17  ;;  %v409_v39 = vrot.slane %v4336_v10, 4  ;;  %v335_v42 = vrot.slane %v4347_v14, 6  ;;  %v463_v43 = vsel %vm5809_vm1, %v434_v37, %v293_v24  ;;  %p4110_p4 = pnand %p4109_p1, %p4275_p3 }
  0x3e   : > { %v527_v40 = vsel %vm513_vm4, %v516_v35, %v329_v21  ;;  %v343_v45 = vrot.slane %v4329_v7, 6  ;;  %v478_v46 = vsel %vm4352_vm12, %v463_v43, %v303_v29  ;;  %v4416_v47 = vshll.u32 %v4363_v20, 16 }
  0x3f   : > { %v560_v44 = vsel %vm4387_vm5, %v527_v40, %v337_v26  ;;  %vm5838_vm10 = vcmask 1045504   ;;  %v359_v50 = vrot.slane %v4361_v19, 6  ;;  %v507_v51 = vsel %vm5807_vm2, %v478_v46, %v303_v29  ;;  %p4111_p8 = pneg %p4110_p4 }
  0x40   : > { %v571_v48 = vsel %vm557_vm6, %v560_v44, %v337_v26  ;;  %vm4421_vm0 = vmand %vm5838_vm10, %vm646_vm13  ;;  %v278_v52 = vrot.slane %v4398_v38, 7  ;;  %v375_v54 = vrot.slane %v4347_v14, 5  ;;  %v522_v55 = vsel %vm4369_vm3, %v507_v51, %v319_v36 }
  0x41   : > { %v604_v53 = vsel %vm4404_vm7, %v571_v48, %v353_v30  ;;  %v298_v56 = vrot.slane %v4363_v20, 7  ;;  %vm4437_vm13 = vmand %vm689_vm14, %vm690_vm15  ;;  %v383_v59 = vrot.slane %v4329_v7, 5  ;;  %v399_v60 = vrot.slane %v4361_v19, 5 }
  0x42   : > { %v615_v57 = vsel %vm5812_vm9, %v604_v53, %v369_v31  ;;  %v551_v61 = vsel %vm513_vm4, %v522_v55, %v335_v42  ;;  %v314_v0 = vrot.slane %v4416_v47, 7  ;;  %v429_v1 = vsel %vm4340_vm8, %v4322_v4, %v4416_v47  ;;  %vm5843_vm15 = vmmov %vm5838_vm10 }
  0x43   : > { %v648_v62 = vsel %vm4421_vm0, %v615_v57, %v377_v27  ;;  %v566_v63 = vsel %vm4387_vm5, %v551_v61, %v343_v45  ;;  %vm5844_vm10 = vcmask 1047552   ;;  %v330_v9 = vrot.slane %v4398_v38, 6 }
  0x44   : > { %v659_v2 = vsel %vm5843_vm15, %v648_v62, %v377_v27  ;;  %vm4456_vm2 = vmand %vm5844_vm10, %vm5808_vm11  ;;  %v595_v8 = vsel %vm557_vm6, %v566_v63, %v343_v45  ;;  %v443_v10 = vsel %vm5809_vm1, %v429_v1, %v278_v52  ;;  %v338_v13 = vrot.slane %v4363_v20, 6 }
  0x45   : > { %v692_v12 = vsel %vm4437_vm13, %v659_v2, %v393_v32  ;;  %v610_v4 = vsel %vm4404_vm7, %v595_v8, %v359_v50  ;;  %v473_v15 = vsel %vm4352_vm12, %v443_v10, %v298_v56  ;;  %vm5811_vm15 = vcmask 253952  }
  0x46   : > { %v703_v17 = vsel %vm689_vm14, %v692_v12, %v409_v39  ;;  %v415_v18 = vrot.slane %v4347_v14, 4  ;;  %v639_v19 = vsel %vm5812_vm9, %v610_v4, %v375_v54  ;;  %vm5847_vm10 = vcmask 1041408  }
  0x47   : > { %v487_v21 = vsel %vm5847_vm10, %v473_v15, %v298_v56  ;;  %v736_v22 = vsel %vm4456_vm2, %v703_v17, %v4327_v6  ;;  %v654_v24 = vsel %vm4421_vm0, %v639_v19, %v383_v59  ;;  %v354_v26 = vrot.slane %v4416_v47, 6 }
  0x48   : > { %v517_v27 = vsel %vm4369_vm3, %v487_v21, %v314_v0  ;;  %v745_v28 = vshrl.u32 %v736_v22, 16  ;;  %v777_v29 = vshll.u32 %v736_v22, 16  ;;  %vm5810_vm11 = vcmask 257024  }
  0x49   : > { %vm5848_vm1 = vcmask 1045504   ;;  %v531_v30 = vsel %vm513_vm4, %v517_v27, %v330_v9  ;;  %v370_v6 = vrot.slane %v4398_v38, 5  ;;  %v378_v32 = vrot.slane %v4363_v20, 5 }
  0x4a   : > { %v683_v14 = vsel %vm5848_vm1, %v654_v24, %v383_v59  ;;  %v561_v33 = vsel %vm4387_vm5, %v531_v30, %v338_v13  ;;  %v776_v35 = vrot.slane %v745_v28, 7  ;;  %v824_v36 = vrot.slane %v777_v29, 7 }
  0x4b   : > { %v698_v31 = vsel %vm4437_vm13, %v683_v14, %v399_v60  ;;  %v575_v39 = vsel %vm557_vm6, %v561_v33, %v338_v13  ;;  %v394_v42 = vrot.slane %v4416_v47, 5  ;;  %v4499_v44 = vshrl.u32 %v4374_v25, 16 }
  0x4c   : > { %v727_v37 = vsel %vm689_vm14, %v698_v31, %v415_v18  ;;  %v605_v43 = vsel %vm4404_vm7, %v575_v39, %v354_v26  ;;  %v779_v45 = vor.u32 %v777_v29, %v776_v35  ;;  %v848_v46 = vsel %vm4340_vm8, %v776_v35, %v824_v36 }
  0x4d   : > { %v742_v40 = vsel %vm4456_vm2, %v727_v37, %v4329_v7  ;;  %v874_v51 = vunpack.c.l.b16 %v848_v46  ;;  %v410_v52 = vrot.slane %v4398_v38, 4  ;;  %v619_v53 = vsel %vm5812_vm9, %v605_v43, %v370_v6 }
  0x4e   : > { %v763_v48 = vshrl.u32 %v742_v40, 16  ;;  %v801_v50 = vshll.u32 %v742_v40, 16  ;;  %v4506_v7 = vshll.u32 %v4374_v25, 16  ;;  %v840_v47 = vsel %vm4340_vm8, %v745_v28, %v779_v45 }
  0x4f   : > { %v649_v56 = vsel %vm4421_vm0, %v619_v53, %v378_v32  ;;  %v872_v57 = vunpack.c.l.b16 %v840_v47  ;;  %v873_v59 = vunpack.c.h.b16 %v840_v47  ;;  %v898_v60 = vpack.c.b16 %v874_v51, %v874_v51 }
  0x50   : > { %v800_v54 = vrot.slane %v763_v48, 7  ;;  %v830_v55 = vrot.slane %v801_v50, 7  ;;  %v663_v61 = vsel %vm5848_vm1, %v649_v56, %v378_v32  ;;  %v296_v63 = vrot.slane %v4499_v44, 7 }
  0x51   : > { %v693_v38 = vsel %vm4437_vm13, %v663_v61, %v394_v42  ;;  %v304_v0 = vrot.slane %v4374_v25, 7  ;;  %v896_v1 = vpack.c.b16 %v872_v57, %v872_v57  ;;  %v897_v2 = vpack.c.b16 %v873_v59, %v873_v59  ;;  %954 = vst.msk [vmem:[#allocation2 + $0x20] sm:$0x1] %vm5811_vm15, %v898_v60 }
  0x52   : > { %v803_v62 = vor.u32 %v801_v50, %v800_v54  ;;  %v854_v8 = vsel %vm4340_vm8, %v800_v54, %v830_v55  ;;  %v707_v9 = vsel %vm689_vm14, %v693_v38, %v410_v52  ;;  %948 = vst.msk [vmem:[#allocation2 + $0x8] sm:$0x1] %vm5811_vm15, %v898_v60  ;;  %v435_v4 = vsel %vm4340_vm8, %v4325_v5, %v4506_v7 }
  0x53   : > { %v737_v12 = vsel %vm4456_vm2, %v707_v9, %v4363_v20  ;;  %952 = vst.msk [vmem:[#allocation2 + $0x18] sm:$0xf] %vm5810_vm11, %v896_v1  ;;  %v320_v18 = vrot.slane %v4506_v7, 7  ;;  %v892_v19 = vunpack.c.l.b16 %v854_v8  ;;  %v336_v22 = vrot.slane %v4499_v44, 6 }
  0x54   : > { %v846_v10 = vsel %vm4340_vm8, %v763_v48, %v803_v62  ;;  %v748_v17 = vshrl.u32 %v737_v12, 16  ;;  %953 = vst.msk [vmem:[#allocation2 + $0x1c] sm:$0xf] %vm5810_vm11, %v897_v2  ;;  %v781_v21 = vshll.u32 %v737_v12, 16  ;;  %vm5849_vm10 = vcmask 1040384  }
  0x55   : > { %v890_v13 = vunpack.c.l.b16 %v846_v10  ;;  %v891_v15 = vunpack.c.h.b16 %v846_v10  ;;  %v467_v20 = vsel %vm5849_vm10, %v435_v4, %v296_v63  ;;  %945 = vst.msk [vmem:[#allocation2] sm:$0xf] %vm5810_vm11, %v896_v1  ;;  %vm5850_vm1 = vcmask 1041408  }
  0x56   : > { %v780_v24 = vrot.slane %v748_v17, 7  ;;  %v479_v5 = vsel %vm4352_vm12, %v467_v20, %v304_v0  ;;  %946 = vst.msk [vmem:[#allocation2 + $0x4] sm:$0xf] %vm5810_vm11, %v897_v2  ;;  %v825_v27 = vrot.slane %v781_v21, 7  ;;  %v344_v30 = vrot.slane %v4374_v25, 6 }
  0x57   : > { %v914_v26 = vpack.c.b16 %v890_v13, %v890_v13  ;;  %v511_v28 = vsel %vm5850_vm1, %v479_v5, %v304_v0  ;;  %949 = vst.msk [vmem:[#allocation2 + $0xc] sm:$0xf] %vm5810_vm11, %v896_v1  ;;  %v915_v29 = vpack.c.b16 %v891_v15, %v891_v15  ;;  %v916_v32 = vpack.c.b16 %v892_v19, %v892_v19 }
  0x58   : > { %v783_v14 = vor.u32 %v781_v21, %v780_v24  ;;  %v523_v31 = vsel %vm4369_vm3, %v511_v28, %v320_v18  ;;  %v2592_v6 = vld [vmem:[#allocation2 + $0x20] sm:$0x1]  ;;  %950 = vst.msk [vmem:[#allocation2 + $0x10] sm:$0xf] %vm5810_vm11, %v897_v2  ;;  %v849_v33 = vsel %vm4340_vm8, %v780_v24, %v825_v27  ;;  %v360_v35 = vrot.slane %v4506_v7, 6 }
  0x59   : > { %v555_v36 = vsel %vm513_vm4, %v523_v31, %v336_v22  ;;  %v2720_v37 = vunpack.c.l.b16 %v2592_v6  ;;  %951 = vst.msk [vmem:[#allocation2 + $0x14] sm:$0x1] %vm5811_vm15, %v898_v60  ;;  %v1032_v39 = vld [vmem:[#allocation2 + $0x8] sm:$0x1]  ;;  %v1656_v40 = vld [vmem:[#allocation2 + $0x20] sm:$0x1]  ;;  %v877_v43 = vunpack.c.l.b16 %v849_v33 }
  0x5a   : > { %v841_v42 = vsel %vm4340_vm8, %v748_v17, %v783_v14  ;;  %v3860_v45 = vld [vmem:[#allocation2 + $0x18] sm:$0xe]  ;;  %v1160_v46 = vunpack.c.l.b16 %v1032_v39  ;;  %988 = vst.msk [vmem:[#allocation2 + $0xa8] sm:$0xf] %vm5810_vm11, %v914_v26  ;;  %v376_v51 = vrot.slane %v4499_v44, 5  ;;  %v567_v54 = vsel %vm4387_vm5, %v555_v36, %v344_v30 }
  0x5b   : > { %v875_v48 = vunpack.c.l.b16 %v841_v42  ;;  %v876_v50 = vunpack.c.h.b16 %v841_v42  ;;  %v3859_v52 = vld [vmem:[#allocation2 + $0x18] sm:$0xf0]  ;;  %v4555_v53 = vpack.c.b16 %v2720_v37, %v2720_v37  ;;  %989 = vst.msk [vmem:[#allocation2 + $0xac] sm:$0xf] %vm5810_vm11, %v915_v29  ;;  %v3829_v47 = vld [vmem:[#allocation2 + $0x18] sm:$0xe]  ;;  %v1784_v60 = vunpack.c.l.b16 %v1656_v40 }
  0x5c   : > { %v3861_v55 = vor.u32 %v3860_v45, %v3859_v52  ;;  %v3797_v56 = vld [vmem:[#allocation2] sm:$0xe]  ;;  %v1176_v57 = vpack.c.b16 %v1160_v46, %v1160_v46  ;;  %990 = vst.msk [vmem:[#allocation2 + $0xb0] sm:$0x1] %vm5811_vm15, %v916_v32  ;;  %v3828_v59 = vld [vmem:[#allocation2 + $0x18] sm:$0xf0]  ;;  %v901_v1 = vpack.c.b16 %v877_v43, %v877_v43  ;;  %v599_v10 = vsel %vm557_vm6, %v567_v54, %v344_v30 }
  0x5d   : > { %v899_v61 = vpack.c.b16 %v875_v48, %v875_v48  ;;  %v3025_v62 = vrot.slane %v4555_v53, 1  ;;  %v3796_v38 = vld [vmem:[#allocation2] sm:$0xf0]  ;;  %985 = vst.msk [vmem:[#allocation2 + $0x9c] sm:$0xf] %vm5810_vm11, %v914_v26  ;;  %v900_v0 = vpack.c.b16 %v876_v50, %v876_v50  ;;  %v384_v15 = vrot.slane %v4374_v25, 5 }
  0x5e   : > { %v3694_v63 = vld [vmem:[#allocation2] sm:$0xff]   ;;  %v3024_v2 = vrot.slane %v3861_v55, 1  ;;  %v3798_v8 = vor.u32 %v3797_v56, %v3796_v38  ;;  %v1465_v9 = vrot.slane %v1176_v57, 1  ;;  %986 = vst.msk [vmem:[#allocation2 + $0xa0] sm:$0xf] %vm5810_vm11, %v915_v29  ;;  %v1200_v13 = vshll.u32 %v1176_v57, 16 }
  0x5f   : > { %v1193_v12 = vshrl.u32 %v3694_v63, 16  ;;  %v1195_v4 = vshll.u32 %v3694_v63, 16  ;;  %987 = vst.msk [vmem:[#allocation2 + $0xa4] sm:$0x1] %vm5811_vm15, %v916_v32  ;;  %v4568_v19 = vpack.c.b16 %v1784_v60, %v1784_v60  ;;  %v3830_v21 = vor.u32 %v3829_v47, %v3828_v59  ;;  %v3758_v22 = vld [vmem:[#allocation2 + $0x18] sm:$0xff]  }
  0x60   : > { %v3026_v17 = vsel %vm689_vm14, %v3024_v2, %v3025_v62  ;;  %v1464_v18 = vrot.slane %v3798_v8, 1  ;;  %958 = vst.msk [vmem:[#allocation2 + $0x30] sm:$0xf] %vm5810_vm11, %v899_v61  ;;  %v1202_v24 = vrot.slane %v1200_v13, 1  ;;  %v1034_v26 = vld [vmem:[#allocation2 + $0x20] sm:$0x1]  ;;  %v611_v27 = vsel %vm4404_vm7, %v599_v10, %v360_v35 }
  0x61   : > { %3072 = vrot.lane.b32.xlu1 %v3026_v17, %s4182_s18  ;;  %v1197_v20 = vrot.slane %v1195_v4, 1  ;;  %v3847_v5 = vld [vmem:[#allocation2 + $0xa8] sm:$0xe]  ;;  %959 = vst.msk [vmem:[#allocation2 + $0x34] sm:$0xf] %vm5810_vm11, %v900_v0  ;;  %v400_v30 = vrot.slane %v4506_v7, 5  ;;  %v643_v31 = vsel %vm5812_vm9, %v611_v27, %v376_v51  ;;  %v1162_v51 = vunpack.c.l.b16 %v1034_v26 }
  0x62   : > { %v1466_v28 = vsel %vm689_vm14, %v1464_v18, %v1465_v9  ;;  %v3846_v29 = vld [vmem:[#allocation2 + $0xa8] sm:$0xf0]  ;;  %960 = vst.msk [vmem:[#allocation2 + $0x38] sm:$0x1] %vm5811_vm15, %v901_v1  ;;  %v2755_v37 = vshll.u32 %v3758_v22, 16  ;;  %v2090_v39 = vrot.slane %v3830_v21, 1  ;;  %v655_v46 = vsel %vm4421_vm0, %v643_v31, %v384_v15 }
  0x63   : > { %v3826_v14 = vld [vmem:[#allocation2 + $0xa8] sm:$0xff]   ;;  %1512 = vrot.lane.b32.xlu0 %v1466_v28, %s4182_s18  ;;  %v1198_v6 = vor.u32 %v1197_v20, %v1193_v12  ;;  %v1668_v32 = vld [vmem:[#allocation2 + $0xb0] sm:$0x1]  ;;  %v3848_v33 = vor.u32 %v3847_v5, %v3846_v29  ;;  %955 = vst.msk [vmem:[#allocation2 + $0x24] sm:$0xf] %vm5810_vm11, %v899_v61  ;;  %v2091_v40 = vrot.slane %v4568_v19, 1 }
  0x64   : > { %v1974_v36 = vshll.u32 %v3826_v14, 16  ;;  %v1796_v35 = vunpack.c.l.b16 %v1668_v32  ;;  %v1972_v42 = vshrl.u32 %v3826_v14, 16  ;;  %956 = vst.msk [vmem:[#allocation2 + $0x28] sm:$0xf] %vm5810_vm11, %v900_v0  ;;  %vm5851_vm10 = vsmask.f32 7424 }
  0x65   : > { %v1203_v7 = vsel %vm5851_vm10, %v1198_v6, %v1202_v24  ;;  %957 = vst.msk [vmem:[#allocation2 + $0x2c] sm:$0x1] %vm5811_vm15, %v901_v1  ;;  %v416_v45 = vrot.slane %v4499_v44, 4  ;;  %v2126_v50 = vrot.slane %v3848_v33, 1  ;;  %vm5852_vm1 = vcmask 1045504   ;;  %v4598_v12 = vld [vmem:[#allocation2 + $0xc] sm:$0xff]  }
  0x66   : > { %v1976_v43 = vrot.slane %v1974_v36, 1  ;;  %1384 = vrot.lane.b32.xlu2 %v1203_v7, %s4183_s23  ;;  %v1812_v48 = vpack.c.b16 %v1796_v35, %v1796_v35  ;;  %v687_v52 = vsel %vm5852_vm1, %v655_v46, %v384_v15  ;;  %v2753_v54 = vshrl.u32 %v3758_v22, 16  ;;  %v3799_v10 = vld [vmem:[#allocation2 + $0x18] sm:$0xf0]  ;;  %v4151_v4 = vld [vmem:[#allocation2 + $0xc] sm:$0xf0]  ;;  %vm5853_vm1 = vmmov %vm5851_vm10 }
  0x67   : > { %v3863_v47 = vld [vmem:[#allocation2 + $0x30] sm:$0xe]  ;;  %v2757_v55 = vrot.slane %v2755_v37, 1  ;;  %v2760_v56 = vshll.u32 %v4555_v53, 16  ;;  %v699_v57 = vsel %vm4437_vm13, %v687_v52, %v400_v30  ;;  %v2092_v59 = vsel %vm689_vm14, %v2090_v39, %v2091_v40  ;;  %v1033_v22 = vld [vmem:[#allocation2 + $0x14] sm:$0x1] }
  0x68   : > { %v2127_v44 = vrot.slane %v1812_v48, 1  ;;  %v1977_v60 = vor.u32 %v1976_v43, %v1972_v42  ;;  %v1979_v61 = vshll.u32 %v1812_v48, 16  ;;  %v3862_v62 = vld [vmem:[#allocation2 + $0x30] sm:$0xf0]  ;;  %v731_v0 = vsel %vm689_vm14, %v699_v57, %v416_v45  ;;  %v4152_v20 = vld [vmem:[#allocation2 + $0xc] sm:$0xe] }
  0x69   : > { %v2594_v38 = vld [vmem:[#allocation2 + $0x38] sm:$0x1]  ;;  %v3864_v63 = vor.u32 %v3863_v47, %v3862_v62  ;;  %v4596_v53 = vpack.c.b16 %v1162_v51, %v1162_v51  ;;  %v4602_v13 = vor.u32 %v2757_v55, %v2753_v54  ;;  %v2762_v15 = vrot.slane %v2760_v56, 1  ;;  %v3800_v28 = vld [vmem:[#allocation2 + $0x18] sm:$0xe]  ;;  %v4612_v31 = vld [vmem:[#allocation2 + $0x9c] sm:$0xff]  }
  0x6a   : > { %v2128_v1 = vsel %vm689_vm14, %v2126_v50, %v2127_v44  ;;  %v1981_v2 = vrot.slane %v1979_v61, 1  ;;  %v2722_v8 = vunpack.c.l.b16 %v2594_v38  ;;  %v4149_v9 = vld [vmem:[#allocation2 + $0x24] sm:$0xe]  ;;  %v743_v21 = vsel %vm4456_vm2, %v731_v0, %v4374_v25  ;;  %v3975_v6 = vld [vmem:[#allocation2 + $0x9c] sm:$0xf0]  ;;  %v3852_v61 = vld [vmem:[#allocation2 + $0x30] sm:$0xff]  }
  0x6b   : > { %2161 = vrot.lane.b32.xlu1 %v2128_v1, %s4182_s18  ;;  %2137 = vrot.lane.b32.xlu0 %v2092_v59, %s4182_s18  ;;  %v4604_v17 = vld [vmem:[#allocation2 + $0x24] sm:$0xff]   ;;  %v3030_v26 = vrot.slane %v3864_v63, 1  ;;  %v766_v14 = vshrl.u32 %v743_v21, 16  ;;  %v805_v30 = vshll.u32 %v743_v21, 16  ;;  %v1161_v33 = vunpack.c.l.b16 %v1033_v22  ;;  %v3976_v43 = vld [vmem:[#allocation2 + $0x9c] sm:$0xe] }
  0x6c   : > { %v4148_v18 = vld [vmem:[#allocation2 + $0x24] sm:$0xf0]  ;;  %v1982_v24 = vsel %vm5851_vm10, %v1977_v60, %v1981_v2  ;;  %v4610_v5 = vpack.c.b16 %v2722_v8, %v2722_v8  ;;  %v2593_v27 = vld [vmem:[#allocation2 + $0x2c] sm:$0x1]  ;;  %v3801_v37 = vor.u32 %v3800_v28, %v3799_v10  ;;  %v2763_v42 = vsel %vm5853_vm1, %v4602_v13, %v2762_v15  ;;  %v1667_v47 = vld [vmem:[#allocation2 + $0xa4] sm:$0x1] }
  0x6d   : > { %v2721_v29 = vunpack.c.l.b16 %v2593_v27  ;;  %v4150_v25 = vor.u32 %v4149_v9, %v4148_v18  ;;  %v804_v35 = vrot.slane %v766_v14, 7  ;;  %v831_v39 = vrot.slane %v805_v30, 7  ;;  %v1655_v10 = vld [vmem:[#allocation2 + $0x14] sm:$0x1]  ;;  %v4640_v18 = vld [vmem:[#allocation2 + $0xc] sm:$0xff]   ;;  %vm5855_vm10 = vmmov %vm5853_vm1 }
  0x6e   : > { %2033 = vrot.lane.b32.xlu2 %v1982_v24, %s4183_s23  ;;  %v3031_v32 = vrot.slane %v4610_v5, 1  ;;  %v4624_v51 = vpack.c.b16 %v1161_v33, %v1161_v33  ;;  %v4153_v52 = vor.u32 %v4152_v20, %v4151_v4  ;;  %v1471_v55 = vrot.slane %v4596_v53, 1  ;;  %v4154_v21 = vld [vmem:[#allocation2 + $0xc] sm:$0xf0]  ;;  %v4155_v22 = vld [vmem:[#allocation2 + $0xc] sm:$0xe] }
  0x6f   : > { %v4616_v36 = vpack.c.b16 %v2721_v29, %v2721_v29  ;;  %v3027_v7 = vrot.slane %v4150_v25, 1  ;;  %v807_v46 = vor.u32 %v805_v30, %v804_v35  ;;  %v855_v48 = vsel %vm4340_vm8, %v804_v35, %v831_v39 }
  0x70   : > { %v3032_v40 = vsel %vm689_vm14, %v3030_v26, %v3031_v32  ;;  %v895_v50 = vunpack.c.l.b16 %v855_v48  ;;  %v1470_v57 = vrot.slane %v3801_v37, 1  ;;  %v1795_v62 = vunpack.c.l.b16 %v1667_v47 }
  0x71   : > { %v3028_v45 = vrot.slane %v4616_v36, 1  ;;  %v847_v56 = vsel %vm4340_vm8, %v766_v14, %v807_v46  ;;  %v1467_v0 = vrot.slane %v4153_v52, 1  ;;  %v1468_v1 = vrot.slane %v4624_v51, 1 }
  0x72   : > { %v893_v44 = vunpack.c.l.b16 %v847_v56  ;;  %v894_v59 = vunpack.c.h.b16 %v847_v56  ;;  %v919_v60 = vpack.c.b16 %v895_v50, %v895_v50  ;;  %v3977_v2 = vor.u32 %v3976_v43, %v3975_v6 }
  0x73   : > { %3076 = vrot.lane.b32.xlu1 %v3032_v40, %s4182_s18  ;;  %2944 = vrot.lane.b32.xlu0 %v2763_v42, %s4183_s23  ;;  %v3029_v54 = vsel %vm689_vm14, %v3027_v7, %v3028_v45  ;;  %v2779_v8 = vshll.u32 %v3852_v61, 16  ;;  %v1472_v9 = vsel %vm689_vm14, %v1470_v57, %v1471_v55  ;;  %v1811_v4 = vpack.c.b16 %v1795_v62, %v1795_v62 }
  0x74   : > { %v917_v38 = vpack.c.b16 %v893_v44, %v893_v44  ;;  %v918_v63 = vpack.c.b16 %v894_v59, %v894_v59  ;;  %993 = vst.msk [vmem:[#allocation2 + $0xbc] sm:$0x1] %vm5811_vm15, %v919_v60  ;;  %v1962_v15 = vshll.u32 %v4612_v31, 16  ;;  %v1469_v20 = vsel %vm689_vm14, %v1467_v0, %v1468_v1  ;;  %v1657_v44 = vld [vmem:[#allocation2 + $0x2c] sm:$0x1] }
  0x75   : > { %996 = vst.msk [vmem:[#allocation2 + $0xc8] sm:$0x1] %vm5811_vm15, %v919_v60  ;;  %v2777_v24 = vshrl.u32 %v3852_v61, 16  ;;  %v2784_v26 = vshll.u32 %v4610_v5, 16  ;;  %v2123_v27 = vrot.slane %v3977_v2, 1  ;;  %v2124_v28 = vrot.slane %v1811_v4, 1 }
  0x76   : > { %3074 = vrot.lane.b32.xlu2 %v3029_v54, %s4182_s18  ;;  %991 = vst.msk [vmem:[#allocation2 + $0xb4] sm:$0xf] %vm5810_vm11, %v917_v38  ;;  %v2781_v29 = vrot.slane %v2779_v8, 1  ;;  %v1783_v14 = vunpack.c.l.b16 %v1655_v10  ;;  %v1960_v30 = vshrl.u32 %v4612_v31, 16  ;;  %v1964_v32 = vrot.slane %v1962_v15, 1 }
  0x77   : > { %992 = vst.msk [vmem:[#allocation2 + $0xb8] sm:$0xf] %vm5810_vm11, %v918_v63  ;;  %v1967_v25 = vshll.u32 %v1811_v4, 16  ;;  %v2125_v37 = vsel %vm689_vm14, %v2123_v27, %v2124_v28  ;;  %v2786_v39 = vrot.slane %v2784_v26, 1  ;;  %v4156_v45 = vor.u32 %v4155_v22, %v4154_v21  ;;  %v4161_v59 = vld [vmem:[#allocation2 + $0x24] sm:$0xe] }
  0x78   : > { %994 = vst.msk [vmem:[#allocation2 + $0xc0] sm:$0xf] %vm5810_vm11, %v917_v38  ;;  %v4653_v35 = vor.u32 %v2781_v29, %v2777_v24  ;;  %v4655_v40 = vpack.c.b16 %v1783_v14, %v1783_v14  ;;  %v2767_v46 = vshll.u32 %v4604_v17, 16  ;;  %v1965_v48 = vor.u32 %v1964_v32, %v1960_v30  ;;  %v214_v24 = vld [vmem:[%s4309_s25 + $0x14] sm:$0xf] }
  0x79   : > { %995 = vst.msk [vmem:[#allocation2 + $0xc4] sm:$0xf] %vm5810_vm11, %v918_v63  ;;  %v1969_v50 = vrot.slane %v1967_v25, 1  ;;  %v2772_v52 = vshll.u32 %v4616_v36, 16  ;;  %v1224_v47 = vshll.u32 %v4596_v53, 16  ;;  %v2765_v57 = vshrl.u32 %v4604_v17, 16 }
  0x7a   : > { %997 = vst.msk [vmem:[#allocation2 + $0xcc] sm:$0xf] %vm5810_vm11, %v917_v38  ;;  %v2787_v56 = vsel %vm5855_vm10, %v4653_v35, %v2786_v39  ;;  %v2088_v61 = vrot.slane %v4655_v40, 1  ;;  %v2769_v62 = vrot.slane %v2767_v46, 1  ;;  %v4667_v38 = vld [vmem:[#allocation2 + $0x24] sm:$0xff]   ;;  %v1835_v1 = vshll.u32 %v4568_v19, 16  ;;  %vm5857_vm10 = vmmov %vm5853_vm1 }
  0x7b   : > { %1516 = vrot.lane.b32.xlu1 %v1472_v9, %s4182_s18  ;;  %v1669_v6 = vld [vmem:[#allocation2 + $0xbc] sm:$0x1]  ;;  %998 = vst.msk [vmem:[#allocation2 + $0xd0] sm:$0xf] %vm5810_vm11, %v918_v63  ;;  %v4160_v36 = vld [vmem:[#allocation2 + $0x24] sm:$0xf0]  ;;  %v1970_v0 = vsel %vm5853_vm1, %v1965_v48, %v1969_v50  ;;  %v1785_v10 = vunpack.c.l.b16 %v1657_v44  ;;  %v230_v25 = vunpack.c.l.b16 %v214_v24 }
  0x7c   : > { %v1797_v33 = vunpack.c.l.b16 %v1669_v6  ;;  %999 = vst.msk [vmem:[#allocation2 + $0xd4] sm:$0x1] %vm5811_vm15, %v919_v60  ;;  %v2087_v60 = vrot.slane %v4156_v45, 1  ;;  %v211_v53 = vld [vmem:[%s4309_s25 + $0x8] sm:$0xf]  ;;  %v1207_v2 = vshll.u32 %v4598_v12, 16  ;;  %v2770_v22 = vor.u32 %v2769_v62, %v2765_v57 }
  0x7d   : > { %v4158_v5 = vld [vmem:[#allocation2 + $0xb4] sm:$0xe]  ;;  %5856 = vst [vmem:[#allocation13_spill] sm:$0xff] %v4667_v38  ;;  %v2774_v8 = vrot.slane %v2772_v52, 1  ;;  %v1226_v9 = vrot.slane %v1224_v47, 1  ;;  %v227_v15 = vunpack.c.l.b16 %v211_v53  ;;  %v1837_v26 = vrot.slane %v1835_v1, 1 }
  0x7e   : > { %1514 = vrot.lane.b32.xlu2 %v1469_v20, %s4182_s18  ;;  %v4657_v42 = vld [vmem:[#allocation2 + $0xb4] sm:$0xff]   ;;  %v1813_v43 = vpack.c.b16 %v1797_v33, %v1797_v33  ;;  %v2089_v21 = vsel %vm689_vm14, %v2087_v60, %v2088_v61  ;;  %v1212_v20 = vshll.u32 %v4624_v51, 16  ;;  %v1205_v19 = vshrl.u32 %v4598_v12, 16 }
  0x7f   : > { %5854 = vst [vmem:[#allocation12_spill] sm:$0xff] %v4657_v42  ;;  %v4157_v7 = vld [vmem:[#allocation2 + $0xb4] sm:$0xf0]  ;;  %v1209_v27 = vrot.slane %v1207_v2, 1  ;;  %v4680_v28 = vpack.c.b16 %v227_v15, %v227_v15  ;;  %v1227_v29 = vsel %vm5857_vm10, %v4602_v13, %v1226_v9  ;;  %v4684_v14 = vpack.c.b16 %v1785_v10, %v1785_v10  ;;  %vm5858_vm10 = vmmov %vm5853_vm1 }
  0x80   : > { %v4159_v54 = vor.u32 %v4158_v5, %v4157_v7  ;;  %v2130_v55 = vrot.slane %v1813_v43, 1  ;;  %v4162_v30 = vor.u32 %v4161_v59, %v4160_v36  ;;  %v1991_v6 = vshll.u32 %v1813_v43, 16 }
  0x81   : > { %v4688_v32 = vshll.u32 %v4680_v28, 16  ;;  %v4691_v51 = vshrl.u32 %v4680_v28, 16  ;;  %v2775_v33 = vsel %vm5853_vm1, %v2770_v22, %v2774_v8  ;;  %v1214_v5 = vrot.slane %v1212_v20, 1 }
  0x82   : > { %v2129_v63 = vrot.slane %v4159_v54, 1  ;;  %v1838_v39 = vsel %vm5858_vm10, %v4602_v13, %v1837_v26  ;;  %v1210_v7 = vor.u32 %v1209_v27, %v1205_v19  ;;  %v299_v43 = vrot.slane %v4680_v28, 7 }
  0x83   : > { %2159 = vrot.lane.b32.xlu1 %v2125_v37, %s4182_s18  ;;  %v1986_v37 = vshll.u32 %v4657_v42, 16  ;;  %v281_v45 = vrot.slane %v4691_v51, 7  ;;  %v2093_v46 = vrot.slane %v4162_v30, 1  ;;  %v2094_v48 = vrot.slane %v4684_v14, 1 }
  0x84   : > { %v2131_v4 = vsel %vm689_vm14, %v2129_v63, %v2130_v55  ;;  %v1984_v50 = vshrl.u32 %v4657_v42, 16  ;;  %v1818_v52 = vshll.u32 %v4640_v18, 16  ;;  %v1993_v47 = vrot.slane %v1991_v6, 1  ;;  %v3682_v42 = vld [vmem:[#allocation6 + $0x40] sm:$0xff] }
  0x85   : > { %2163 = vrot.lane.b32.xlu0 %v2131_v4, %s4182_s18  ;;  %v315_v54 = vrot.slane %v4688_v32, 7  ;;  %v430_v13 = vsel %vm4340_vm8, %v211_v53, %v4688_v32  ;;  %v4707_v55 = vpack.c.b16 %v230_v25, %v230_v25  ;;  %v1816_v57 = vshrl.u32 %v4640_v18, 16 }
  0x86   : > { %2948 = vrot.lane.b32.xlu2 %v2787_v56, %s4183_s23  ;;  %v1988_v56 = vrot.slane %v1986_v37, 1  ;;  %v331_v44 = vrot.slane %v4691_v51, 6  ;;  %vm5859_vm1 = vcmask 1040384   ;;  %v339_v60 = vrot.slane %v4680_v28, 6 }
  0x87   : > { %v447_v59 = vsel %vm5859_vm1, %v430_v13, %v281_v45  ;;  %v4717_v62 = vshll.u32 %v4707_v55, 16  ;;  %v4720_v36 = vshrl.u32 %v4707_v55, 16  ;;  %v2095_v53 = vsel %vm689_vm14, %v2093_v46, %v2094_v48  ;;  %v1670_v46 = vld [vmem:[#allocation2 + $0xc8] sm:$0x1] }
  0x88   : > { %v474_v61 = vsel %vm4352_vm12, %v447_v59, %v299_v43  ;;  %v1820_v63 = vrot.slane %v1818_v52, 1  ;;  %vm5860_vm10 = vcmask 1041408   ;;  %v355_v2 = vrot.slane %v4688_v32, 6 }
  0x89   : > { %v491_v1 = vsel %vm5860_vm10, %v474_v61, %v299_v43  ;;  %v290_v9 = vrot.slane %v4720_v36, 7  ;;  %v302_v10 = vrot.slane %v4707_v55, 7  ;;  %v1989_v4 = vor.u32 %v1988_v56, %v1984_v50 }
  0x8a   : > { %v518_v8 = vsel %vm4369_vm3, %v491_v1, %v315_v54  ;;  %v371_v15 = vrot.slane %v4691_v51, 5  ;;  %v1842_v22 = vshll.u32 %v4667_v38, 16  ;;  %v379_v20 = vrot.slane %v4680_v28, 5 }
  0x8b   : > { %2135 = vrot.lane.b32.xlu1 %v2089_v21, %s4182_s18  ;;  %v535_v21 = vsel %vm513_vm4, %v518_v8, %v331_v44  ;;  %v1847_v27 = vshll.u32 %v4684_v14, 16  ;;  %v395_v25 = vrot.slane %v4688_v32, 5  ;;  %v318_v37 = vrot.slane %v4717_v62, 7 }
  0x8c   : > { %v562_v26 = vsel %vm4387_vm5, %v535_v21, %v339_v60  ;;  %vm5861_vm10 = vsmask.f32 7424  ;;  %v411_v14 = vrot.slane %v4691_v51, 4  ;;  %v334_v48 = vrot.slane %v4720_v36, 6 }
  0x8d   : > { %2031 = vrot.lane.b32.xlu0 %v1970_v0, %s4183_s23  ;;  %v1823_v0 = vshll.u32 %v4655_v40, 16  ;;  %v433_v40 = vsel %vm4340_vm8, %v214_v24, %v4717_v62  ;;  %v579_v6 = vsel %vm557_vm6, %v562_v26, %v339_v60  ;;  %v1994_v45 = vsel %vm5861_vm10, %v1989_v4, %v1993_v47  ;;  %vm5863_vm11 = vmmov %vm5861_vm10 }
  0x8e   : > { %1388 = vrot.lane.b32.xlu2 %v1227_v29, %s4183_s23  ;;  %v459_v19 = vsel %vm5859_vm1, %v433_v40, %v290_v9  ;;  %v1821_v29 = vor.u32 %v1820_v63, %v1816_v57  ;;  %v606_v24 = vsel %vm4404_vm7, %v579_v6, %v355_v2  ;;  %v1840_v32 = vshrl.u32 %v4667_v38, 16  ;;  %v4773_v63 = vld [vmem:[%s4309_s25 + $0xc] sm:$0xf] }
  0x8f   : > { %v1825_v30 = vrot.slane %v1823_v0, 1  ;;  %v623_v43 = vsel %vm5812_vm9, %v606_v24, %v371_v15  ;;  %v342_v52 = vrot.slane %v4707_v55, 6  ;;  %vm5862_vm1 = vcmask 1041408  }
  0x90   : > { %v650_v50 = vsel %vm4421_vm0, %v623_v43, %v379_v20  ;;  %v1844_v47 = vrot.slane %v1842_v22, 1  ;;  %vm5864_vm15 = vcmask 1045504   ;;  %v1798_v57 = vunpack.c.l.b16 %v1670_v46 }
  0x91   : > { %v1826_v51 = vsel %vm5861_vm10, %v1821_v29, %v1825_v30  ;;  %v667_v13 = vsel %vm5864_vm15, %v650_v50, %v379_v20  ;;  %v358_v44 = vrot.slane %v4717_v62, 6  ;;  %v1849_v60 = vrot.slane %v1847_v27, 1 }
  0x92   : > { %v694_v56 = vsel %vm4437_vm13, %v667_v13, %v395_v25  ;;  %v382_v1 = vrot.slane %v4707_v55, 5  ;;  %v228_v8 = vunpack.c.l.b16 %v4773_v63  ;;  %v1845_v9 = vor.u32 %v1844_v47, %v1840_v32  ;;  %v4816_v13 = vld [vmem:[#allocation2 + $0x24] sm:$0xff]  }
  0x93   : > { %2009 = vrot.lane.b32.xlu1 %v1838_v39, %s4183_s23  ;;  %v477_v39 = vsel %vm4352_vm12, %v459_v19, %v302_v10  ;;  %v711_v61 = vsel %vm689_vm14, %v694_v56, %v411_v14  ;;  %v4784_v21 = vpack.c.b16 %v1798_v57, %v1798_v57  ;;  %v398_v22 = vrot.slane %v4717_v62, 5  ;;  %5868 = vst [vmem:[#allocation14_spill] sm:$0xff] %v4816_v13  ;;  %v4818_v56 = vld [vmem:[#allocation2 + $0x24] sm:$0xf0] }
  0x94   : > { %v503_v54 = vsel %vm5862_vm1, %v477_v39, %v302_v10  ;;  %v738_v0 = vsel %vm4456_vm2, %v711_v61, %v4680_v28  ;;  %v414_v19 = vrot.slane %v4720_v36, 4  ;;  %v4794_v30 = vpack.c.b16 %v228_v8, %v228_v8 }
  0x95   : > { %2946 = vrot.lane.b32.xlu0 %v2775_v33, %s4183_s23  ;;  %v1215_v33 = vsel %vm5863_vm11, %v1210_v7, %v1214_v5  ;;  %v521_v59 = vsel %vm4369_vm3, %v503_v54, %v318_v37  ;;  %v3827_v5 = vld [vmem:[#allocation2 + $0xc0] sm:$0xff]   ;;  %v374_v7 = vrot.slane %v4720_v36, 5  ;;  %v751_v10 = vshrl.u32 %v738_v0, 16  ;;  %vm5865_vm11 = vmmov %vm5864_vm15 }
  0x96   : > { %2139 = vrot.lane.b32.xlu2 %v2095_v53, %s4182_s18  ;;  %v547_v53 = vsel %vm513_vm4, %v521_v59, %v334_v48  ;;  %v785_v4 = vshll.u32 %v738_v0, 16  ;;  %v1998_v40 = vshll.u32 %v3827_v5, 16  ;;  %vm5866_vm15 = vmmov %vm5861_vm10  ;;  %v1996_v39 = vshrl.u32 %v3827_v5, 16 }
  0x97   : > { %v565_v2 = vsel %vm4387_vm5, %v547_v53, %v342_v52  ;;  %v784_v20 = vrot.slane %v751_v10, 7  ;;  %v1850_v24 = vsel %vm5866_vm15, %v1845_v9, %v1849_v60  ;;  %v2003_v43 = vshll.u32 %v4784_v21, 16  ;;  %v1035_v60 = vld [vmem:[#allocation2 + $0x2c] sm:$0x1] }
  0x98   : > { %v591_v15 = vsel %vm557_vm6, %v565_v2, %v342_v52  ;;  %v826_v26 = vrot.slane %v785_v4, 7  ;;  %v2000_v14 = vrot.slane %v1998_v40, 1  ;;  %v4807_v52 = vshrl.u32 %v4794_v30, 16  ;;  %v3982_v40 = vld [vmem:[#allocation2 + $0x24] sm:$0xe] }
  0x99   : > { %v609_v28 = vsel %vm4404_vm7, %v591_v15, %v358_v44  ;;  %v787_v6 = vor.u32 %v785_v4, %v784_v20  ;;  %vm5867_vm1 = vcmask 253952   ;;  %v2005_v44 = vrot.slane %v2003_v43, 1 }
  0x9a   : > { %v635_v27 = vsel %vm5812_vm9, %v609_v28, %v374_v7  ;;  %v850_v62 = vsel %vm4340_vm8, %v784_v20, %v826_v26  ;;  %vm5869_vm10 = vmmov %vm5867_vm1  ;;  %v284_v5 = vrot.slane %v4807_v52, 7  ;;  %v300_v8 = vrot.slane %v4794_v30, 7  ;;  %v1658_v26 = vld [vmem:[#allocation2 + $0x38] sm:$0x1] }
  0x9b   : > { %2035 = vrot.lane.b32.xlu1 %v1994_v45, %s4183_s23  ;;  %v653_v29 = vsel %vm4421_vm0, %v635_v27, %v382_v1  ;;  %v880_v37 = vunpack.c.l.b16 %v850_v62  ;;  %v842_v45 = vsel %vm4340_vm8, %v751_v10, %v787_v6  ;;  %v1229_v43 = vshrl.u32 %v4816_v13, 16 }
  0x9c   : > { %v679_v25 = vsel %vm5865_vm11, %v653_v29, %v382_v1  ;;  %v878_v48 = vunpack.c.l.b16 %v842_v45  ;;  %v879_v32 = vunpack.c.h.b16 %v842_v45  ;;  %vm5870_vm11 = vcmask 257024  }
  0x9d   : > { %1386 = vrot.lane.b32.xlu0 %v1215_v33, %s4183_s23  ;;  %v697_v36 = vsel %vm4437_vm13, %v679_v25, %v398_v22  ;;  %v904_v50 = vpack.c.b16 %v880_v37, %v880_v37  ;;  %v4813_v33 = vshll.u32 %v4794_v30, 16  ;;  %vm5871_vm15 = vmmov %vm5870_vm11  ;;  %v1163_v1 = vunpack.c.l.b16 %v1035_v60  ;;  %v3849_v25 = vld [vmem:[#allocation2 + $0xc0] sm:$0xf0] }
  0x9e   : > { %2007 = vrot.lane.b32.xlu2 %v1826_v51, %s4183_s23  ;;  %v723_v46 = vsel %vm689_vm14, %v697_v36, %v414_v19  ;;  %v902_v47 = vpack.c.b16 %v878_v48, %v878_v48  ;;  %v903_v51 = vpack.c.b16 %v879_v32, %v879_v32  ;;  %v1786_v48 = vunpack.c.l.b16 %v1658_v26 }
  0x9f   : > { %v741_v54 = vsel %vm4456_vm2, %v723_v46, %v4707_v55  ;;  %963 = vst.msk [vmem:[#allocation2 + $0x44] sm:$0x1] %vm5867_vm1, %v904_v50  ;;  %v2001_v55 = vor.u32 %v2000_v14, %v1996_v39  ;;  %v431_v53 = vsel %vm4340_vm8, %v4773_v63, %v4813_v33  ;;  %vm5872_vm1 = vmmov %vm5870_vm11  ;;  %v4839_v27 = vpack.c.b16 %v1163_v1, %v1163_v1 }
  0xa0   : > { %v760_v57 = vshrl.u32 %v741_v54, 16  ;;  %966 = vst.msk [vmem:[#allocation2 + $0x50] sm:$0x1] %vm5869_vm10, %v904_v50  ;;  %v797_v59 = vshll.u32 %v741_v54, 16  ;;  %vm5873_vm10 = vmmov %vm5872_vm1  ;;  %v1231_v46 = vshll.u32 %v4816_v13, 16  ;;  %v316_v54 = vrot.slane %v4813_v33, 7 }
  0xa1   : > { %961 = vst.msk [vmem:[#allocation2 + $0x3c] sm:$0xf] %vm5870_vm11, %v902_v47  ;;  %vm5874_vm11 = vsmask.f32 7424  ;;  %v2133_v60 = vrot.slane %v4784_v21, 1 }
  0xa2   : > { %v796_v61 = vrot.slane %v760_v57, 7  ;;  %962 = vst.msk [vmem:[#allocation2 + $0x40] sm:$0xf] %vm5871_vm15, %v903_v51  ;;  %v829_v7 = vrot.slane %v797_v59, 7  ;;  %v2006_v9 = vsel %vm5874_vm11, %v2001_v55, %v2005_v44  ;;  %vm5875_vm15 = vcmask 1040384   ;;  %vm5878_vm11 = vmmov %vm5873_vm10 }
  0xa3   : > { %964 = vst.msk [vmem:[#allocation2 + $0x48] sm:$0xf] %vm5872_vm1, %v902_v47  ;;  %v451_v15 = vsel %vm5875_vm15, %v431_v53, %v284_v5  ;;  %vm5877_vm1 = vcmask 253952   ;;  %vm5879_vm15 = vcmask 1041408   ;;  %v3983_v55 = vor.u32 %v3982_v40, %v4818_v56  ;;  %v3832_v40 = vld [vmem:[#allocation2 + $0x30] sm:$0xe] }
  0xa4   : > { %v799_v0 = vor.u32 %v797_v59, %v796_v61  ;;  %965 = vst.msk [vmem:[#allocation2 + $0x4c] sm:$0xf] %vm5873_vm10, %v903_v51  ;;  %v853_v2 = vsel %vm4340_vm8, %v796_v61, %v829_v7  ;;  %v475_v37 = vsel %vm4352_vm12, %v451_v15, %v300_v8  ;;  %v1236_v59 = vshll.u32 %v4839_v27, 16  ;;  %v4857_v61 = vld [vmem:[#allocation6 + $0x28] sm:$0xff] }
  0xa5   : > { %2011 = vrot.lane.b32.xlu0 %v1850_v24, %s4183_s23  ;;  %v889_v4 = vunpack.c.l.b16 %v853_v2  ;;  %v3850_v24 = vld [vmem:[#allocation2 + $0xc0] sm:$0xe]  ;;  %v495_v47 = vsel %vm5879_vm15, %v475_v37, %v300_v8  ;;  %v332_v5 = vrot.slane %v4807_v52, 6  ;;  %v1233_v2 = vrot.slane %v1231_v46, 1  ;;  %2472 = vmatpush.bf16.msra.mxu1 %v4857_v61  ;;  %v1036_v37 = vld [vmem:[#allocation2 + $0x38] sm:$0x1] }
  0xa6   : > { %v845_v10 = vsel %vm4340_vm8, %v760_v57, %v799_v0  ;;  %v2595_v63 = vld [vmem:[#allocation2 + $0x44] sm:$0x1]  ;;  %v3851_v14 = vor.u32 %v3850_v24, %v3849_v25  ;;  %v4863_v8 = vpack.c.b16 %v1786_v48, %v1786_v48  ;;  %v519_v21 = vsel %vm4369_vm3, %v495_v47, %v316_v54  ;;  %v4883_v48 = vld [vmem:[#allocation6 + $0x20] sm:$0xff] }
  0xa7   : > { %v887_v22 = vunpack.c.l.b16 %v845_v10  ;;  %v888_v28 = vunpack.c.h.b16 %v845_v10  ;;  %v2723_v20 = vunpack.c.l.b16 %v2595_v63  ;;  %v913_v19 = vpack.c.b16 %v889_v4, %v889_v4  ;;  %v2596_v32 = vld [vmem:[#allocation2 + $0x50] sm:$0x1]  ;;  %v3831_v63 = vld [vmem:[#allocation2 + $0x30] sm:$0xf0] }
  0xa8   : > { %v3979_v29 = vld [vmem:[#allocation2 + $0x3c] sm:$0xe]  ;;  %v2132_v50 = vrot.slane %v3851_v14, 1  ;;  %v2724_v1 = vunpack.c.l.b16 %v2596_v32  ;;  %v1238_v14 = vrot.slane %v1236_v59, 1  ;;  %v3833_v46 = vor.u32 %v3832_v40, %v3831_v63 }
  0xa9   : > { %v911_v6 = vpack.c.b16 %v887_v22, %v887_v22  ;;  %v912_v62 = vpack.c.b16 %v888_v28, %v888_v28  ;;  %v4843_v39 = vld [vmem:[#allocation2 + $0x3c] sm:$0xff]   ;;  %v2739_v45 = vpack.c.b16 %v2723_v20, %v2723_v20  ;;  %984 = vst.msk [vmem:[#allocation2 + $0x98] sm:$0x1] %vm5877_vm1, %v913_v19  ;;  %vm5880_vm1 = vmmov %vm5873_vm10  ;;  %v1473_v22 = vrot.slane %v3983_v55, 1  ;;  %2473 = vmatpush.bf16.msra.mxu1 %v4883_v48  ;;  %v4893_v55 = vld [vmem:[#allocation6 + $0x18] sm:$0xff] }
  0xaa   : > { %5876 = vst [vmem:[#allocation15_spill] sm:$0xff] %v4843_v39  ;;  %v3978_v36 = vld [vmem:[#allocation2 + $0x3c] sm:$0xf0]  ;;  %vm5881_vm9 = vmmov %vm5880_vm1  ;;  %v2789_v7 = vshrl.u32 %v4843_v39, 16  ;;  %v2791_v53 = vshll.u32 %v4843_v39, 16  ;;  %v1474_v28 = vrot.slane %v4839_v27, 1  ;;  %v4879_v25 = vpack.c.b16 %v2724_v1, %v2724_v1 }
  0xab   : > { %982 = vst.msk [vmem:[#allocation2 + $0x90] sm:$0xf] %vm5873_vm10, %v911_v6  ;;  %v2796_v51 = vshll.u32 %v2739_v45, 16  ;;  %v3980_v57 = vor.u32 %v3979_v29, %v3978_v36  ;;  %v3034_v44 = vrot.slane %v2739_v45, 1  ;;  %vm5882_vm10 = vcmask 253952   ;;  %v3853_v56 = vld [vmem:[#allocation2 + $0x48] sm:$0xff]  }
  0xac   : > { %983 = vst.msk [vmem:[#allocation2 + $0x94] sm:$0xf] %vm5878_vm11, %v912_v62  ;;  %v2793_v10 = vrot.slane %v2791_v53, 1  ;;  %v4873_v20 = vld [vmem:[#allocation2 + $0x3c] sm:$0xff]   ;;  %v340_v29 = vrot.slane %v4794_v30, 6  ;;  %v2803_v24 = vshll.u32 %v3853_v56, 16  ;;  %v539_v36 = vsel %vm513_vm4, %v519_v21, %v332_v5 }
  0xad   : > { %2037 = vrot.lane.b32.xlu0 %v2006_v9, %s4183_s23  ;;  %979 = vst.msk [vmem:[#allocation2 + $0x84] sm:$0xf] %vm5880_vm1, %v911_v6  ;;  %v3033_v0 = vrot.slane %v3980_v57, 1  ;;  %v2134_v9 = vsel %vm689_vm14, %v2132_v50, %v2133_v60  ;;  %v2798_v4 = vrot.slane %v2796_v51, 1  ;;  %v4875_v26 = vld [vmem:[#allocation2 + $0x3c] sm:$0xf0]  ;;  %v1234_v45 = vor.u32 %v1233_v2, %v1229_v43  ;;  %2474 = vmatpush.bf16.msra.mxu1 %v4893_v55 }
  0xae   : > { %980 = vst.msk [vmem:[#allocation2 + $0x88] sm:$0xf] %vm5881_vm9, %v912_v62  ;;  %2165 = vrot.lane.b32.xlu2 %v2134_v9, %s4182_s18  ;;  %v2794_v6 = vor.u32 %v2793_v10, %v2789_v7  ;;  %vm5884_vm9 = vsmask.f32 7424  ;;  %v1475_v50 = vsel %vm689_vm14, %v1473_v22, %v1474_v28  ;;  %v1164_v47 = vunpack.c.l.b16 %v1036_v37  ;;  %v1659_v21 = vld [vmem:[#allocation2 + $0x44] sm:$0x1] }
  0xaf   : > { %981 = vst.msk [vmem:[#allocation2 + $0x8c] sm:$0x1] %vm5882_vm10, %v913_v19  ;;  %v3035_v15 = vsel %vm689_vm14, %v3033_v0, %v3034_v44  ;;  %v1859_v19 = vshll.u32 %v4863_v8, 16  ;;  %v563_v51 = vsel %vm4387_vm5, %v539_v36, %v340_v29  ;;  %v2801_v57 = vshrl.u32 %v3853_v56, 16  ;;  %vm5885_vm11 = vmmov %vm5884_vm9  ;;  %v5065_v23 = vld [vmem:[#allocation2 + $0x3c] sm:$0xe] }
  0xb0   : > { %5883 = vst [vmem:[#allocation16_spill] sm:$0xff] %v4873_v20  ;;  %v1044_v62 = vld [vmem:[#allocation2 + $0x98] sm:$0x1]  ;;  %v2799_v27 = vsel %vm5884_vm9, %v2794_v6, %v2798_v4  ;;  %v2805_v44 = vrot.slane %v2803_v24, 1  ;;  %v2808_v43 = vshll.u32 %v4879_v25, 16  ;;  %vm5886_vm15 = vmmov %vm5884_vm9  ;;  %v2096_v7 = vrot.slane %v3833_v46, 1 }
  0xb1   : > { %v1861_v32 = vrot.slane %v1859_v19, 1  ;;  %2950 = vrot.lane.b32.xlu1 %v2799_v27, %s4183_s23  ;;  %v1172_v54 = vunpack.c.l.b16 %v1044_v62  ;;  %v1239_v5 = vsel %vm5886_vm15, %v1234_v45, %v1238_v14  ;;  %v356_v53 = vrot.slane %v4813_v33, 6  ;;  %v4918_v24 = vld [vmem:[%s4309_s25 + $0x10] sm:$0xf]  ;;  %vm5889_vm10 = vmmov %vm5884_vm9  ;;  %v3834_v41 = vld [vmem:[#allocation2 + $0x48] sm:$0xf0] }
  0xb2   : > { %v372_v2 = vrot.slane %v4807_v52, 5  ;;  %v583_v56 = vsel %vm557_vm6, %v563_v51, %v340_v29  ;;  %v4905_v10 = vpack.c.b16 %v1164_v47, %v1164_v47  ;;  %v2097_v63 = vrot.slane %v4863_v8, 1  ;;  %v3815_v36 = vld [vmem:[#allocation2 + $0x90] sm:$0xe]  ;;  %v4921_v14 = vld [vmem:[#allocation6 + $0x10] sm:$0xff]  ;;  %vm5892_vm15 = vmmov %vm5889_vm10  ;;  %s4112_s25 = scalar_lea.hbm %s5806_s3, 512 }
  0xb3   : > { %v1862_v59 = vsel %vm5885_vm11, %v4653_v35, %v1861_v32  ;;  %v3794_v60 = vld [vmem:[#allocation2 + $0x90] sm:$0xff]   ;;  %v4903_v9 = vpack.c.b16 %v1172_v54, %v1172_v54  ;;  %v4909_v40 = vor.u32 %v2805_v44, %v2801_v57  ;;  %v2810_v22 = vrot.slane %v2808_v43, 1  ;;  %v4928_v32 = vld [vmem:[#allocation2 + $0x9c] sm:$0xf0]  ;;  %2475 = vmatpush.bf16.msra.mxu1 %v4921_v14  ;;  %vm5891_vm11 = vmmov %vm5889_vm10  ;;  %p4114_p9 = scmp.lt.s32.totalorder %s4112_s25, %s4108_s10 }
  0xb4   : > { %v1339_v1 = vshll.u32 %v3794_v60, 16  ;;  %v1337_v4 = vshrl.u32 %v3794_v60, 16  ;;  %v396_v29 = vrot.slane %v4813_v33, 5  ;;  %v412_v6 = vrot.slane %v4807_v52, 4  ;;  %v3814_v37 = vld [vmem:[#allocation2 + $0x90] sm:$0xf0] }
  0xb5   : > { %3078 = vrot.lane.b32.xlu0 %v3035_v15, %s4182_s18  ;;  %v380_v15 = vrot.slane %v4794_v30, 5  ;;  %v1344_v19 = vshll.u32 %v4903_v9, 16  ;;  %v607_v62 = vsel %vm4404_vm7, %v583_v56, %v356_v53  ;;  %v1787_v8 = vunpack.c.l.b16 %v1659_v21  ;;  %v4926_v52 = vld [vmem:[#allocation2 + $0x9c] sm:$0xff]   ;;  %v3805_v58 = vld [vmem:[#allocation2 + $0x48] sm:$0xf0]  ;;  %p4115_p2 = por %p4114_p9, %p4113_p11 }
  0xb6   : > { %2013 = vrot.lane.b32.xlu2 %v1862_v59, %s4183_s23  ;;  %v1341_v28 = vrot.slane %v1339_v1, 1  ;;  %v1866_v45 = vshll.u32 %v4873_v20, 16  ;;  %vm5887_vm1 = vcmask 1044480   ;;  %v1248_v33 = vshll.u32 %v4905_v10, 16  ;;  %5888 = vst [vmem:[#allocation17_spill] sm:$0xff] %v4926_v52  ;;  %v4930_v54 = vld [vmem:[#allocation6 + $0x88] sm:$0xff] }
  0xb7   : > { %v627_v27 = vsel %vm5887_vm1, %v607_v62, %v372_v2  ;;  %v2098_v51 = vsel %vm689_vm14, %v2096_v7, %v2097_v63  ;;  %v2811_v57 = vsel %vm5889_vm10, %v4909_v40, %v2810_v22  ;;  %v4938_v44 = vld [vmem:[#allocation6 + $0x8] sm:$0xff]  ;;  %vm5890_vm9 = vcmask 1045504   ;;  %v3985_v53 = vld [vmem:[#allocation2 + $0x3c] sm:$0xe]  ;;  %3251 = vmatpush.bf16.msra.mxu2 %v4930_v54  ;;  %v3866_v63 = vld [vmem:[#allocation2 + $0x48] sm:$0xe]  ;;  %p4116_p10 = pnand %p4115_p2, %p4111_p8 }
  0xb8   : > { %v1342_v46 = vor.u32 %v1341_v28, %v1337_v4  ;;  %v651_v47 = vsel %vm4421_vm0, %v627_v27, %v380_v15  ;;  %v229_v59 = vunpack.c.l.b16 %v4918_v24  ;;  %v3816_v60 = vor.u32 %v3815_v36, %v3814_v37  ;;  %2476 = vmatpush.bf16.msra.mxu1 %v4938_v44  ;;  %v1045_v27 = vld [vmem:[#allocation2 + $0xa4] sm:$0x1] }
  0xb9   : > { %1390 = vrot.lane.b32.xlu1 %v1239_v5, %s4183_s23  ;;  %v671_v43 = vsel %vm5890_vm9, %v651_v47, %v380_v15  ;;  %v1864_v5 = vshrl.u32 %v4873_v20, 16  ;;  %v4947_v2 = vpack.c.b16 %v1787_v8, %v1787_v8  ;;  %v1868_v56 = vrot.slane %v1866_v45, 1  ;;  %v3865_v15 = vld [vmem:[#allocation2 + $0x48] sm:$0xf0]  ;;  %v4963_v47 = vld [vmem:[#allocation6] sm:$0xff] }
  0xba   : > { %v695_v7 = vsel %vm4437_vm13, %v671_v43, %v396_v29  ;;  %v1250_v22 = vrot.slane %v1248_v33, 1  ;;  %v4958_v37 = vpack.c.b16 %v229_v59, %v229_v59  ;;  %v1500_v36 = vrot.slane %v3816_v60, 1  ;;  %v4970_v43 = vld [vmem:[#allocation2 + $0x9c] sm:$0xe] }
  0xbb   : > { %v715_v4 = vsel %vm689_vm14, %v695_v7, %v412_v6  ;;  %v1501_v8 = vrot.slane %v4903_v9, 1  ;;  %v3037_v45 = vrot.slane %v4879_v25, 1  ;;  %vm5813_vm1 = vcmask 261120   ;;  %v4973_v25 = vld [vmem:[#allocation6 + $0x80] sm:$0xff] }
  0xbc   : > { %v739_v28 = vsel %vm4456_vm2, %v715_v4, %v4794_v30  ;;  %v4966_v30 = vor.u32 %v1868_v56, %v1864_v5  ;;  %v3986_v59 = vor.u32 %v3985_v53, %v4875_v26  ;;  %2477 = vmatpush.bf16.msra.mxu1 %v4963_v47  ;;  %v1173_v5 = vunpack.c.l.b16 %v1045_v27  ;;  %3252 = vmatpush.bf16.msra.mxu2 %v4973_v25  ;;  %v4984_v56 = vld [vmem:[#allocation6 + $0x78] sm:$0xff] }
  0xbd   : > { %1518 = vrot.lane.b32.xlu0 %v1475_v50, %s4182_s18  ;;  %v1346_v50 = vrot.slane %v1344_v19, 1  ;;  %v3867_v19 = vor.u32 %v3866_v63, %v3865_v15  ;;  %v754_v29 = vshrl.u32 %v739_v28, 16  ;;  %v789_v62 = vshll.u32 %v739_v28, 16  ;;  %v1660_v4 = vld [vmem:[#allocation2 + $0x50] sm:$0x1]  ;;  %v3965_v15 = vld [vmem:[#allocation2] sm:$0xff]  }
  0xbe   : > { %v2100_v53 = vrot.slane %v4947_v2, 1  ;;  %v3802_v28 = vld [vmem:[#allocation2 + $0x30] sm:$0xf0]  ;;  %vm5893_vm10 = vcmask 253952   ;;  %vm1577_vm9 = vcmask 523264  }
  0xbf   : > { %v1347_v1 = vsel %vm5891_vm11, %v1342_v46, %v1346_v50  ;;  %v3036_v6 = vrot.slane %v3867_v19, 1  ;;  %v1871_v46 = vshll.u32 %v4947_v2, 16  ;;  %v788_v33 = vrot.slane %v754_v29, 7  ;;  %v3803_v19 = vld [vmem:[#allocation2 + $0x30] sm:$0xe]  ;;  %vm5894_vm11 = vmmov %vm5893_vm10 }
  0xc0   : > { %v4898_v0 = vpop.permute.xlu2 %1384  ;;  %1408 = vrot.lane.b32.xlu2 %v1347_v1, %s4183_s23  ;;  %v827_v50 = vrot.slane %v789_v62, 7  ;;  %v3804_v2 = vor.u32 %v3803_v19, %v3802_v28  ;;  %3253 = vmatpush.bf16.msra.mxu2 %v4984_v56 }
  0xc1   : > { %2141 = vrot.lane.b32.xlu1 %v2098_v51, %s4182_s18  ;;  %v3038_v9 = vsel %vm689_vm14, %v3036_v6, %v3037_v45  ;;  %v791_v60 = vor.u32 %v789_v62, %v788_v33  ;;  %v4980_v51 = vshrl.u32 %v4958_v37, 16  ;;  %v1546_v26 = vsel %vm5813_vm1, %v3965_v15, %v4898_v0  ;;  %v5011_v15 = vld [vmem:[#allocation6 + $0x70] sm:$0xff] }
  0xc2   : > { %v851_v1 = vsel %vm4340_vm8, %v788_v33, %v827_v50  ;;  %v4996_v6 = vshll.u32 %v4958_v37, 16  ;;  %v2099_v0 = vrot.slane %v3986_v59, 1  ;;  %v1788_v45 = vunpack.c.l.b16 %v1660_v4 }
  0xc3   : > { %v883_v7 = vunpack.c.l.b16 %v851_v1  ;;  %v843_v63 = vsel %vm4340_vm8, %v754_v29, %v791_v60  ;;  %v287_v27 = vrot.slane %v4980_v51, 7  ;;  %v1476_v59 = vrot.slane %v3804_v2, 1  ;;  %v5038_v2 = vld [vmem:[#allocation2 + $0x3c] sm:$0xff]  }
  0xc4   : > { %v881_v62 = vunpack.c.l.b16 %v843_v63  ;;  %v301_v60 = vrot.slane %v4958_v37, 7  ;;  %v1189_v1 = vpack.c.b16 %v1173_v5, %v1173_v5  ;;  %vm5895_vm1 = vcmask 257024   ;;  %3254 = vmatpush.bf16.msra.mxu2 %v5011_v15  ;;  %5899 = vst [vmem:[#allocation18_spill] sm:$0xff] %v5038_v2 }
  0xc5   : > { %2952 = vrot.lane.b32.xlu0 %v2811_v57, %s4183_s23  ;;  %v1251_v57 = vsel %vm5892_vm15, %v4653_v35, %v1250_v22  ;;  %v1502_v35 = vsel %vm689_vm14, %v1500_v36, %v1501_v8  ;;  %v882_v36 = vunpack.c.h.b16 %v843_v63  ;;  %v907_v8 = vpack.c.b16 %v883_v7, %v883_v7 }
  0xc6   : > { %v905_v29 = vpack.c.b16 %v881_v62, %v881_v62  ;;  %vm2280_vm15 = vcmask 785408   ;;  %v3989_v7 = vor.u32 %v4970_v43, %v4928_v32  ;;  %v432_v63 = vsel %vm4340_vm8, %v4918_v24, %v4996_v6  ;;  %v5026_v43 = vld [vmem:[#allocation6 + $0x68] sm:$0xff] }
  0xc7   : > { %v906_v33 = vpack.c.b16 %v882_v36, %v882_v36  ;;  %969 = vst.msk [vmem:[#allocation2 + $0x5c] sm:$0x1] %vm5893_vm10, %v907_v8  ;;  %v1873_v28 = vrot.slane %v1871_v46, 1  ;;  %v2101_v19 = vsel %vm689_vm14, %v2099_v0, %v2100_v53  ;;  %vm5896_vm10 = vmmov %vm5895_vm1  ;;  %v5023_v32 = vpack.c.b16 %v1788_v45, %v1788_v45 }
  0xc8   : > { %v4950_v21 = vpop.permute.xlu2 %2033  ;;  %3080 = vrot.lane.b32.xlu2 %v3038_v9, %s4182_s18  ;;  %v1351_v9 = vshll.u32 %v4926_v52, 16  ;;  %972 = vst.msk [vmem:[#allocation2 + $0x68] sm:$0x1] %vm5894_vm11, %v907_v8  ;;  %vm5897_vm11 = vcmask 1040384   ;;  %v1349_v46 = vshrl.u32 %v4926_v52, 16  ;;  %v317_v62 = vrot.slane %v4996_v6, 7  ;;  %3255 = vmatpush.bf16.msra.mxu2 %v5026_v43 }
  0xc9   : > { %1536 = vrot.lane.b32.xlu1 %v1502_v35, %s4182_s18  ;;  %967 = vst.msk [vmem:[#allocation2 + $0x54] sm:$0xf] %vm5895_vm1, %v905_v29  ;;  %v455_v24 = vsel %vm5897_vm11, %v432_v63, %v287_v27  ;;  %v1356_v8 = vshll.u32 %v1189_v1, 16  ;;  %v1503_v0 = vrot.slane %v3989_v7, 1  ;;  %v1504_v45 = vrot.slane %v1189_v1, 1 }
  0xca   : > { %968 = vst.msk [vmem:[#allocation2 + $0x58] sm:$0xf] %vm5896_vm10, %v906_v33  ;;  %v1353_v53 = vrot.slane %v1351_v9, 1  ;;  %vm5898_vm10 = vmmov %vm5895_vm1  ;;  %v476_v36 = vsel %vm4352_vm12, %v455_v24, %v301_v60  ;;  %v5040_v27 = vld [vmem:[#allocation2 + $0x3c] sm:$0xf0]  ;;  %v1883_v16 = vshll.u32 %v5023_v32, 16 }
  0xcb   : > { %970 = vst.msk [vmem:[#allocation2 + $0x60] sm:$0xf] %vm5895_vm1, %v905_v29  ;;  %v1046_v29 = vld [vmem:[#allocation2 + $0xb0] sm:$0x1]  ;;  %vm5900_vm1 = vcmask 1041408   ;;  %v333_v7 = vrot.slane %v4980_v51, 6 }
  0xcc   : > { %971 = vst.msk [vmem:[#allocation2 + $0x64] sm:$0xf] %vm5898_vm10, %v906_v33  ;;  %v499_v33 = vsel %vm5900_vm1, %v476_v36, %v301_v60  ;;  %vm5901_vm11 = vsmask.f32 7424  ;;  %v1354_v1 = vor.u32 %v1353_v53, %v1349_v46  ;;  %v1037_v63 = vld [vmem:[#allocation2 + $0x44] sm:$0x1] }
  0xcd   : > { %1392 = vrot.lane.b32.xlu0 %v1251_v57, %s4183_s23  ;;  %v1477_v57 = vrot.slane %v4905_v10, 1  ;;  %v3685_v10 = vld [vmem:[#allocation6 + $0x58] sm:$0xff]  ;;  %v520_v60 = vsel %vm4369_vm3, %v499_v33, %v317_v62  ;;  %v3684_v46 = vld [vmem:[#allocation6 + $0x50] sm:$0xff]  ;;  %v5060_v53 = vld [vmem:[#allocation6 + $0x60] sm:$0xff]  ;;  %v1165_v62 = vunpack.c.l.b16 %v1037_v63  ;;  %vm5906_vm3 = vcmask 261120  }
  0xce   : > { %3883 = vmatpush.bf16.msra.mxu3 %v3685_v10  ;;  %2315 = vmatpush.bf16.msra.mxu0 %v3685_v10  ;;  %v2597_v9 = vld [vmem:[#allocation2 + $0x5c] sm:$0x1]  ;;  %5903 = vst [vmem:[#allocation20_spill] sm:$0xff] %v5060_v53  ;;  %v3683_v33 = vld [vmem:[#allocation6 + $0x48] sm:$0xff]  ;;  %vm5904_vm12 = vmmov %vm5901_vm11 }
  0xcf   : > { %v1478_v5 = vsel %vm689_vm14, %v1476_v59, %v1477_v57  ;;  %v1874_v57 = vsel %vm5901_vm11, %v4966_v30, %v1873_v28  ;;  %v2725_v59 = vunpack.c.l.b16 %v2597_v9  ;;  %v1358_v30 = vrot.slane %v1356_v8, 1  ;;  %3256 = vmatpush.bf16.msra.mxu2 %v5060_v53  ;;  %v5095_v53 = vld [vmem:[#allocation2 + $0x18] sm:$0xff]  }
  0xd0   : > { %v4992_v22 = vpop.permute.xlu2 %3074  ;;  %1520 = vrot.lane.b32.xlu2 %v1478_v5, %s4182_s18  ;;  %v1505_v5 = vsel %vm689_vm14, %v1503_v0, %v1504_v45  ;;  %v1885_v8 = vrot.slane %v1883_v16, 1  ;;  %v543_v0 = vsel %vm513_vm4, %v520_v60, %v333_v7  ;;  %v1255_v7 = vshll.u32 %v5038_v2, 16  ;;  %vm5905_vm4 = vmmov %vm5901_vm11 }
  0xd1   : > { %2015 = vrot.lane.b32.xlu1 %v1874_v57, %s4183_s23  ;;  %v5053_v10 = vld [vmem:[#allocation2 + $0x54] sm:$0xff]   ;;  %v5063_v9 = vpack.c.b16 %v2725_v59, %v2725_v59  ;;  %v1359_v59 = vsel %vm5904_vm12, %v1354_v1, %v1358_v30  ;;  %v5082_v60 = vpack.c.b16 %v1165_v62, %v1165_v62  ;;  %v357_v1 = vrot.slane %v4996_v6, 6  ;;  %vm5910_vm10 = vmmov %vm5905_vm4 }
  0xd2   : > { %5902 = vst [vmem:[#allocation19_spill] sm:$0xff] %v5053_v10  ;;  %v3990_v28 = vld [vmem:[#allocation2 + $0x54] sm:$0xf0]  ;;  %3884 = vmatpush.bf16.msra.mxu3 %v3684_v46  ;;  %2316 = vmatpush.bf16.msra.mxu0 %v3684_v46  ;;  %v2813_v16 = vshrl.u32 %v5053_v10, 16  ;;  %v2815_v63 = vshll.u32 %v5053_v10, 16  ;;  %v1886_v39 = vsel %vm5905_vm4, %v4909_v40, %v1885_v8  ;;  %vm5911_vm1 = vmmov %vm5905_vm4  ;;  %vm5916_vm11 = vcmask 257024  }
  0xd3   : > { %v5000_v50 = vpop.permute.xlu1 %3072  ;;  %v2820_v52 = vshll.u32 %v5063_v9, 16  ;;  %v3040_v62 = vrot.slane %v5063_v9, 1  ;;  %v3995_v9 = vor.u32 %v5065_v23, %v5040_v27  ;;  %v1480_v23 = vrot.slane %v5082_v60, 1  ;;  %vm5917_vm12 = vmmov %vm5916_vm11 }
  0xd5   : > { %v1513_v4 = vpop.permute.xlu0 %1512  ;;  %2143 = vrot.lane.b32.xlu0 %v2101_v19, %s4182_s18  ;;  %v5048_v19 = vld [vmem:[#allocation2 + $0xa8] sm:$0xff]  }
  0xd6   : > { %v1579_v35 = vsel %vm1577_vm9, %v1546_v26, %v1513_v4  ;;  %v3991_v4 = vld [vmem:[#allocation2 + $0x54] sm:$0xe]  ;;  %v1363_v57 = vshll.u32 %v5048_v19, 16  ;;  %v1361_v46 = vshrl.u32 %v5048_v19, 16  ;;  %3885 = vmatpush.bf16.msra.mxu3 %v3683_v33  ;;  %2317 = vmatpush.bf16.msra.mxu0 %v3683_v33  ;;  %v1253_v19 = vshrl.u32 %v5038_v2, 16 }
  0xd7   : > { %3612 = vmatmul.msk.bf16.vlgmr.msra.gmra.mxu1 %vm2280_vm15, %v1579_v35  ;;  %v1174_v35 = vunpack.c.l.b16 %v1046_v29  ;;  %v341_v29 = vrot.slane %v4958_v37, 6  ;;  %v3992_v13 = vor.u32 %v3991_v4, %v3990_v28  ;;  %v2817_v28 = vrot.slane %v2815_v63, 1  ;;  %v3681_v63 = vld [vmem:[#allocation6 + $0x38] sm:$0xff] }
  0xd8   : > { %v5032_v26 = vpop.permute.xlu2 %1514  ;;  %v1365_v4 = vrot.slane %v1363_v57, 1  ;;  %v1257_v33 = vrot.slane %v1255_v7, 1  ;;  %v373_v2 = vrot.slane %v4980_v51, 5  ;;  %v381_v7 = vrot.slane %v4958_v37, 5 }
  0xd9   : > { %v5069_v45 = vpack.c.b16 %v1174_v35, %v1174_v35  ;;  %v564_v35 = vsel %vm4387_vm5, %v543_v0, %v341_v29  ;;  %1410 = vrot.lane.b32.xlu1 %v1359_v59, %s4183_s23  ;;  %v3039_v34 = vrot.slane %v3992_v13, 1  ;;  %v2598_v0 = vld [vmem:[#allocation2 + $0x68] sm:$0x1]  ;;  %v2818_v57 = vor.u32 %v2817_v28, %v2813_v16 }
  0xda   : > { %v587_v38 = vsel %vm557_vm6, %v564_v35, %v341_v29  ;;  %v1260_v13 = vshll.u32 %v5082_v60, 16  ;;  %3886 = vmatpush.bf16.msra.mxu3 %v3682_v42  ;;  %v2726_v29 = vunpack.c.l.b16 %v2598_v0  ;;  %vm5907_vm6 = vmmov %vm5905_vm4  ;;  %2318 = vmatpush.bf16.msra.mxu0 %v3682_v42  ;;  %v5114_v28 = vor.u32 %v1365_v4, %v1361_v46  ;;  %v1038_v4 = vld [vmem:[#allocation2 + $0x50] sm:$0x1] }
  0xdb   : > { %v1368_v30 = vshll.u32 %v5069_v45, 16  ;;  %v608_v27 = vsel %vm4404_vm7, %v587_v38, %v357_v1  ;;  %v1258_v42 = vor.u32 %v1257_v33, %v1253_v19  ;;  %v3835_v38 = vld [vmem:[#allocation2 + $0x48] sm:$0xe]  ;;  %v397_v60 = vrot.slane %v4996_v6, 5  ;;  %vm5918_vm4 = vmmov %vm5916_vm11 }
  0xdc   : > { %vm5908_vm5 = vcmask 1044480   ;;  %v2742_v1 = vpack.c.b16 %v2726_v29, %v2726_v29  ;;  %v3680_v19 = vld [vmem:[#allocation6 + $0x30] sm:$0xff]  ;;  %vm5909_vm7 = vcmask 1045504  }
  0xdd   : > { %v5056_v24 = vpop.permute.xlu1 %2161  ;;  %v5058_v36 = vpop.permute.xlu0 %2137  ;;  %1538 = vrot.lane.b32.xlu0 %v1505_v5, %s4182_s18  ;;  %v2822_v5 = vrot.slane %v2820_v52, 1  ;;  %v1370_v0 = vrot.slane %v1368_v30, 1 }
  0xde   : > { %3887 = vmatpush.bf16.msra.mxu3 %v3681_v63  ;;  %2319 = vmatpush.bf16.msra.mxu0 %v3681_v63 }
  0xdf   : > { %v2823_v16 = vsel %vm5907_vm6, %v2818_v57, %v2822_v5  ;;  %v3041_v5 = vsel %vm689_vm14, %v3039_v34, %v3040_v62  ;;  %v3869_v57 = vld [vmem:[#allocation2 + $0x60] sm:$0xe]  ;;  %v1371_v6 = vsel %vm5910_vm10, %v5114_v28, %v1370_v0  ;;  %vm5920_vm6 = vmmov %vm5911_vm1 }
  0xe0   : > { %v5073_v20 = vpop.permute.xlu2 %2948  ;;  %2954 = vrot.lane.b32.xlu2 %v2823_v16, %s4183_s23  ;;  %v413_v16 = vrot.slane %v4980_v51, 4  ;;  %v1166_v51 = vunpack.c.l.b16 %v1038_v4 }
  0xe1   : > { %3082 = vrot.lane.b32.xlu1 %v3041_v5, %s4182_s18  ;;  %v5133_v5 = vld [vmem:[#allocation2 + $0x54] sm:$0xff]  }
  0xe2   : > { %3888 = vmatpush.bf16.msra.mxu3 %v3680_v19  ;;  %2320 = vmatpush.bf16.msra.mxu0 %v3680_v19 }
  0xe5   : > { %v5091_v10 = vpop.permute.xlu1 %3076  ;;  %v2945_v8 = vpop.permute.xlu0 %2944  ;;  %2017 = vrot.lane.b32.xlu0 %v1886_v39, %s4183_s23  ;;  %v631_v39 = vsel %vm5908_vm5, %v608_v27, %v373_v2  ;;  %v2832_v27 = vshll.u32 %v2742_v1, 16 }
  0xe6   : > { %v3105_v52 = vsel %vm5906_vm3, %v5095_v53, %v2945_v8  ;;  %v3868_v8 = vld [vmem:[#allocation2 + $0x60] sm:$0xf0]  ;;  %v652_v30 = vsel %vm4421_vm0, %v631_v39, %v381_v7  ;;  %3889 = vmatpush.bf16.msrb.mxu3 %v4857_v61  ;;  %v3817_v39 = vld [vmem:[#allocation2 + $0xa8] sm:$0xf0]  ;;  %v3818_v61 = vld [vmem:[#allocation2 + $0xa8] sm:$0xe] }
  0xe7   : > { %v3137_v59 = vsel %vm1577_vm9, %v3105_v52, %v5000_v50  ;;  %v3854_v50 = vld [vmem:[#allocation2 + $0x60] sm:$0xff]   ;;  %v1262_v52 = vrot.slane %v1260_v13, 1  ;;  %v3870_v34 = vor.u32 %v3869_v57, %v3868_v8  ;;  %v675_v33 = vsel %vm5909_vm7, %v652_v30, %v381_v7  ;;  %v5135_v8 = vld [vmem:[#allocation2 + $0x54] sm:$0xf0]  ;;  %vm5914_vm0 = vmmov %vm5906_vm3 }
  0xe8   : > { %3652 = vmatmul.msk.bf16.vlgmr.msra.gmra.mxu2 %vm2280_vm15, %v3137_v59  ;;  %v5107_v35 = vpop.permute.xlu2 %1388  ;;  %v1479_v59 = vrot.slane %v3995_v9, 1  ;;  %v2827_v46 = vshll.u32 %v3854_v50, 16  ;;  %v3836_v13 = vor.u32 %v3835_v38, %v3834_v41  ;;  %v696_v49 = vsel %vm4437_vm13, %v675_v33, %v397_v60  ;;  %vm5919_vm3 = vmmov %vm5918_vm4 }
  0xe9   : > { %v1263_v2 = vsel %vm5911_vm1, %v1258_v42, %v1262_v52  ;;  %v2825_v63 = vshrl.u32 %v3854_v50, 16  ;;  %v719_v0 = vsel %vm689_vm14, %v696_v49, %v413_v16  ;;  %v3043_v57 = vrot.slane %v2742_v1, 1  ;;  %v3806_v42 = vld [vmem:[#allocation2 + $0x48] sm:$0xe]  ;;  %v1661_v1 = vld [vmem:[#allocation2 + $0x5c] sm:$0x1]  ;;  %vm5921_vm5 = vmmov %vm5914_vm0 }
  0xea   : > { %v1481_v9 = vsel %vm689_vm14, %v1479_v59, %v1480_v23  ;;  %v2829_v29 = vrot.slane %v2827_v46, 1  ;;  %v3042_v23 = vrot.slane %v3870_v34, 1  ;;  %1394 = vrot.lane.b32.xlu2 %v1263_v2, %s4183_s23  ;;  %v740_v50 = vsel %vm4456_vm2, %v719_v0, %v4958_v37  ;;  %3890 = vmatpush.bf16.msrb.mxu3 %v4883_v48  ;;  %v5152_v37 = vld [vmem:[#allocation2 + $0x54] sm:$0xe]  ;;  %vm5912_vm2 = vmmov %vm5911_vm1  ;;  %v5168_v0 = vld [vmem:[#allocation2 + $0xb4] sm:$0xf0] }
  0xeb   : > { %v2102_v52 = vrot.slane %v3836_v13, 1  ;;  %v2103_v59 = vrot.slane %v5023_v32, 1  ;;  %v757_v41 = vshrl.u32 %v740_v50, 16  ;;  %v793_v38 = vshll.u32 %v740_v50, 16  ;;  %1522 = vrot.lane.b32.xlu1 %v1481_v9, %s4182_s18  ;;  %vm5922_vm7 = vmmov %vm5911_vm1 }
  0xec   : > { %v1182_v60 = vpack.c.b16 %v1166_v51, %v1166_v51  ;;  %v5147_v46 = vor.u32 %v2829_v29, %v2825_v63  ;;  %v2834_v4 = vrot.slane %v2832_v27, 1  ;;  %v3044_v3 = vsel %vm689_vm14, %v3042_v23, %v3043_v57  ;;  %v5166_v27 = vld [vmem:[#allocation2 + $0xb4] sm:$0xff]   ;;  %vm5923_vm10 = vmmov %vm5914_vm0 }
  0xed   : > { %v5124_v62 = vpop.permute.xlu1 %1516  ;;  %1412 = vrot.lane.b32.xlu0 %v1371_v6, %s4183_s23  ;;  %v792_v16 = vrot.slane %v757_v41, 7  ;;  %v828_v30 = vrot.slane %v793_v38, 7  ;;  %v3807_v32 = vor.u32 %v3806_v42, %v3805_v58  ;;  %v2104_v19 = vsel %vm689_vm14, %v2102_v52, %v2103_v59  ;;  %vm5924_vm1 = vmmov %vm5914_vm0 }
  0xee   : > { %v3819_v2 = vor.u32 %v3818_v61, %v3817_v39  ;;  %v1272_v13 = vshll.u32 %v1182_v60, 16  ;;  %v1789_v51 = vunpack.c.l.b16 %v1661_v1  ;;  %v2835_v48 = vsel %vm5912_vm2, %v5147_v46, %v2834_v4  ;;  %3891 = vmatpush.bf16.msrb.mxu3 %v4893_v55  ;;  %v1047_v61 = vld [vmem:[#allocation2 + $0xbc] sm:$0x1]  ;;  %v5183_v1 = vld [vmem:[#allocation2 + $0x54] sm:$0xf0] }
  0xef   : > { %v795_v33 = vor.u32 %v793_v38, %v792_v16  ;;  %v852_v6 = vsel %vm4340_vm8, %v792_v16, %v828_v30  ;;  %v1483_v9 = vrot.slane %v1182_v60, 1  ;;  %v1890_v50 = vshll.u32 %v5133_v5, 16 }
  0xf0   : > { %v5137_v7 = vpop.permute.xlu2 %2139  ;;  %v886_v49 = vunpack.c.l.b16 %v852_v6  ;;  %v1482_v11 = vrot.slane %v3807_v32, 1  ;;  %v1506_v52 = vrot.slane %v3819_v2, 1  ;;  %v1507_v59 = vrot.slane %v5069_v45, 1  ;;  %v5181_v45 = vld [vmem:[#allocation2 + $0x54] sm:$0xff]  }
  0xf1   : > { %v844_v63 = vsel %vm4340_vm8, %v757_v41, %v795_v33  ;;  %v1805_v55 = vpack.c.b16 %v1789_v51, %v1789_v51  ;;  %vm5913_vm8 = vcmask 253952   ;;  %v1274_v39 = vrot.slane %v1272_v13, 1  ;;  %v4000_v6 = vld [vmem:[#allocation2 + $0xb4] sm:$0xe] }
  0xf2   : > { %2145 = vrot.lane.b32.xlu2 %v2104_v19, %s4182_s18  ;;  %v884_v23 = vunpack.c.l.b16 %v844_v63  ;;  %v885_v57 = vunpack.c.h.b16 %v844_v63  ;;  %v910_v58 = vpack.c.b16 %v886_v49, %v886_v49  ;;  %vm5915_vm13 = vmmov %vm5913_vm8  ;;  %3892 = vmatpush.bf16.msrb.mxu3 %v4921_v14  ;;  %v1888_v16 = vshrl.u32 %v5133_v5, 16  ;;  %v1039_v49 = vld [vmem:[#allocation2 + $0x5c] sm:$0x1] }
  0xf3   : > { %2956 = vrot.lane.b32.xlu1 %v2835_v48, %s4183_s23  ;;  %v1892_v30 = vrot.slane %v1890_v50, 1  ;;  %v1508_v32 = vsel %vm689_vm14, %v1506_v52, %v1507_v59  ;;  %v3998_v19 = vor.u32 %v5152_v37, %v5135_v8  ;;  %v1175_v33 = vunpack.c.l.b16 %v1047_v61  ;;  %v1662_v59 = vld [vmem:[#allocation2 + $0x68] sm:$0x1] }
  0xf4   : > { %v908_v41 = vpack.c.b16 %v884_v23, %v884_v23  ;;  %v909_v38 = vpack.c.b16 %v885_v57, %v885_v57  ;;  %975 = vst.msk [vmem:[#allocation2 + $0x74] sm:$0x1] %vm5913_vm8, %v910_v58  ;;  %v1275_v51 = vsel %vm5920_vm6, %v4909_v40, %v1274_v39  ;;  %v1375_v48 = vshll.u32 %v5166_v27, 16  ;;  %vm5925_vm8 = vmmov %vm5914_vm0 }
  0xf5   : > { %v5154_v34 = vpop.permute.xlu1 %2159  ;;  %3084 = vrot.lane.b32.xlu0 %v3044_v3, %s4182_s18  ;;  %978 = vst.msk [vmem:[#allocation2 + $0x80] sm:$0x1] %vm5915_vm13, %v910_v58  ;;  %v1895_v3 = vshll.u32 %v1805_v55, 16  ;;  %v1893_v2 = vor.u32 %v1892_v30, %v1888_v16  ;;  %v2106_v63 = vrot.slane %v1805_v55, 1  ;;  %v1191_v57 = vpack.c.b16 %v1175_v33, %v1175_v33  ;;  %vm5927_vm13 = vmmov %vm5924_vm1 }
  0xf6   : > { %973 = vst.msk [vmem:[#allocation2 + $0x6c] sm:$0xf] %vm5916_vm11, %v908_v41  ;;  %3893 = vmatpush.bf16.msrb.mxu3 %v4938_v44  ;;  %v1377_v55 = vrot.slane %v1375_v48, 1  ;;  %v1790_v39 = vunpack.c.l.b16 %v1662_v59  ;;  %vm5934_vm6 = vmmov %vm5924_vm1 }
  0xf7   : > { %v5171_v42 = vpop.permute.xlu0 %2163  ;;  %974 = vst.msk [vmem:[#allocation2 + $0x70] sm:$0xf] %vm5917_vm12, %v909_v38  ;;  %v1897_v13 = vrot.slane %v1895_v3, 1  ;;  %vm5929_vm12 = vmmov %vm5924_vm1 }
  0xf8   : > { %v2008_v29 = vpop.permute.xlu2 %2007  ;;  %976 = vst.msk [vmem:[#allocation2 + $0x78] sm:$0xf] %vm5918_vm4, %v908_v41 }
  0xf9   : > { %v2168_v60 = vsel %vm5914_vm0, %v4640_v18, %v2008_v29  ;;  %v1484_v18 = vsel %vm689_vm14, %v1482_v11, %v1483_v9  ;;  %977 = vst.msk [vmem:[#allocation2 + $0x7c] sm:$0xf] %vm5919_vm3, %v909_v38  ;;  %v2105_v9 = vrot.slane %v3998_v19, 1  ;;  %v1167_v11 = vunpack.c.l.b16 %v1039_v49  ;;  %vm5926_vm0 = vmmov %vm5912_vm2 }
  0xfa   : > { %1540 = vrot.lane.b32.xlu2 %v1508_v32, %s4182_s18  ;;  %3894 = vmatpush.bf16.msrb.mxu3 %v4963_v47  ;;  %v1898_v52 = vsel %vm5922_vm7, %v1893_v2, %v1897_v13  ;;  %v4001_v47 = vor.u32 %v4000_v6, %v5168_v0  ;;  %v1510_v32 = vrot.slane %v1191_v57, 1  ;;  %vm5928_vm11 = vmmov %vm5926_vm0 }
  0xfb   : > { %v2599_v37 = vld [vmem:[#allocation2 + $0x74] sm:$0x1]  ;;  %1396 = vrot.lane.b32.xlu1 %v1275_v51, %s4183_s23  ;;  %v5218_v61 = vpack.c.b16 %v1167_v11, %v1167_v11  ;;  %v5233_v51 = vpack.c.b16 %v1790_v39, %v1790_v39  ;;  %vm5930_vm4 = vmmov %vm5926_vm0 }
  0xfc   : > { %v2727_v29 = vunpack.c.l.b16 %v2599_v37  ;;  %v1509_v33 = vrot.slane %v4001_v47, 1  ;;  %v2600_v49 = vld [vmem:[#allocation2 + $0x80] sm:$0x1]  ;;  %vm5933_vm3 = vmmov %vm5924_vm1 }
  0xfd   : > { %v2136_v4 = vpop.permute.xlu1 %2135  ;;  %1524 = vrot.lane.b32.xlu0 %v1484_v18, %s4182_s18  ;;  %v4003_v0 = vld [vmem:[#allocation2 + $0x6c] sm:$0xe]  ;;  %v1907_v11 = vshll.u32 %v5233_v51, 16  ;;  %vm5937_vm7 = vmmov %vm5926_vm0 }
  0xfe   : > { %v2200_v14 = vsel %vm1577_vm9, %v2168_v60, %v2136_v4  ;;  %v5208_v40 = vld [vmem:[#allocation2 + $0x6c] sm:$0xff]   ;;  %v5210_v50 = vpack.c.b16 %v2727_v29, %v2727_v29  ;;  %v2107_v60 = vsel %vm689_vm14, %v2105_v9, %v2106_v63  ;;  %v1279_v4 = vshll.u32 %v5181_v45, 16  ;;  %v4006_v63 = vld [vmem:[#allocation2 + $0x54] sm:$0xe] }
  0xff   : > { %3572 = vmatmul.msk.bf16.vlgmr.msra.gmra.mxu0 %vm2280_vm15, %v2200_v14  ;;  %v2032_v8 = vpop.permute.xlu0 %2031  ;;  %v4002_v58 = vld [vmem:[#allocation2 + $0x6c] sm:$0xf0]  ;;  %v2837_v16 = vshrl.u32 %v5208_v40, 16  ;;  %v2839_v30 = vshll.u32 %v5208_v40, 16 }
 0x100   : > { %v2192_v44 = vsel %vm5921_vm5, %v4612_v31, %v2032_v8  ;;  %v1373_v31 = vshrl.u32 %v5166_v27, 16  ;;  %v2844_v41 = vshll.u32 %v5210_v50, 16  ;;  %v1281_v8 = vrot.slane %v1279_v4, 1  ;;  %vm5936_vm5 = vmmov %vm5924_vm1 }
 0x101   : > { %v2224_v23 = vsel %vm1577_vm9, %v2192_v44, %v5154_v34  ;;  %v1380_v34 = vshll.u32 %v1191_v57, 16  ;;  %v2841_v6 = vrot.slane %v2839_v30, 1  ;;  %v3967_v44 = vld [vmem:[#allocation2 + $0xa8] sm:$0xff]   ;;  %v1511_v57 = vsel %vm689_vm14, %v1509_v33, %v1510_v32 }
 0x102   : > { %3584 = vmatmul.msk.bf16.vlgmr.msra.gmra.mxu3 %vm2280_vm15, %v2224_v23  ;;  %2019 = vrot.lane.b32.xlu2 %v1898_v52, %s4183_s23  ;;  %v2846_v2 = vrot.slane %v2844_v41, 1  ;;  %v2194_v29 = vsel %vm5925_vm8, %v3967_v44, %v4950_v21  ;;  %v5255_v41 = vld [vmem:[#allocation2 + $0x78] sm:$0xff]   ;;  %v1909_v4 = vrot.slane %v1907_v11, 1  ;;  %v5269_v30 = vld [vmem:[#allocation2 + $0x6c] sm:$0xff]   ;;  %v2109_v32 = vrot.slane %v5233_v51, 1  ;;  %vm5942_vm8 = vmmov %vm5933_vm3 }
 0x103   : > { %3895 = vmatpush.bf16.msra.mxu3 %v4930_v54  ;;  %v1378_v54 = vor.u32 %v1377_v55, %v1373_v31  ;;  %v1382_v18 = vrot.slane %v1380_v34, 1  ;;  %2147 = vrot.lane.b32.xlu1 %v2107_v60, %s4182_s18  ;;  %v2842_v37 = vor.u32 %v2841_v6, %v2837_v16  ;;  %v3837_v31 = vld [vmem:[#allocation2 + $0x60] sm:$0xf0]  ;;  %v3046_v34 = vrot.slane %v5210_v50, 1  ;;  %v3872_v6 = vld [vmem:[#allocation2 + $0x78] sm:$0xe] }
 0x104   : > { %v1486_v51 = vrot.slane %v5218_v61, 1 }
 0x105   : > { %v2010_v38 = vpop.permute.xlu1 %2009  ;;  %v1383_v48 = vsel %vm5912_vm2, %v1378_v54, %v1382_v18  ;;  %v2847_v23 = vsel %vm5926_vm0, %v2842_v37, %v2846_v2  ;;  %v5275_v54 = vld [vmem:[#allocation2 + $0x30] sm:$0xff]   ;;  %vm5940_vm2 = vmmov %vm5926_vm0 }
 0x106   : > { %v2170_v19 = vsel %vm5924_vm1, %v5095_v53, %v2010_v38  ;;  %2958 = vrot.lane.b32.xlu0 %v2847_v23, %s4183_s23  ;;  %v2226_v38 = vsel %vm1577_vm9, %v2194_v29, %v5056_v24  ;;  %v3109_v18 = vsel %vm5929_vm12, %v5275_v54, %v5073_v20  ;;  %v1663_v20 = vld [vmem:[#allocation2 + $0x74] sm:$0x1]  ;;  %vm5939_vm1 = vmmov %vm5926_vm0 }
 0x107   : > { %v2947_v3 = vpop.permute.xlu0 %2946  ;;  %3896 = vmatpush.bf16.msra.mxu3 %v4973_v25  ;;  %v1277_v25 = vshrl.u32 %v5181_v45, 16  ;;  %v2202_v9 = vsel %vm1577_vm9, %v2170_v19, %v5058_v36  ;;  %v2728_v36 = vunpack.c.l.b16 %v2600_v49  ;;  %v1910_v19 = vsel %vm5930_vm4, %v5147_v46, %v1909_v4  ;;  %v5932_v37 = vld [vmem:[#allocation13_spill] sm:$0xff]  ;;  %v5320_v4 = vld [vmem:[#allocation2 + $0xb4] sm:$0xf0]  ;;  %vm5947_vm12 = vmmov %vm5939_vm1 }
 0x108   : > { %v3107_v14 = vsel %vm5923_vm10, %v4604_v17, %v2947_v3  ;;  %v1284_v17 = vshll.u32 %v5218_v61, 16  ;;  %v5250_v21 = vpop.permute.xlu2 %2165  ;;  %v4007_v3 = vor.u32 %v4006_v63, %v5183_v1  ;;  %v3871_v1 = vld [vmem:[#allocation2 + $0x78] sm:$0xf0]  ;;  %v3878_v63 = vld [vmem:[#allocation2 + $0xa8] sm:$0xe]  ;;  %v1791_v11 = vunpack.c.l.b16 %v1663_v20  ;;  %vm5938_vm10 = vmmov %vm5926_vm0 }
 0x109   : > { %v3139_v13 = vsel %vm1577_vm9, %v3107_v14, %v4992_v22  ;;  %v4004_v22 = vor.u32 %v4003_v0, %v4002_v58  ;;  %v1282_v52 = vor.u32 %v1281_v8, %v1277_v25  ;;  %v5263_v50 = vpack.c.b16 %v2728_v36, %v2728_v36  ;;  %v5931_v8 = vld [vmem:[#allocation20_spill] sm:$0xff]  ;;  %vm5943_vm0 = vmmov %vm5933_vm3 }
 0x10a   : > { %3653 = vmatmul.msk.bf16.gmra.mxu2 %vm2280_vm15, %v3139_v13  ;;  %1414 = vrot.lane.b32.xlu2 %v1383_v48, %s4183_s23  ;;  %v1286_v58 = vrot.slane %v1284_v17, 1  ;;  %v1485_v25 = vrot.slane %v4007_v3, 1  ;;  %v3873_v61 = vor.u32 %v3872_v6, %v3871_v1  ;;  %v2605_v6 = vld [vmem:[#allocation2 + $0xbc] sm:$0x1]  ;;  %vm5948_vm4 = vmmov %vm5943_vm0 }
 0x10b   : > { %3897 = vmatpush.bf16.msra.mxu3 %v4984_v56  ;;  %v3838_v56 = vld [vmem:[#allocation2 + $0x60] sm:$0xe]  ;;  %v3045_v55 = vrot.slane %v4004_v22, 1  ;;  %1542 = vrot.lane.b32.xlu1 %v1511_v57, %s4182_s18  ;;  %v2856_v33 = vshll.u32 %v5263_v50, 16  ;;  %v3877_v22 = vld [vmem:[#allocation2 + $0xa8] sm:$0xf0] }
 0x10c   : > { %v3839_v39 = vor.u32 %v3838_v56, %v3837_v31  ;;  %v1287_v16 = vsel %vm5928_vm11, %v1282_v52, %v1286_v58  ;;  %v1040_v57 = vld [vmem:[#allocation2 + $0x68] sm:$0x1]  ;;  %v1487_v36 = vsel %vm689_vm14, %v1485_v25, %v1486_v51  ;;  %v4009_v51 = vld [vmem:[#allocation2 + $0x6c] sm:$0xe]  ;;  %vm5946_vm11 = vmmov %vm5943_vm0 }
 0x10d   : > { %v3047_v24 = vsel %vm689_vm14, %v3045_v55, %v3046_v34  ;;  %v2858_v29 = vrot.slane %v2856_v33, 1  ;;  %v2036_v23 = vpop.permute.xlu1 %2035  ;;  %v5305_v56 = vld [vmem:[#allocation2 + $0x84] sm:$0xf0]  ;;  %v1550_v55 = vsel %vm5934_vm6, %v5095_v53, %v5107_v35  ;;  %v3048_v53 = vrot.slane %v3873_v61, 1  ;;  %v5347_v61 = vld [vmem:[#allocation2 + $0x6c] sm:$0xf0]  ;;  %vm5950_vm6 = vmmov %vm5939_vm1 }
 0x10e   : > { %v2108_v0 = vrot.slane %v3839_v39, 1  ;;  %1398 = vrot.lane.b32.xlu0 %v1287_v16, %s4183_s23  ;;  %v5935_v34 = vld [vmem:[#allocation12_spill] sm:$0xff]  ;;  %v5318_v39 = vld [vmem:[#allocation2 + $0xb4] sm:$0xff]   ;;  %v3049_v35 = vrot.slane %v5263_v50, 1  ;;  %v1912_v33 = vshrl.u32 %v5269_v30, 16 }
 0x10f   : > { %3573 = vmatmul.msk.bf16.gmra.mxu0 %vm2280_vm15, %v2202_v9  ;;  %v1387_v59 = vpop.permute.xlu0 %1386  ;;  %3898 = vmatpush.bf16.msra.mxu3 %v5011_v15  ;;  %v2604_v15 = vld [vmem:[#allocation2 + $0xb0] sm:$0x1]  ;;  %v3141_v9 = vsel %vm1577_vm9, %v3109_v18, %v5091_v10  ;;  %v5303_v10 = vld [vmem:[#allocation2 + $0x84] sm:$0xff]  }
 0x110   : > { %v1548_v47 = vsel %vm5927_vm13, %v4598_v12, %v1387_v59  ;;  %v2851_v12 = vshll.u32 %v5255_v41, 16  ;;  %v2732_v14 = vunpack.c.l.b16 %v2604_v15  ;;  %v5291_v49 = vpop.permute.xlu2 %2013  ;;  %v2110_v48 = vsel %vm689_vm14, %v2108_v0, %v2109_v32  ;;  %v3808_v32 = vld [vmem:[#allocation2 + $0x60] sm:$0xf0]  ;;  %vm5944_vm13 = vmmov %vm5939_vm1 }
 0x111   : > { %v1581_v60 = vsel %vm1577_vm9, %v1548_v47, %v5032_v26  ;;  %v5271_v26 = vld [vmem:[#allocation2 + $0x6c] sm:$0xf0]  ;;  %v3879_v59 = vor.u32 %v3878_v63, %v3877_v22  ;;  %v2196_v47 = vsel %vm5936_vm5, %v5935_v34, %v2036_v23  ;;  %v1583_v0 = vsel %vm1577_vm9, %v1550_v55, %v5124_v62  ;;  %v1041_v55 = vld [vmem:[#allocation2 + $0x74] sm:$0x1]  ;;  %vm5951_vm5 = vmmov %vm5943_vm0 }
 0x112   : > { %3585 = vmatmul.msk.bf16.gmra.mxu3 %vm2280_vm15, %v2226_v38  ;;  %3613 = vmatmul.msk.bf16.gmra.mxu1 %vm2280_vm15, %v1581_v60  ;;  %v2853_v2 = vrot.slane %v2851_v12, 1  ;;  %v2748_v44 = vpack.c.b16 %v2732_v14, %v2732_v14  ;;  %v1168_v38 = vunpack.c.l.b16 %v1040_v57  ;;  %v5314_v60 = vpack.c.b16 %v1791_v11, %v1791_v11  ;;  %v2601_v12 = vld [vmem:[#allocation2 + $0x8c] sm:$0x1]  ;;  %v3809_v14 = vld [vmem:[#allocation2 + $0x60] sm:$0xe] }
 0x113   : > { %3899 = vmatpush.bf16.msra.mxu3 %v5026_v43  ;;  %3086 = vrot.lane.b32.xlu2 %v3047_v24, %s4182_s18  ;;  %v2849_v43 = vshrl.u32 %v5255_v41, 16  ;;  %v3060_v3 = vrot.slane %v3879_v59, 1  ;;  %v2228_v18 = vsel %vm1577_vm9, %v2196_v47, %v5171_v42  ;;  %v3810_v25 = vor.u32 %v3809_v14, %v3808_v32  ;;  %v5345_v23 = vld [vmem:[#allocation2 + $0x6c] sm:$0xff]   ;;  %v4015_v32 = vld [vmem:[#allocation2 + $0x84] sm:$0xe] }
 0x114   : > { %2021 = vrot.lane.b32.xlu1 %v1910_v19, %s4183_s23  ;;  %v2904_v58 = vshll.u32 %v2748_v44, 16  ;;  %v1184_v19 = vpack.c.b16 %v1168_v38, %v1168_v38  ;;  %v1919_v1 = vshll.u32 %v5314_v60, 16  ;;  %v3061_v42 = vrot.slane %v2748_v44, 1  ;;  %v3969_v14 = vld [vmem:[#allocation2 + $0xc0] sm:$0xff]  }
 0x115   : > { %v5298_v52 = vor.u32 %v2853_v2, %v2849_v43  ;;  %v2729_v43 = vunpack.c.l.b16 %v2601_v12  ;;  %v1488_v44 = vrot.slane %v3810_v25, 1  ;;  %v2911_v11 = vshll.u32 %v5318_v39, 16  ;;  %v5941_v12 = vld [vmem:[#allocation15_spill] sm:$0xff] }
 0x116   : > { %2149 = vrot.lane.b32.xlu0 %v2110_v48, %s4182_s18  ;;  %v2906_v24 = vrot.slane %v2904_v58, 1  ;;  %v1296_v20 = vshll.u32 %v1184_v19, 16  ;;  %v3062_v22 = vsel %vm689_vm14, %v3060_v3, %v3061_v42  ;;  %v4010_v47 = vor.u32 %v4009_v51, %v5271_v26 }
 0x117   : > { %v2012_v13 = vpop.permute.xlu0 %2011  ;;  %3900 = vmatpush.bf16.msra.mxu3 %v5931_v8  ;;  %v2859_v15 = vsel %vm5937_vm7, %v5298_v52, %v2858_v29  ;;  %v2733_v8 = vunpack.c.l.b16 %v2605_v6  ;;  %v5340_v48 = vpack.c.b16 %v2729_v43, %v2729_v43  ;;  %v1489_v29 = vrot.slane %v1184_v19, 1  ;;  %vm5952_vm7 = vmmov %vm5943_vm0 }
 0x118   : > { %v2172_v17 = vsel %vm5933_vm3, %v5932_v37, %v2012_v13  ;;  %v3050_v13 = vsel %vm689_vm14, %v3048_v53, %v3049_v35  ;;  %v2907_v62 = vsel %vm5938_vm10, %v5114_v28, %v2906_v24  ;;  %v1298_v63 = vrot.slane %v1296_v20, 1  ;;  %v4012_v53 = vld [vmem:[#allocation2 + $0xb4] sm:$0xe]  ;;  %v4018_v20 = vld [vmem:[#allocation2 + $0x6c] sm:$0xe]  ;;  %vm5949_vm3 = vmmov %vm5943_vm0 }
 0x119   : > { %v2204_v31 = vsel %vm1577_vm9, %v2172_v17, %v5137_v7  ;;  %v1914_v7 = vshll.u32 %v5269_v30, 16  ;;  %v1921_v17 = vrot.slane %v1919_v1, 1  ;;  %v5349_v57 = vpack.c.b16 %v2733_v8, %v2733_v8  ;;  %vm5953_vm10 = vmmov %vm5939_vm1 }
 0x11a   : > { %3654 = vmatmul.msk.bf16.gmra.mxu2 %vm2280_vm15, %v3141_v9  ;;  %v5333_v2 = vpop.permute.xlu2 %1408  ;;  %v2863_v9 = vshll.u32 %v5303_v10, 16  ;;  %v2868_v59 = vshll.u32 %v5340_v48, 16  ;;  %v1299_v34 = vsel %vm5940_vm2, %v5147_v46, %v1298_v63  ;;  %v2913_v3 = vrot.slane %v2911_v11, 1  ;;  %vm5954_vm2 = vmmov %vm5939_vm1 }
 0x11b   : > { %1526 = vrot.lane.b32.xlu2 %v1487_v36, %s4182_s18  ;;  %v1916_v50 = vrot.slane %v1914_v7, 1  ;;  %v1490_v7 = vsel %vm689_vm14, %v1488_v44, %v1489_v29  ;;  %v2112_v1 = vrot.slane %v5314_v60, 1  ;;  %v1303_v51 = vshll.u32 %v5345_v23, 16 }
 0x11c   : > { %2960 = vrot.lane.b32.xlu1 %v2859_v15, %s4183_s23  ;;  %v2865_v58 = vrot.slane %v2863_v9, 1  ;;  %v2909_v15 = vshrl.u32 %v5318_v39, 16  ;;  %v4013_v60 = vor.u32 %v4012_v53, %v5320_v4  ;;  %v1301_v29 = vshrl.u32 %v5345_v23, 16  ;;  %v3841_v53 = vld [vmem:[#allocation2 + $0x78] sm:$0xe] }
 0x11d   : > { %v1917_v37 = vor.u32 %v1916_v50, %v1912_v33  ;;  %v2870_v33 = vrot.slane %v2868_v59, 1  ;;  %v2111_v50 = vrot.slane %v4010_v47, 1 }
 0x11e   : > { %3088 = vrot.lane.b32.xlu0 %v3050_v13, %s4182_s18  ;;  %v3063_v11 = vrot.slane %v4013_v60, 1  ;;  %v1042_v60 = vld [vmem:[#allocation2 + $0x80] sm:$0x1] }
 0x11f   : > { %3574 = vmatmul.msk.bf16.gmra.mxu0 %vm2280_vm15, %v2204_v31  ;;  %v2038_v16 = vpop.permute.xlu0 %2037  ;;  %v1922_v36 = vsel %vm5939_vm1, %v1917_v37, %v1921_v17  ;;  %v2861_v31 = vshrl.u32 %v5303_v10, 16  ;;  %v2113_v8 = vsel %vm689_vm14, %v2111_v50, %v2112_v1  ;;  %v5945_v17 = vld [vmem:[#allocation14_spill] sm:$0xff]  ;;  %v5413_v1 = vld [vmem:[#allocation2 + $0x90] sm:$0xff]  }
 0x120   : > { %v2198_v46 = vsel %vm5943_vm0, %v3969_v14, %v2038_v16  ;;  %v2914_v16 = vor.u32 %v2913_v3, %v2909_v15  ;;  %v3840_v15 = vld [vmem:[#allocation2 + $0x78] sm:$0xf0] }
 0x121   : > { %v2866_v19 = vor.u32 %v2865_v58, %v2861_v31  ;;  %v2230_v43 = vsel %vm1577_vm9, %v2198_v46, %v5250_v21  ;;  %v4016_v21 = vor.u32 %v4015_v32, %v5305_v56  ;;  %v2606_v31 = vld [vmem:[#allocation2 + $0xc8] sm:$0x1]  ;;  %v2174_v32 = vsel %vm5949_vm3, %v5275_v54, %v5291_v49 }
 0x122   : > { %3586 = vmatmul.msk.bf16.gmra.mxu3 %vm2280_vm15, %v2228_v18  ;;  %3614 = vmatmul.msk.bf16.gmra.mxu1 %vm2280_vm15, %v1583_v0  ;;  %v5361_v35 = vpop.permute.xlu2 %3080  ;;  %v2916_v18 = vshll.u32 %v5349_v57, 16  ;;  %v1169_v0 = vunpack.c.l.b16 %v1041_v55  ;;  %v3052_v55 = vrot.slane %v5340_v48, 1 }
 0x123   : > { %2968 = vrot.lane.b32.xlu2 %v2907_v62, %s4183_s23  ;;  %v2951_v38 = vpop.permute.xlu1 %2950  ;;  %v1664_v62 = vld [vmem:[#allocation2 + $0x80] sm:$0x1]  ;;  %v2871_v25 = vsel %vm5944_vm13, %v2866_v19, %v2870_v33  ;;  %v3051_v59 = vrot.slane %v4016_v21, 1  ;;  %v3842_v19 = vor.u32 %v3841_v53, %v3840_v15  ;;  %vm5959_vm13 = vmmov %vm5949_vm3 }
 0x124   : > { %3096 = vrot.lane.b32.xlu1 %v3062_v22, %s4182_s18  ;;  %v3111_v24 = vsel %vm5942_vm8, %v5941_v12, %v2951_v38  ;;  %v2918_v42 = vrot.slane %v2916_v18, 1  ;;  %v5376_v13 = vpack.c.b16 %v1169_v0, %v1169_v0  ;;  %v1792_v22 = vunpack.c.l.b16 %v1664_v62  ;;  %v2602_v18 = vld [vmem:[#allocation2 + $0x98] sm:$0x1]  ;;  %v5403_v0 = vld [vmem:[#allocation2 + $0xc0] sm:$0xff]   ;;  %vm5956_vm8 = vmmov %vm5943_vm0 }
 0x125   : > { %v2734_v12 = vunpack.c.l.b16 %v2606_v31  ;;  %v3053_v46 = vsel %vm689_vm14, %v3051_v59, %v3052_v55  ;;  %v5447_v53 = vld [vmem:[#allocation2 + $0x9c] sm:$0xff]   ;;  %vm5957_vm0 = vmmov %vm5939_vm1 }
 0x126   : > { %2023 = vrot.lane.b32.xlu0 %v1922_v36, %s4183_s23  ;;  %v2919_v63 = vsel %vm5947_vm12, %v2914_v16, %v2918_v42  ;;  %v1308_v56 = vshll.u32 %v5376_v13, 16  ;;  %v3064_v36 = vrot.slane %v5349_v57, 1  ;;  %v1808_v38 = vpack.c.b16 %v1792_v22, %v1792_v22  ;;  %v3971_v42 = vld [vmem:[#allocation2 + $0x90] sm:$0xff]   ;;  %vm5961_vm12 = vmmov %vm5949_vm3 }
 0x127   : > { %v3079_v28 = vpop.permute.xlu0 %3078  ;;  %v1492_v50 = vrot.slane %v5376_v13, 1  ;;  %v5417_v49 = vpack.c.b16 %v2734_v12, %v2734_v12  ;;  %v1570_v13 = vsel %vm5951_vm5, %v3971_v42, %v5333_v2  ;;  %v2921_v22 = vshrl.u32 %v5403_v0, 16  ;;  %v5449_v12 = vld [vmem:[#allocation2 + $0x9c] sm:$0xf0] }
 0x128   : > { %v3143_v26 = vsel %vm1577_vm9, %v3111_v24, %v3079_v28  ;;  %v1305_v28 = vrot.slane %v1303_v51, 1  ;;  %v1310_v57 = vrot.slane %v1308_v56, 1  ;;  %v3065_v3 = vsel %vm689_vm14, %v3063_v11, %v3064_v36  ;;  %v5429_v51 = vld [vmem:[#allocation2 + $0x84] sm:$0xf0] }
 0x129   : > { %v1931_v48 = vshll.u32 %v1808_v38, 16  ;;  %v2115_v21 = vrot.slane %v1808_v38, 1  ;;  %v1170_v56 = vunpack.c.l.b16 %v1042_v60 }
 0x12a   : > { %3655 = vmatmul.msk.bf16.gmra.mxu2 %vm2280_vm15, %v3143_v26  ;;  %v5390_v4 = vpop.permute.xlu2 %1520  ;;  %v1306_v24 = vor.u32 %v1305_v28, %v1301_v29  ;;  %v3874_v29 = vld [vmem:[#allocation2 + $0x90] sm:$0xf0]  ;;  %v3875_v28 = vld [vmem:[#allocation2 + $0x90] sm:$0xe] }
 0x12b   : > { %1400 = vrot.lane.b32.xlu2 %v1299_v34, %s4183_s23  ;;  %v1391_v37 = vpop.permute.xlu1 %1390  ;;  %v5396_v34 = vld [vmem:[#allocation2 + $0x48] sm:$0xff]   ;;  %v1933_v16 = vrot.slane %v1931_v48, 1 }
 0x12c   : > { %1528 = vrot.lane.b32.xlu1 %v1490_v7, %s4182_s18  ;;  %v1552_v9 = vsel %vm5946_vm11, %v5945_v17, %v1391_v37  ;;  %v4019_v7 = vor.u32 %v4018_v20, %v5347_v61  ;;  %v2114_v37 = vrot.slane %v3842_v19, 1  ;;  %v2603_v19 = vld [vmem:[#allocation2 + $0xa4] sm:$0x1]  ;;  %vm5960_vm11 = vmmov %vm5957_vm0 }
 0x12d   : > { %v1934_v11 = vsel %vm5953_vm10, %v5298_v52, %v1933_v16  ;;  %vm5969_vm10 = vmmov %vm5957_vm0 }
 0x12e   : > { %2962 = vrot.lane.b32.xlu0 %v2871_v25, %s4183_s23  ;;  %v1491_v33 = vrot.slane %v4019_v7, 1  ;;  %v5427_v25 = vld [vmem:[#allocation2 + $0x84] sm:$0xff]   ;;  %v2116_v38 = vsel %vm689_vm14, %v2114_v37, %v2115_v21  ;;  %v3876_v7 = vor.u32 %v3875_v28, %v3874_v29 }
 0x12f   : > { %v1519_v6 = vpop.permute.xlu0 %1518 }
 0x130   : > { %v1585_v44 = vsel %vm1577_vm9, %v1552_v9, %v1519_v6  ;;  %v2730_v6 = vunpack.c.l.b16 %v2602_v18  ;;  %v1493_v17 = vsel %vm689_vm14, %v1491_v33, %v1492_v50 }
 0x132   : > { %3587 = vmatmul.msk.bf16.gmra.mxu3 %vm2280_vm15, %v2230_v43  ;;  %3615 = vmatmul.msk.bf16.gmra.mxu1 %vm2280_vm15, %v1585_v44  ;;  %v2923_v43 = vshll.u32 %v5403_v0, 16  ;;  %v2746_v2 = vpack.c.b16 %v2730_v6, %v2730_v6  ;;  %v2928_v44 = vshll.u32 %v5417_v49, 16  ;;  %v1938_v6 = vshll.u32 %v5427_v25, 16 }
 0x133   : > { %2151 = vrot.lane.b32.xlu2 %v2113_v8, %s4182_s18  ;;  %v2142_v14 = vpop.permute.xlu1 %2141  ;;  %v2875_v8 = vshll.u32 %v5413_v1, 16 }
 0x134   : > { %2970 = vrot.lane.b32.xlu1 %v2919_v63, %s4183_s23  ;;  %v2206_v26 = vsel %vm1577_vm9, %v2174_v32, %v2142_v14  ;;  %v2925_v63 = vrot.slane %v2923_v43, 1  ;;  %v2880_v55 = vshll.u32 %v2746_v2, 16  ;;  %v3880_v14 = vld [vmem:[#allocation2 + $0xc0] sm:$0xf0] }
 0x135   : > { %3575 = vmatmul.msk.bf16.gmra.mxu0 %vm2280_vm15, %v2206_v26  ;;  %v2877_v59 = vrot.slane %v2875_v8, 1  ;;  %v3055_v26 = vrot.slane %v2746_v2, 1  ;;  %v2731_v8 = vunpack.c.l.b16 %v2603_v19  ;;  %v5475_v2 = vld [vmem:[#allocation2 + $0xcc] sm:$0xf0] }
 0x136   : > { %3098 = vrot.lane.b32.xlu0 %v3065_v3, %s4182_s18  ;;  %v2926_v15 = vor.u32 %v2925_v63, %v2921_v22  ;;  %v2882_v32 = vrot.slane %v2880_v55, 1  ;;  %v1940_v22 = vrot.slane %v1938_v6, 1  ;;  %v2607_v55 = vld [vmem:[#allocation2 + $0xd4] sm:$0x1]  ;;  %v4027_v6 = vld [vmem:[#allocation2 + $0xcc] sm:$0xe] }
 0x137   : > { %v2953_v58 = vpop.permute.xlu0 %2952 }
 0x138   : > { %v3113_v47 = vsel %vm5948_vm4, %v5396_v34, %v2953_v58  ;;  %v1665_v58 = vld [vmem:[#allocation2 + $0x8c] sm:$0x1]  ;;  %vm5963_vm4 = vmmov %vm5949_vm3 }
 0x139   : > { %v3145_v61 = vsel %vm1577_vm9, %v3113_v47, %v5361_v35  ;;  %v1311_v35 = vsel %vm5950_vm6, %v1306_v24, %v1310_v57  ;;  %v1793_v24 = vunpack.c.l.b16 %v1665_v58  ;;  %v5452_v57 = vpack.c.b16 %v1170_v56, %v1170_v56  ;;  %v3811_v58 = vld [vmem:[#allocation2 + $0x78] sm:$0xf0]  ;;  %vm5964_vm3 = vmmov %vm5957_vm0 }
 0x13a   : > { %3656 = vmatmul.msk.bf16.gmra.mxu2 %vm2280_vm15, %v3145_v61  ;;  %v5425_v20 = vpop.permute.xlu2 %2954  ;;  %v3881_v61 = vld [vmem:[#allocation2 + $0xc0] sm:$0xe]  ;;  %vm5965_vm6 = vmmov %vm5963_vm4 }
 0x13b   : > { %3090 = vrot.lane.b32.xlu2 %v3053_v46, %s4182_s18  ;;  %v1537_v36 = vpop.permute.xlu1 %1536  ;;  %v3054_v46 = vrot.slane %v3876_v7, 1  ;;  %v5461_v50 = vpack.c.b16 %v1793_v24, %v1793_v24  ;;  %v1320_v43 = vshll.u32 %v5452_v57, 16  ;;  %vm5967_vm5 = vmmov %vm5963_vm4 }
 0x13c   : > { %1402 = vrot.lane.b32.xlu1 %v1311_v35, %s4183_s23  ;;  %v1603_v47 = vsel %vm1577_vm9, %v1570_v13, %v1537_v36  ;;  %v4021_v35 = vld [vmem:[#allocation2 + $0x84] sm:$0xe]  ;;  %v3882_v13 = vor.u32 %v3881_v61, %v3880_v14  ;;  %v5481_v36 = vpack.c.b16 %v2731_v8, %v2731_v8  ;;  %v1495_v8 = vrot.slane %v5452_v57, 1 }
 0x13d   : > { %v3056_v37 = vsel %vm689_vm14, %v3054_v46, %v3055_v26  ;;  %v1943_v63 = vshll.u32 %v5461_v50, 16  ;;  %v5962_v57 = vld [vmem:[#allocation19_spill] sm:$0xff] }
 0x13e   : > { %1530 = vrot.lane.b32.xlu0 %v1493_v17, %s4182_s18  ;;  %v1936_v17 = vshrl.u32 %v5427_v25, 16  ;;  %v3066_v56 = vrot.slane %v3882_v13, 1  ;;  %v2892_v46 = vshll.u32 %v5481_v36, 16 }
 0x13f   : > { %v1393_v62 = vpop.permute.xlu0 %1392 }
 0x140   : > { %v1554_v9 = vsel %vm5952_vm7, %v5275_v54, %v1393_v62  ;;  %v2873_v54 = vshrl.u32 %v5413_v1, 16  ;;  %v5955_v62 = vld [vmem:[#allocation16_spill] sm:$0xff]  ;;  %vm5968_vm7 = vmmov %vm5957_vm0 }
 0x141   : > { %v1587_v31 = vsel %vm1577_vm9, %v1554_v9, %v5390_v4  ;;  %v2930_v4 = vrot.slane %v2928_v44, 1  ;;  %v5473_v9 = vld [vmem:[#allocation2 + $0xcc] sm:$0xff]   ;;  %v1322_v44 = vrot.slane %v1320_v43, 1  ;;  %v5499_v43 = vld [vmem:[#allocation2 + $0x84] sm:$0xff]  }
 0x142   : > { %3624 = vmatmul.msk.bf16.vlgmr.msrb.gmra.mxu3 %vm2280_vm15, %v1603_v47  ;;  %3616 = vmatmul.msk.bf16.gmra.mxu1 %vm2280_vm15, %v1587_v31  ;;  %v5457_v48 = vor.u32 %v2877_v59, %v2873_v54  ;;  %v2887_v31 = vshll.u32 %v5447_v53, 16  ;;  %v3812_v54 = vld [vmem:[#allocation2 + $0x78] sm:$0xe]  ;;  %v4022_v59 = vor.u32 %v4021_v35, %v5429_v51  ;;  %v1941_v47 = vor.u32 %v1940_v22, %v1936_v17  ;;  %v5501_v35 = vld [vmem:[#allocation2 + $0x84] sm:$0xf0] }
 0x143   : > { %2025 = vrot.lane.b32.xlu2 %v1934_v11, %s4183_s23  ;;  %v2931_v33 = vsel %vm5939_vm1, %v2926_v15, %v2930_v4  ;;  %v2016_v16 = vpop.permute.xlu1 %2015  ;;  %v3067_v11 = vrot.slane %v5417_v49, 1  ;;  %v1323_v7 = vsel %vm5957_vm0, %v5298_v52, %v1322_v44  ;;  %v4024_v15 = vld [vmem:[#allocation2 + $0x9c] sm:$0xe]  ;;  %v2885_v49 = vshrl.u32 %v5447_v53, 16  ;;  %v1043_v44 = vld [vmem:[#allocation2 + $0x8c] sm:$0x1]  ;;  %vm5970_vm1 = vmmov %vm5957_vm0 }
 0x144   : > { %v5455_v18 = vpop.permute.xlu2 %1394  ;;  %2153 = vrot.lane.b32.xlu1 %v2116_v38, %s4182_s18  ;;  %v2883_v42 = vsel %vm5954_vm2, %v5457_v48, %v2882_v32  ;;  %v2176_v60 = vsel %vm5956_vm8, %v5955_v62, %v2016_v16  ;;  %v1945_v38 = vrot.slane %v1943_v63, 1  ;;  %v5958_v32 = vld [vmem:[#allocation17_spill] sm:$0xff]  ;;  %v2889_v61 = vrot.slane %v2887_v31, 1  ;;  %v1666_v62 = vld [vmem:[#allocation2 + $0x98] sm:$0x1]  ;;  %vm5971_vm2 = vmmov %vm5963_vm4 }
 0x145   : > { %v3068_v24 = vsel %vm689_vm14, %v3066_v56, %v3067_v11  ;;  %v2735_v51 = vunpack.c.l.b16 %v2607_v55  ;;  %v2117_v19 = vrot.slane %v4022_v59, 1  ;;  %v2118_v52 = vrot.slane %v5461_v50, 1  ;;  %vm5972_vm8 = vmmov %vm5971_vm2 }
 0x146   : > { %2972 = vrot.lane.b32.xlu0 %v2931_v33, %s4183_s23  ;;  %v1946_v33 = vsel %vm5960_vm11, %v1941_v47, %v1945_v38  ;;  %v2935_v16 = vshll.u32 %v5473_v9, 16  ;;  %v2890_v50 = vor.u32 %v2889_v61, %v2885_v49  ;;  %v4025_v63 = vor.u32 %v4024_v15, %v5449_v12  ;;  %v5527_v61 = vld [vmem:[#allocation2 + $0xa8] sm:$0xff]   ;;  %vm5974_vm0 = vmmov %vm5971_vm2 }
 0x147   : > { %v2144_v3 = vpop.permute.xlu0 %2143  ;;  %v2751_v17 = vpack.c.b16 %v2735_v51, %v2735_v51  ;;  %v2119_v22 = vsel %vm689_vm14, %v2117_v19, %v2118_v52  ;;  %v2933_v56 = vshrl.u32 %v5473_v9, 16  ;;  %v4028_v38 = vor.u32 %v4027_v6, %v5475_v2  ;;  %vm5976_vm11 = vmmov %vm5974_vm0 }
 0x148   : > { %v2208_v21 = vsel %vm1577_vm9, %v2176_v60, %v2144_v3  ;;  %v3813_v3 = vor.u32 %v3812_v54, %v3811_v58  ;;  %v2937_v11 = vrot.slane %v2935_v16, 1  ;;  %v3115_v58 = vsel %vm5963_vm4, %v5962_v57, %v5425_v20  ;;  %vm5978_vm4 = vmmov %vm5974_vm0 }
 0x149   : > { %3576 = vmatmul.msk.bf16.gmra.mxu0 %vm2280_vm15, %v2208_v21  ;;  %v2940_v31 = vshll.u32 %v2751_v17, 16  ;;  %v1171_v15 = vunpack.c.l.b16 %v1043_v44  ;;  %v3057_v20 = vrot.slane %v4025_v63, 1  ;;  %v3069_v51 = vrot.slane %v4028_v38, 1  ;;  %v3843_v44 = vld [vmem:[#allocation2 + $0x90] sm:$0xf0] }
 0x14a   : > { %v1494_v60 = vrot.slane %v3813_v3, 1  ;;  %v4030_v3 = vld [vmem:[#allocation2 + $0x84] sm:$0xe] }
 0x14b   : > { %2964 = vrot.lane.b32.xlu2 %v2883_v42, %s4183_s23  ;;  %v1411_v4 = vpop.permute.xlu1 %1410  ;;  %v2942_v49 = vrot.slane %v2940_v31, 1  ;;  %v1187_v19 = vpack.c.b16 %v1171_v15, %v1171_v15 }
 0x14c   : > { %v2146_v28 = vpop.permute.xlu2 %2145  ;;  %3092 = vrot.lane.b32.xlu1 %v3056_v37, %s4182_s18  ;;  %v1572_v14 = vsel %vm5959_vm13, %v5958_v32, %v1411_v4  ;;  %v2894_v37 = vrot.slane %v2892_v46, 1  ;;  %v1496_v55 = vsel %vm689_vm14, %v1494_v60, %v1495_v8  ;;  %vm5975_vm13 = vmmov %vm5974_vm0 }
 0x14d   : > { %v1332_v8 = vshll.u32 %v1187_v19, 16 }
 0x14e   : > { %1404 = vrot.lane.b32.xlu0 %v1323_v7, %s4183_s23  ;;  %v2895_v12 = vsel %vm5964_vm3, %v2890_v50, %v2894_v37  ;;  %v3058_v7 = vrot.slane %v5481_v36, 1  ;;  %v5966_v36 = vld [vmem:[#allocation18_spill] sm:$0xff]  ;;  %v4031_v37 = vor.u32 %v4030_v3, %v5501_v35  ;;  %vm5979_vm3 = vmmov %vm5974_vm0 }
 0x14f   : > { %v1539_v29 = vpop.permute.xlu0 %1538  ;;  %v1556_v46 = vsel %vm5967_vm5, %v5966_v36, %v5455_v18  ;;  %v5570_v36 = vld [vmem:[%s5805_s2] ss:$0 sm:$0xff]  ;;  %vm5981_vm5 = vmmov %vm5974_vm0 }
 0x150   : > { %v1605_v26 = vsel %vm1577_vm9, %v1572_v14, %v1539_v29  ;;  %v1794_v29 = vunpack.c.l.b16 %v1666_v62  ;;  %v1327_v14 = vshll.u32 %v5499_v43, 16  ;;  %v3059_v52 = vsel %vm689_vm14, %v3057_v20, %v3058_v7 }
 0x151   : > { %v1325_v62 = vshrl.u32 %v5499_v43, 16 }
 0x152   : > { %3625 = vmatmul.msk.bf16.gmra.mxu3 %vm2280_vm15, %v1605_v26  ;;  %v1810_v4 = vpack.c.b16 %v1794_v29, %v1794_v29  ;;  %v3070_v26 = vrot.slane %v2751_v17, 1  ;;  %v1329_v60 = vrot.slane %v1327_v14, 1  ;;  %v3844_v29 = vld [vmem:[#allocation2 + $0x90] sm:$0xe] }
 0x153   : > { %3100 = vrot.lane.b32.xlu2 %v3068_v24, %s4182_s18  ;;  %v3083_v54 = vpop.permute.xlu1 %3082  ;;  %v3845_v35 = vor.u32 %v3844_v29, %v3843_v44 }
 0x154   : > { %v1541_v13 = vpop.permute.xlu2 %1540  ;;  %2027 = vrot.lane.b32.xlu1 %v1946_v33, %s4183_s23  ;;  %v3147_v47 = vsel %vm1577_vm9, %v3115_v58, %v3083_v54  ;;  %v1955_v33 = vshll.u32 %v1810_v4, 16  ;;  %v3071_v18 = vsel %vm689_vm14, %v3069_v51, %v3070_v26  ;;  %v1330_v17 = vor.u32 %v1329_v60, %v1325_v62  ;;  %v5550_v54 = vld [vmem:[#allocation2 + $0x60] sm:$0xff]  }
 0x155   : > { %3657 = vmatmul.msk.bf16.gmra.mxu2 %vm2280_vm15, %v3147_v47  ;;  %v2121_v38 = vrot.slane %v1810_v4, 1 }
 0x156   : > { %2155 = vrot.lane.b32.xlu0 %v2119_v22, %s4182_s18  ;;  %v1334_v22 = vrot.slane %v1332_v8, 1 }
 0x157   : > { %v2018_v42 = vpop.permute.xlu0 %2017 }
 0x158   : > { %v2178_v21 = vsel %vm5961_vm12, %v5396_v34, %v2018_v42  ;;  %v1335_v58 = vsel %vm5970_vm1, %v1330_v17, %v1334_v22  ;;  %vm5977_vm12 = vmmov %vm5974_vm0 }
 0x159   : > { %v2210_v59 = vsel %vm1577_vm9, %v2178_v21, %v2146_v28  ;;  %v2938_v28 = vor.u32 %v2937_v11, %v2933_v56  ;;  %v1957_v21 = vrot.slane %v1955_v33, 1  ;;  %v1497_v56 = vrot.slane %v4031_v37, 1  ;;  %vm5984_vm1 = vmmov %vm5974_vm0 }
 0x15a   : > { %3577 = vmatmul.msk.bf16.gmra.mxu0 %vm2280_vm15, %v2210_v59  ;;  %v1498_v11 = vrot.slane %v1187_v19, 1 }
 0x15b   : > { %1532 = vrot.lane.b32.xlu2 %v1496_v55, %s4182_s18  ;;  %v2943_v6 = vsel %vm5968_vm7, %v2938_v28, %v2942_v49  ;;  %v1958_v31 = vsel %vm5969_vm10, %v5457_v48, %v1957_v21  ;;  %vm5982_vm7 = vmmov %vm5974_vm0 }
 0x15c   : > { %v5524_v32 = vpop.permute.xlu2 %2019  ;;  %2966 = vrot.lane.b32.xlu1 %v2895_v12, %s4183_s23  ;;  %v1499_v47 = vsel %vm689_vm14, %v1497_v56, %v1498_v11  ;;  %v2120_v12 = vrot.slane %v3845_v35, 1  ;;  %vm5983_vm10 = vmmov %vm5974_vm0 }
 0x15d   : > { %v1523_v16 = vpop.permute.xlu1 %1522 }
 0x15e   : > { %v1589_v50 = vsel %vm1577_vm9, %v1556_v46, %v1523_v16  ;;  %3094 = vrot.lane.b32.xlu0 %v3059_v52, %s4182_s18  ;;  %v2122_v20 = vsel %vm689_vm14, %v2120_v12, %v2121_v38  ;;  %vm5973_vm14 = vmmov %vm5971_vm2 }
 0x15f   : > { %v1413_v24 = vpop.permute.xlu0 %1412  ;;  %3617 = vmatmul.msk.bf16.gmra.mxu1 %vm2280_vm15, %v1589_v50 }
 0x160   : > { %v1574_v2 = vsel %vm5965_vm6, %v5527_v61, %v1413_v24  ;;  %v2479_v24 = vpop.f32.mrf.mxu1  ;;  %vm5980_vm6 = vmmov %vm5974_vm0 }
 0x161   : > { %v1607_v42 = vsel %vm1577_vm9, %v1574_v2, %v1541_v13 }
 0x162   : > { %3626 = vmatmul.msk.bf16.gmra.mxu3 %vm2280_vm15, %v1607_v42 }
 0x163   : > { %2974 = vrot.lane.b32.xlu2 %v2943_v6, %s4183_s23 }
 0x164   : > { %v1415_v13 = vpop.permute.xlu2 %1414  ;;  %3102 = vrot.lane.b32.xlu1 %v3071_v18, %s4182_s18 }
 0x165   : > { %v2957_v57 = vpop.permute.xlu1 %2956  ;;  %v1576_v60 = vsel %vm5975_vm13, %v5166_v27, %v1415_v13  ;;  %vm5988_vm13 = vmmov %vm5974_vm0 }
 0x166   : > { %v3117_v59 = vsel %vm5971_vm2, %v5550_v54, %v2957_v57  ;;  %2029 = vrot.lane.b32.xlu0 %v1958_v31, %s4183_s23  ;;  %vm5985_vm2 = vmmov %vm5974_vm0 }
 0x167   : > { %v3085_v63 = vpop.permute.xlu0 %3084 }
 0x168   : > { %v3149_v55 = vsel %vm1577_vm9, %v3117_v59, %v3085_v63  ;;  %v2481_v6 = vpop.f32.mrf.mxu1 }
 0x169   : > { %3658 = vmatmul.msk.bf16.gmra.mxu2 %vm2280_vm15, %v3149_v55 }
 0x16b   : > { %1406 = vrot.lane.b32.xlu2 %v1335_v58, %s4183_s23  ;;  %v3258_v14 = vpop.f32.mrf.mxu2 }
 0x16c   : > { %1534 = vrot.lane.b32.xlu1 %v1499_v47, %s4182_s18 }
 0x16d   : > { %v3087_v48 = vpop.permute.xlu2 %3086  ;;  %v1397_v15 = vpop.permute.xlu1 %1396 }
 0x16e   : > { %v1558_v28 = vsel %vm5972_vm8, %v5396_v34, %v1397_v15  ;;  %v2180_v34 = vsel %vm5973_vm14, %v5133_v5, %v5524_v32  ;;  %vm5986_vm8 = vmmov %vm5974_vm0 }
 0x16f   : > { %v1525_v7 = vpop.permute.xlu0 %1524  ;;  %vm5987_vm14 = vmmov %vm5974_vm0 }
 0x170   : > { %v1591_v49 = vsel %vm1577_vm9, %v1558_v28, %v1525_v7 }
 0x171   : > { %3618 = vmatmul.msk.bf16.gmra.mxu1 %vm2280_vm15, %v1591_v49 }
 0x173   : > { %2157 = vrot.lane.b32.xlu2 %v2122_v20, %s4182_s18  ;;  %v3260_v62 = vpop.f32.mrf.mxu2 }
 0x175   : > { %v1527_v3 = vpop.permute.xlu2 %1526  ;;  %v2148_v46 = vpop.permute.xlu1 %2147 }
 0x176   : > { %v2212_v26 = vsel %vm1577_vm9, %v2180_v34, %v2148_v46 }
 0x177   : > { %3578 = vmatmul.msk.bf16.gmra.mxu0 %vm2280_vm15, %v2212_v26 }
 0x178   : > { %v2959_v52 = vpop.permute.xlu0 %2958 }
 0x179   : > { %v3119_v16 = vsel %vm5974_vm0, %v5208_v40, %v2959_v52 }
 0x17a   : > { %v3151_v32 = vsel %vm1577_vm9, %v3119_v16, %v3087_v48 }
 0x17b   : > { %3659 = vmatmul.msk.bf16.gmra.mxu2 %vm2280_vm15, %v3151_v32 }
 0x17c   : > { %v2322_v2 = vpop.f32.mrf.mxu0 }
 0x17d   : > { %v2480_v4 = vadd.f32 %v2479_v24, %v2322_v2  ;;  %v2969_v33 = vpop.permute.xlu2 %2968  ;;  %v1543_v8 = vpop.permute.xlu1 %1542 }
 0x17e   : > { %v1609_v18 = vsel %vm1577_vm9, %v1576_v60, %v1543_v8 }
 0x17f   : > { %v3338_v51 = vadd.f32 %v3258_v14, %v2480_v4  ;;  %3627 = vmatmul.msk.bf16.gmra.mxu3 %vm2280_vm15, %v1609_v18 }
 0x180   : > { %v1399_v21 = vpop.permute.xlu0 %1398 }
 0x181   : > { %v3374_v19 = vadd.f32 %v5570_v36, %v3338_v51  ;;  %v1560_v22 = vsel %vm5976_vm11, %v5181_v45, %v1399_v21  ;;  %vm5989_vm11 = vmmov %vm5974_vm0 }
 0x182   : > { %v1593_v44 = vsel %vm1577_vm9, %v1560_v22, %v1527_v3  ;;  %v3129_v3 = vsel %vm5979_vm3, %v5527_v61, %v2969_v33  ;;  %vm5992_vm3 = vmmov %vm5974_vm0 }
 0x183   : > { %3406 = vst [vmem:[%s5578_s21] sm:$0xff] %v3374_v19  ;;  %3619 = vmatmul.msk.bf16.gmra.mxu1 %vm2280_vm15, %v1593_v44 }
 0x184   : > { %v2324_v5 = vpop.f32.mrf.mxu0 }
 0x185   : > { %v2482_v42 = vadd.f32 %v2481_v6, %v2324_v5  ;;  %v5588_v37 = vpop.f32.mrf.mxu3  ;;  %v1401_v17 = vpop.permute.xlu2 %1400 }
 0x186   : > { %v2022_v27 = vpop.permute.xlu1 %2021  ;;  %v1562_v16 = vsel %vm5981_vm5, %v5550_v54, %v1401_v17 }
 0x187   : > { %v3339_v50 = vadd.f32 %v3260_v62, %v2482_v42  ;;  %v2182_v56 = vsel %vm5977_vm12, %v5550_v54, %v2022_v27  ;;  %vm5990_vm12 = vmmov %vm5974_vm0 }
 0x188   : > { %v2150_v11 = vpop.permute.xlu0 %2149 }
 0x189   : > { %v3375_v40 = vadd.f32 %v5570_v36, %v3339_v50  ;;  %v2214_v57 = vsel %vm1577_vm9, %v2182_v56, %v2150_v11 }
 0x18a   : > { %3579 = vmatmul.msk.bf16.gmra.mxu0 %vm2280_vm15, %v2214_v57 }
 0x18b   : > { %3407 = vst [vmem:[%s5578_s21 + $0x8] sm:$0xff] %v3375_v40 }
 0x18c   : > { %v2327_v63 = vpop.f32.mrf.mxu0 }
 0x18d   : > { %v5597_v13 = vpop.f32.mrf.mxu3  ;;  %v3263_v29 = vpop.f32.mrf.mxu2 }
 0x18e   : > { %v2152_v35 = vpop.permute.xlu2 %2151  ;;  %v2961_v55 = vpop.permute.xlu1 %2960 }
 0x18f   : > { %v2484_v31 = vpop.f32.mrf.mxu1  ;;  %v3121_v38 = vsel %vm5978_vm4, %v5255_v41, %v2961_v55  ;;  %v3974_v55 = vld [vmem:[#allocation2 + $0x78] sm:$0xff]   ;;  %vm5991_vm4 = vmmov %vm5974_vm0 }
 0x190   : > { %v2485_v58 = vadd.f32 %v2484_v31, %v2327_v63  ;;  %v3089_v7 = vpop.permute.xlu0 %3088 }
 0x191   : > { %v3153_v20 = vsel %vm1577_vm9, %v3121_v38, %v3089_v7 }
 0x192   : > { %v3340_v59 = vadd.f32 %v3263_v29, %v2485_v58  ;;  %3660 = vmatmul.msk.bf16.gmra.mxu2 %vm2280_vm15, %v3153_v20 }
 0x194   : > { %v2329_v45 = vpop.f32.mrf.mxu0  ;;  %v3376_v12 = vadd.f32 %v5570_v36, %v3340_v59 }
 0x195   : > { %v5603_v47 = vpop.f32.mrf.mxu3  ;;  %v3265_v48 = vpop.f32.mrf.mxu2 }
 0x196   : > { %3408 = vst [vmem:[%s5578_s21 + $0x10] sm:$0xff] %v3376_v12  ;;  %v3091_v49 = vpop.permute.xlu2 %3090  ;;  %v3097_v14 = vpop.permute.xlu1 %3096 }
 0x197   : > { %v2486_v15 = vpop.f32.mrf.mxu1  ;;  %v3161_v4 = vsel %vm1577_vm9, %v3129_v3, %v3097_v14 }
 0x198   : > { %v2487_v28 = vadd.f32 %v2486_v15, %v2329_v45  ;;  %3664 = vmatmul.msk.bf16.vlgmr.msra.gmra.mxu3 %vm2280_vm15, %v3161_v4  ;;  %v2024_v51 = vpop.permute.xlu0 %2023 }
 0x199   : > { %v2184_v19 = vsel %vm5980_vm6, %v5269_v30, %v2024_v51 }
 0x19a   : > { %v3341_v24 = vadd.f32 %v3265_v48, %v2487_v28  ;;  %v2216_v61 = vsel %vm1577_vm9, %v2184_v19, %v2152_v35 }
 0x19b   : > { %3580 = vmatmul.msk.bf16.gmra.mxu0 %vm2280_vm15, %v2216_v61 }
 0x19c   : > { %v2332_v2 = vpop.f32.mrf.mxu0  ;;  %v3377_v41 = vadd.f32 %v5570_v36, %v3341_v24 }
 0x19d   : > { %v5614_v34 = vpop.f32.mrf.mxu3  ;;  %v3268_v46 = vpop.f32.mrf.mxu2 }
 0x19e   : > { %3409 = vst [vmem:[%s5578_s21 + $0x18] sm:$0xff] %v3377_v41  ;;  %v2026_v6 = vpop.permute.xlu2 %2025  ;;  %v1529_v5 = vpop.permute.xlu1 %1528 }
 0x19f   : > { %v2489_v26 = vpop.f32.mrf.mxu1  ;;  %v1595_v32 = vsel %vm1577_vm9, %v1562_v16, %v1529_v5  ;;  %v2186_v48 = vsel %vm5985_vm2, %v3974_v55, %v2026_v6 }
 0x1a0   : > { %v2490_v52 = vadd.f32 %v2489_v26, %v2332_v2  ;;  %3620 = vmatmul.msk.bf16.gmra.mxu1 %vm2280_vm15, %v1595_v32  ;;  %v2963_v60 = vpop.permute.xlu0 %2962 }
 0x1a1   : > { %v3123_v50 = vsel %vm5982_vm7, %v5303_v10, %v2963_v60 }
 0x1a2   : > { %v3342_v33 = vadd.f32 %v3268_v46, %v2490_v52  ;;  %v3155_v54 = vsel %vm1577_vm9, %v3123_v50, %v3091_v49 }
 0x1a3   : > { %3661 = vmatmul.msk.bf16.gmra.mxu2 %vm2280_vm15, %v3155_v54 }
 0x1a4   : > { %v3378_v62 = vadd.f32 %v5570_v36, %v3342_v33  ;;  %v2334_v30 = vpop.f32.mrf.mxu0 }
 0x1a5   : > { %v5626_v42 = vpop.f32.mrf.mxu3  ;;  %v3270_v40 = vpop.f32.mrf.mxu2 }
 0x1a6   : > { %3410 = vst [vmem:[%s5578_s21 + $0x20] sm:$0xff] %v3378_v62  ;;  %v2971_v17 = vpop.permute.xlu1 %2970  ;;  %v2965_v44 = vpop.permute.xlu2 %2964 }
 0x1a7   : > { %v2491_v8 = vpop.f32.mrf.mxu1  ;;  %v3131_v27 = vsel %vm5983_vm10, %v5318_v39, %v2971_v17  ;;  %v3125_v41 = vsel %vm5987_vm14, %v5413_v1, %v2965_v44 }
 0x1a8   : > { %v2492_v18 = vadd.f32 %v2491_v8, %v2334_v30  ;;  %v3099_v29 = vpop.permute.xlu0 %3098 }
 0x1a9   : > { %v3163_v10 = vsel %vm1577_vm9, %v3131_v27, %v3099_v29 }
 0x1aa   : > { %v3343_v21 = vadd.f32 %v3270_v40, %v2492_v18  ;;  %3665 = vmatmul.msk.bf16.gmra.mxu3 %vm2280_vm15, %v3163_v10 }
 0x1ac   : > { %v3379_v63 = vadd.f32 %v5570_v36, %v3343_v21 }
 0x1ad   : > { %v5635_v22 = vpop.f32.mrf.mxu3  ;;  %v3273_v57 = vpop.f32.mrf.mxu2 }
 0x1ae   : > { %3411 = vst [vmem:[%s5578_s21 + $0x28] sm:$0xff] %v3379_v63  ;;  %v1403_v56 = vpop.permute.xlu1 %1402  ;;  %v3101_v58 = vpop.permute.xlu2 %3100 }
 0x1af   : > { %v2494_v11 = vpop.f32.mrf.mxu1  ;;  %v1564_v35 = vsel %vm5984_vm1, %v5345_v23, %v1403_v56 }
 0x1b0   : > { %v1531_v45 = vpop.permute.xlu0 %1530 }
 0x1b1   : > { %v1597_v59 = vsel %vm1577_vm9, %v1564_v35, %v1531_v45 }
 0x1b2   : > { %3621 = vmatmul.msk.bf16.gmra.mxu1 %vm2280_vm15, %v1597_v59  ;;  %v2337_v39 = vpop.f32.mrf.mxu0 }
 0x1b3   : > { %v2495_v38 = vadd.f32 %v2494_v11, %v2337_v39 }
 0x1b5   : > { %v5643_v31 = vpop.f32.mrf.mxu3  ;;  %v3344_v15 = vadd.f32 %v3273_v57, %v2495_v38  ;;  %v3275_v24 = vpop.f32.mrf.mxu2 }
 0x1b6   : > { %v2154_v12 = vpop.permute.xlu1 %2153  ;;  %v1533_v14 = vpop.permute.xlu2 %1532 }
 0x1b7   : > { %v2218_v7 = vsel %vm1577_vm9, %v2186_v48, %v2154_v12  ;;  %v2496_v20 = vpop.f32.mrf.mxu1  ;;  %v3380_v23 = vadd.f32 %v5570_v36, %v3344_v15 }
 0x1b8   : > { %3581 = vmatmul.msk.bf16.gmra.mxu0 %vm2280_vm15, %v2218_v7  ;;  %v2973_v49 = vpop.permute.xlu0 %2972 }
 0x1b9   : > { %v3133_v3 = vsel %vm5986_vm8, %v5403_v0, %v2973_v49  ;;  %3412 = vst [vmem:[%s5578_s21 + $0x30] sm:$0xff] %v3380_v23 }
 0x1ba   : > { %v3165_v2 = vsel %vm1577_vm9, %v3133_v3, %v3101_v58  ;;  %v2339_v4 = vpop.f32.mrf.mxu0 }
 0x1bb   : > { %3666 = vmatmul.msk.bf16.gmra.mxu3 %vm2280_vm15, %v3165_v2  ;;  %v2497_v51 = vadd.f32 %v2496_v20, %v2339_v4 }
 0x1bd   : > { %v5652_v28 = vpop.f32.mrf.mxu3  ;;  %v3345_v19 = vadd.f32 %v3275_v24, %v2497_v51  ;;  %v3278_v5 = vpop.f32.mrf.mxu2 }
 0x1be   : > { %v3093_v46 = vpop.permute.xlu1 %3092  ;;  %v2975_v32 = vpop.permute.xlu2 %2974 }
 0x1bf   : > { %v3157_v26 = vsel %vm1577_vm9, %v3125_v41, %v3093_v46  ;;  %v3381_v0 = vadd.f32 %v5570_v36, %v3345_v19  ;;  %v2499_v33 = vpop.f32.mrf.mxu1  ;;  %v3135_v59 = vsel %vm5990_vm12, %v5473_v9, %v2975_v32 }
 0x1c0   : > { %3662 = vmatmul.msk.bf16.gmra.mxu2 %vm2280_vm15, %v3157_v26  ;;  %v1405_v52 = vpop.permute.xlu0 %1404 }
 0x1c1   : > { %v1566_v61 = vsel %vm5974_vm0, %v3974_v55, %v1405_v52  ;;  %3413 = vst [vmem:[%s5578_s21 + $0x38] sm:$0xff] %v3381_v0 }
 0x1c2   : > { %v1599_v16 = vsel %vm1577_vm9, %v1566_v61, %v1533_v14 }
 0x1c3   : > { %3622 = vmatmul.msk.bf16.gmra.mxu1 %vm2280_vm15, %v1599_v16 }
 0x1c5   : > { %v5666_v6 = vpop.f32.mrf.mxu3  ;;  %v3280_v10 = vpop.f32.mrf.mxu2 }
 0x1c6   : > { %v2028_v62 = vpop.permute.xlu1 %2027  ;;  %v2342_v30 = vpop.f32.mrf.mxu0 }
 0x1c7   : > { %v2500_v60 = vadd.f32 %v2499_v33, %v2342_v30  ;;  %v2188_v50 = vsel %vm5988_vm13, %v5427_v25, %v2028_v62  ;;  %v2501_v17 = vpop.f32.mrf.mxu1  ;;  %v1407_v29 = vpop.permute.xlu2 %1406 }
 0x1c8   : > { %v2156_v18 = vpop.permute.xlu0 %2155  ;;  %v1568_v23 = vsel %vm5992_vm3, %v5499_v43, %v1407_v29 }
 0x1c9   : > { %v3346_v8 = vadd.f32 %v3278_v5, %v2500_v60  ;;  %v2220_v40 = vsel %vm1577_vm9, %v2188_v50, %v2156_v18 }
 0x1ca   : > { %3582 = vmatmul.msk.bf16.gmra.mxu0 %vm2280_vm15, %v2220_v40 }
 0x1cb   : > { %v3382_v54 = vadd.f32 %v5570_v36, %v3346_v8 }
 0x1cd   : > { %v5675_v21 = vpop.f32.mrf.mxu3  ;;  %3414 = vst [vmem:[%s5578_s21 + $0x40] sm:$0xff] %v3382_v54 }
 0x1ce   : > { %v2967_v63 = vpop.permute.xlu1 %2966  ;;  %v2344_v44 = vpop.f32.mrf.mxu0 }
 0x1cf   : > { %v2502_v27 = vadd.f32 %v2501_v17, %v2344_v44  ;;  %v3127_v25 = vsel %vm5989_vm11, %v5447_v53, %v2967_v63  ;;  %v2158_v48 = vpop.permute.xlu2 %2157 }
 0x1d0   : > { %v3095_v11 = vpop.permute.xlu0 %3094 }
 0x1d1   : > { %v3347_v56 = vadd.f32 %v3280_v10, %v2502_v27  ;;  %v3159_v58 = vsel %vm1577_vm9, %v3127_v25, %v3095_v11 }
 0x1d2   : > { %3663 = vmatmul.msk.bf16.gmra.mxu2 %vm2280_vm15, %v3159_v58  ;;  %v2540_v58 = vadd.f32 %v5666_v6, %v5588_v37 }
 0x1d3   : > { %v3383_v57 = vadd.f32 %v5570_v36, %v3347_v56 }
 0x1d5   : > { %v2544_v35 = vpop.f32.mrf.mxu3  ;;  %3415 = vst [vmem:[%s5578_s21 + $0x48] sm:$0xff] %v3383_v57 }
 0x1d6   : > { %v5686_v45 = vadd.f32 %v2544_v35, %v5603_v47  ;;  %v3103_v39 = vpop.permute.xlu1 %3102 }
 0x1d7   : > { %v3167_v55 = vsel %vm1577_vm9, %v3135_v59, %v3103_v39  ;;  %v2347_v53 = vpop.f32.mrf.mxu0 }
 0x1d8   : > { %3667 = vmatmul.msk.bf16.gmra.mxu3 %vm2280_vm15, %v3167_v55  ;;  %v2030_v12 = vpop.permute.xlu0 %2029  ;;  %v3283_v47 = vpop.f32.mrf.mxu2 }
 0x1d9   : > { %v2190_v38 = vsel %vm5991_vm4, %v5413_v1, %v2030_v12 }
 0x1da   : > { %v2222_v7 = vsel %vm1577_vm9, %v2190_v38, %v2158_v48 }
 0x1db   : > { %3583 = vmatmul.msk.bf16.gmra.mxu0 %vm2280_vm15, %v2222_v7  ;;  %v2542_v7 = vadd.f32 %v5675_v21, %v5597_v13 }
 0x1dc   : > { %v2504_v20 = vpop.f32.mrf.mxu1 }
 0x1dd   : > { %v2546_v15 = vpop.f32.mrf.mxu3  ;;  %v2505_v24 = vadd.f32 %v2504_v20, %v2347_v53 }
 0x1de   : > { %v5697_v9 = vadd.f32 %v2546_v15, %v5614_v34  ;;  %v1535_v49 = vpop.permute.xlu1 %1534 }
 0x1df   : > { %v1601_v3 = vsel %vm1577_vm9, %v1568_v23, %v1535_v49  ;;  %v3348_v14 = vadd.f32 %v3283_v47, %v2505_v24  ;;  %v2349_v2 = vpop.f32.mrf.mxu0 }
 0x1e0   : > { %3623 = vmatmul.msk.bf16.gmra.mxu1 %vm2280_vm15, %v1601_v3  ;;  %v3285_v43 = vpop.f32.mrf.mxu2 }
 0x1e1   : > { %v3384_v1 = vadd.f32 %v5570_v36, %v3348_v14 }
 0x1e3   : > { %3416 = vst [vmem:[%s5578_s21 + $0x50] sm:$0xff] %v3384_v1 }
 0x1e4   : > { %v2506_v41 = vpop.f32.mrf.mxu1 }
 0x1e5   : > { %v2549_v4 = vpop.f32.mrf.mxu3  ;;  %v2507_v46 = vadd.f32 %v2506_v41, %v2349_v2 }
 0x1e6   : > { %v5706_v34 = vadd.f32 %v2549_v4, %v5626_v42 }
 0x1e7   : > { %v3349_v51 = vadd.f32 %v3285_v43, %v2507_v46 }
 0x1e9   : > { %v3385_v26 = vadd.f32 %v5570_v36, %v3349_v51 }
 0x1eb   : > { %3417 = vst [vmem:[%s5578_s21 + $0x58] sm:$0xff] %v3385_v26 }
 0x1ec   : > { %v3288_v61 = vpop.f32.mrf.mxu2 }
 0x1ed   : > { %v2551_v19 = vpop.f32.mrf.mxu3 }
 0x1ee   : > { %v5711_v0 = vadd.f32 %v2551_v19, %v5635_v22  ;;  %v2509_v52 = vpop.f32.mrf.mxu1 }
 0x1f4   : > { %v2352_v33 = vpop.f32.mrf.mxu0  ;;  %v3290_v30 = vpop.f32.mrf.mxu2 }
 0x1f5   : > { %v2510_v16 = vadd.f32 %v2509_v52, %v2352_v33 }
 0x1f6   : > { %v2511_v42 = vpop.f32.mrf.mxu1 }
 0x1f7   : > { %v3350_v5 = vadd.f32 %v3288_v61, %v2510_v16 }
 0x1f9   : > { %v3386_v32 = vadd.f32 %v5570_v36, %v3350_v5 }
 0x1fb   : > { %3418 = vst [vmem:[%s5578_s21 + $0x60] sm:$0xff] %v3386_v32 }
 0x1fc   : > { %v2354_v62 = vpop.f32.mrf.mxu0 }
 0x1fd   : > { %v2512_v60 = vadd.f32 %v2511_v42, %v2354_v62 }
 0x1fe   : > { %v3293_v18 = vpop.f32.mrf.mxu2 }
 0x1ff   : > { %v3351_v8 = vadd.f32 %v3290_v30, %v2512_v60 }
 0x200   : > { %v2514_v22 = vpop.f32.mrf.mxu1 }
 0x201   : > { %v3387_v50 = vadd.f32 %v5570_v36, %v3351_v8 }
 0x202   : > { %v5717_v54 = vpop.f32.mrf.mxu3 }
 0x203   : > { %3419 = vst [vmem:[%s5578_s21 + $0x68] sm:$0xff] %v3387_v50 }
 0x206   : > { %v3295_v25 = vpop.f32.mrf.mxu2 }
 0x207   : > { %v2357_v40 = vpop.f32.mrf.mxu0 }
 0x208   : > { %v2515_v17 = vadd.f32 %v2514_v22, %v2357_v40  ;;  %v2516_v27 = vpop.f32.mrf.mxu1 }
 0x20a   : > { %v3352_v63 = vadd.f32 %v3293_v18, %v2515_v17  ;;  %v5721_v56 = vpop.f32.mrf.mxu3 }
 0x20c   : > { %v3388_v44 = vadd.f32 %v5570_v36, %v3352_v63 }
 0x20e   : > { %3420 = vst [vmem:[%s5578_s21 + $0x70] sm:$0xff] %v3388_v44 }
 0x20f   : > { %v2359_v29 = vpop.f32.mrf.mxu0 }
 0x210   : > { %v2517_v10 = vadd.f32 %v2516_v27, %v2359_v29 }
 0x212   : > { %v3353_v11 = vadd.f32 %v3295_v25, %v2517_v10 }
 0x214   : > { %v3389_v57 = vadd.f32 %v5570_v36, %v3353_v11 }
 0x215   : > { %v3298_v55 = vpop.f32.mrf.mxu2 }
 0x216   : > { %3421 = vst [vmem:[%s5578_s21 + $0x78] sm:$0xff] %v3389_v57 }
 0x218   : > { %v2362_v35 = vpop.f32.mrf.mxu0 }
 0x21b   : > { %v3318_v59 = vpop.f32.mrf.mxu3 }
 0x21c   : > { %v3362_v39 = vadd.f32 %v3318_v59, %v2540_v58 }
 0x21d   : > { %v2519_v53 = vpop.f32.mrf.mxu1  ;;  %v3300_v24 = vpop.f32.mrf.mxu2 }
 0x21e   : > { %v3398_v48 = vadd.f32 %v5570_v36, %v3362_v39  ;;  %v2520_v12 = vadd.f32 %v2519_v53, %v2362_v35 }
 0x220   : > { %3430 = vst [vmem:[%s5578_s21 + $0xc0] sm:$0xff] %v3398_v48  ;;  %v3354_v38 = vadd.f32 %v3298_v55, %v2520_v12  ;;  %v2364_v37 = vpop.f32.mrf.mxu0  ;;  %v2557_v48 = vadd.f32 %v5721_v56, %v5652_v28 }
 0x222   : > { %v3390_v15 = vadd.f32 %v5570_v36, %v3354_v38 }
 0x223   : > { %v3320_v47 = vpop.f32.mrf.mxu3 }
 0x224   : > { %3422 = vst [vmem:[%s5578_s21 + $0x80] sm:$0xff] %v3390_v15  ;;  %v3363_v6 = vadd.f32 %v3320_v47, %v2542_v7 }
 0x225   : > { %v2521_v20 = vpop.f32.mrf.mxu1 }
 0x226   : > { %v3399_v23 = vadd.f32 %v5570_v36, %v3363_v6  ;;  %v2522_v49 = vadd.f32 %v2521_v20, %v2364_v37  ;;  %v3303_v4 = vpop.f32.mrf.mxu2 }
 0x228   : > { %3431 = vst [vmem:[%s5578_s21 + $0xc8] sm:$0xff] %v3399_v23  ;;  %v3355_v3 = vadd.f32 %v3300_v24, %v2522_v49 }
 0x22a   : > { %v3391_v14 = vadd.f32 %v5570_v36, %v3355_v3 }
 0x22c   : > { %3423 = vst [vmem:[%s5578_s21 + $0x88] sm:$0xff] %v3391_v14 }
 0x22d   : > { %v3323_v13 = vpop.f32.mrf.mxu3 }
 0x22e   : > { %v3364_v21 = vadd.f32 %v3323_v13, %v5686_v45  ;;  %v3305_v16 = vpop.f32.mrf.mxu2 }
 0x22f   : > { %v2524_v1 = vpop.f32.mrf.mxu1 }
 0x230   : > { %v3400_v2 = vadd.f32 %v5570_v36, %v3364_v21 }
 0x232   : > { %3432 = vst [vmem:[%s5578_s21 + $0xd0] sm:$0xff] %v3400_v2 }
 0x235   : > { %v2367_v41 = vpop.f32.mrf.mxu0  ;;  %v3325_v43 = vpop.f32.mrf.mxu3 }
 0x236   : > { %v2525_v46 = vadd.f32 %v2524_v1, %v2367_v41  ;;  %v3365_v26 = vadd.f32 %v3325_v43, %v5697_v9 }
 0x237   : > { %v2526_v61 = vpop.f32.mrf.mxu1 }
 0x238   : > { %v3356_v51 = vadd.f32 %v3303_v4, %v2525_v46  ;;  %v3401_v52 = vadd.f32 %v5570_v36, %v3365_v26 }
 0x23a   : > { %v3392_v19 = vadd.f32 %v5570_v36, %v3356_v51  ;;  %3433 = vst [vmem:[%s5578_s21 + $0xd8] sm:$0xff] %v3401_v52 }
 0x23c   : > { %3424 = vst [vmem:[%s5578_s21 + $0x90] sm:$0xff] %v3392_v19 }
 0x23d   : > { %v2369_v45 = vpop.f32.mrf.mxu0 }
 0x23e   : > { %v2527_v33 = vadd.f32 %v2526_v61, %v2369_v45  ;;  %v3328_v32 = vpop.f32.mrf.mxu3 }
 0x23f   : > { %v3366_v42 = vadd.f32 %v3328_v32, %v5706_v34 }
 0x240   : > { %v3357_v5 = vadd.f32 %v3305_v16, %v2527_v33  ;;  %v2529_v30 = vpop.f32.mrf.mxu1 }
 0x241   : > { %v3402_v9 = vadd.f32 %v5570_v36, %v3366_v42 }
 0x242   : > { %v3393_v62 = vadd.f32 %v5570_v36, %v3357_v5 }
 0x243   : > { %3434 = vst [vmem:[%s5578_s21 + $0xe0] sm:$0xff] %v3402_v9  ;;  %v3308_v8 = vpop.f32.mrf.mxu2 }
 0x244   : > { %3425 = vst [vmem:[%s5578_s21 + $0x98] sm:$0xff] %v3393_v62 }
 0x246   : > { %v3330_v60 = vpop.f32.mrf.mxu3 }
 0x247   : > { %v3367_v50 = vadd.f32 %v3330_v60, %v5711_v0  ;;  %v2372_v22 = vpop.f32.mrf.mxu0  ;;  %v2555_v0 = vadd.f32 %v5717_v54, %v5643_v31 }
 0x248   : > { %v2530_v18 = vadd.f32 %v2529_v30, %v2372_v22  ;;  %v2531_v63 = vpop.f32.mrf.mxu1 }
 0x249   : > { %v3403_v40 = vadd.f32 %v5570_v36, %v3367_v50 }
 0x24a   : > { %v3358_v17 = vadd.f32 %v3308_v8, %v2530_v18 }
 0x24b   : > { %3435 = vst [vmem:[%s5578_s21 + $0xe8] sm:$0xff] %v3403_v40  ;;  %v3310_v29 = vpop.f32.mrf.mxu2 }
 0x24c   : > { %v3394_v34 = vadd.f32 %v5570_v36, %v3358_v17 }
 0x24e   : > { %3426 = vst [vmem:[%s5578_s21 + $0xa0] sm:$0xff] %v3394_v34 }
 0x24f   : > { %v2374_v44 = vpop.f32.mrf.mxu0 }
 0x250   : > { %v2532_v27 = vadd.f32 %v2531_v63, %v2374_v44 }
 0x252   : > { %v3359_v10 = vadd.f32 %v3310_v29, %v2532_v27 }
 0x254   : > { %v3395_v25 = vadd.f32 %v5570_v36, %v3359_v10 }
 0x255   : > { %v3313_v35 = vpop.f32.mrf.mxu2 }
 0x256   : > { %3427 = vst [vmem:[%s5578_s21 + $0xa8] sm:$0xff] %v3395_v25 }
 0x258   : > { %v2377_v11 = vpop.f32.mrf.mxu0 }
 0x25b   : > { %v3333_v57 = vpop.f32.mrf.mxu3 }
 0x25c   : > { %v3368_v58 = vadd.f32 %v3333_v57, %v2555_v0 }
 0x25d   : > { %v2534_v59 = vpop.f32.mrf.mxu1  ;;  %v3315_v28 = vpop.f32.mrf.mxu2 }
 0x25e   : > { %v3404_v39 = vadd.f32 %v5570_v36, %v3368_v58  ;;  %v2535_v55 = vadd.f32 %v2534_v59, %v2377_v11 }
 0x260   : > { %3436 = vst [vmem:[%s5578_s21 + $0xf0] sm:$0xff] %v3404_v39  ;;  %v3360_v53 = vadd.f32 %v3313_v35, %v2535_v55  ;;  %v2379_v54 = vpop.f32.mrf.mxu0 }
 0x262   : > { %v3396_v12 = vadd.f32 %v5570_v36, %v3360_v53 }
 0x263   : > { %v3335_v31 = vpop.f32.mrf.mxu3 }
 0x264   : > { %3428 = vst [vmem:[%s5578_s21 + $0xb0] sm:$0xff] %v3396_v12  ;;  %v3369_v38 = vadd.f32 %v3335_v31, %v2557_v48 }
 0x265   : > { %v2536_v7 = vpop.f32.mrf.mxu1 }
 0x266   : > { %v3405_v15 = vadd.f32 %v5570_v36, %v3369_v38  ;;  %v2537_v47 = vadd.f32 %v2536_v7, %v2379_v54 }
 0x268   : > { %3437 = vst [vmem:[%s5578_s21 + $0xf8] sm:$0xff] %v3405_v15  ;;  %v3361_v56 = vadd.f32 %v3315_v28, %v2537_v47 }
 0x26a   : > { %v3397_v37 = vadd.f32 %v5570_v36, %v3361_v56 }
 0x26c   : > { %3429 = vst [vmem:[%s5578_s21 + $0xb8] sm:$0xff] %v3397_v37 }
 0x26d   : > { %4119 = shalt.err (!%p4116_p10)
}
 0x26e   : > { %s4184_s6 = smov 128   ;;  %s4185_s27 = smov 8  }
 0x26f   : > { %3907 = dma.vmem_to_hbm [thread:$0]  (%p4275_p3), %s3452_s16, 4096, %s3454_s7, %s3439_s8, %s4184_s6, %s4184_s6, %s4185_s27  }
 0x270 PF: > { %s3468_s28 = sand.u32 1, %s4165_s12   ;;  %p5993_p12 = scmp.ge.s32.totalorder %s4177_s15, 2 }
 0x271   : > { %s3469_s17 = scalar_lea.sflag [#allocation5], %s3468_s28 }
 0x272   : > { %p3918_p13 = pnand %p5993_p12, %p4241_p6 }
 0x274   : > { %p3919_p0 = pneg %p3918_p13 }
 0x276   : > { %4145 = dma.done.wait (%p3919_p0), %s3469_s17, 4096  }
 0x277   : > { %4147 = vsyncadd (%p3919_p0), %s3469_s17, 4294963200  ;;  %p17_p5 = scmp.ge.s32.totalorder %s4259_s26, 4   ;;  %s5994_s12 = smov %s4169_s13 }
 0x278   : > { %s5995_s13 = smov %s4173_s14  ;;  %s5996_s14 = smov %s4271_s4 }
 0x279   : > { %s5997_s15 = smov %s4259_s26  ;;  %19 = sbr.rel (!%p17_p5) target bundleno = 6 (0x6), region = 85 }
 0x27e   :  { %3475 = vsyncpa [#allocation4], 1 }
 0x27f   :  { %3477 = vsyncpa [#allocation4 + $0x1], 1 }
 0x280   :  { %3478 = vsyncpa [#allocation7], 1 }
 0x281   :  { %3479 = vsyncpa [#allocation5], 1 }
 0x282   :  { %3481 = vsyncpa [#allocation5 + $0x1], 1 }

</bundles_post_ra>
